<compile_context>
chip_gen: v6e
topology: v6e:2x2x1
jax: 0.10.0
libtpu: 0.0.40
codegen_flags: <defaults>
</compile_context>

<pallas_src>
import jax
import jax.numpy as jnp
from jax.experimental import pallas as pl
from jax.experimental.pallas import tpu as pltpu


# ----------------------------- Pallas kernels ------------------------------

def _conv1_kernel(x_ref, w_ref, b_ref, o_ref):
    """conv1 (1->32, 3x3, pad=1) + bias + ReLU + 2x2 maxpool for one sample.

    x_ref: (1, 2, 15, 30) bf16  H-parity-split padded input:
           x_ref[0, rp, a, w] = xpad[2a + rp, w]   (xpad = 30x30 zero-padded)
    w_ref: (2, 3, 30, 448) bf16 banded shift weights (built at init), indexed
           [out_W_parity v, ky, w', j*32 + ch].
    b_ref: (1, 448) f32         bias tiled over the 14 output columns.
    o_ref: (1, 14, 448) bf16    pooled output slab [i, j*32 + ch].
    """
    pooled = None
    for p in range(2):          # H parity of the pre-pool output row
        for v in range(2):      # W parity of the pre-pool output column
            acc = None
            for ky in range(3):
                rp, ap = (p + ky) % 2, (p + ky) // 2
                lhs = x_ref[0, rp, ap:ap + 14, :]                       # (14, 30)
                part = jnp.dot(lhs, w_ref[v, ky],
                               preferred_element_type=jnp.float32)      # (14, 448)
                acc = part if acc is None else acc + part
            pooled = acc if pooled is None else jnp.maximum(pooled, acc)
    out = jnp.maximum(pooled + b_ref[...], 0.0)
    o_ref[...] = out[None].astype(o_ref.dtype)


def _conv2_kernel(x_ref, w_ref, b_ref, o_ref):
    """conv2 (32->64, 3x3, pad=1) + bias + ReLU + 2x2 maxpool for one sample.

    x_ref: (1, 2, 2, 72, 32) bf16  2x2-parity-split padded conv1 output:
           x_ref[0, rp, rq, 8*a + c, ci] = Zpad[2a+rp, 2c+rq, ci]
           (Zpad = 16x16x32 zero-padded pooled conv1 map; rows 64..71 are 0.)
    w_ref: (9, 32, 64) bf16        taps [ky*3 + kx, ci, co].
    b_ref: (1, 64) f32
    o_ref: (1, 56, 64) bf16        pooled slab; row 8*a + b is valid for b<=6,
                                   rows with b==7 are harmless finite garbage
                                   that fc1 zero-weights.
    """
    pooled = None
    for p in range(2):
        for v in range(2):
            acc = None
            for ky in range(3):
                for kx in range(3):
                    rp, ap = (p + ky) % 2, (p + ky) // 2
                    rq, aq = (v + kx) % 2, (v + kx) // 2
                    d = 8 * ap + aq
                    xs = x_ref[0, rp, rq, d:d + 56, :]                  # (56, 32)
                    part = jnp.dot(xs, w_ref[ky * 3 + kx],
                                   preferred_element_type=jnp.float32)  # (56, 64)
                    acc = part if acc is None else acc + part
            pooled = acc if pooled is None else jnp.maximum(pooled, acc)
    out = jnp.maximum(pooled + b_ref[...], 0.0)
    o_ref[...] = out[None].astype(o_ref.dtype)


def _fc_kernel(x_ref, w1_ref, b1_ref, w2_ref, b2_ref, o_ref):
    """Fused fc1 + ReLU + fc2 on an M-tile of the batch (weights VMEM-resident)."""
    h = jnp.dot(x_ref[...], w1_ref[...], preferred_element_type=jnp.float32)
    h = jnp.maximum(h + b1_ref[...], 0.0)
    # TODO(synk): Dropout(p=0.25) implemented as identity (eval-mode semantics).
    o_ref[...] = (jnp.dot(h.astype(jnp.bfloat16), w2_ref[...],
                          preferred_element_type=jnp.float32) + b2_ref[...])


# ------------------------------ wrappers ------------------------------------

def _parallel(n_axes=1):
    return pltpu.CompilerParams(dimension_semantics=("parallel",) * n_axes)


def conv1_pool(xp, w, b):
    B = xp.shape[0]
    return pl.pallas_call(
        _conv1_kernel,
        out_shape=jax.ShapeDtypeStruct((B, 14, 448), jnp.bfloat16),
        grid=(B,),
        in_specs=[
            pl.BlockSpec((1, 2, 15, 30), lambda i: (i, 0, 0, 0)),
            pl.BlockSpec((2, 3, 30, 448), lambda i: (0, 0, 0, 0)),
            pl.BlockSpec((1, 448), lambda i: (0, 0)),
        ],
        out_specs=pl.BlockSpec((1, 14, 448), lambda i: (i, 0, 0)),
        compiler_params=_parallel(),
    )(xp, w, b)


def conv2_pool(x2, w, b):
    B = x2.shape[0]
    return pl.pallas_call(
        _conv2_kernel,
        out_shape=jax.ShapeDtypeStruct((B, 56, 64), jnp.bfloat16),
        grid=(B,),
        in_specs=[
            pl.BlockSpec((1, 2, 2, 72, 32), lambda i: (i, 0, 0, 0, 0)),
            pl.BlockSpec((9, 32, 64), lambda i: (0, 0, 0)),
            pl.BlockSpec((1, 64), lambda i: (0, 0)),
        ],
        out_specs=pl.BlockSpec((1, 56, 64), lambda i: (i, 0, 0)),
        compiler_params=_parallel(),
    )(x2, w, b)


def _pick_tile_m(m):
    for t in (256, 128, 64, 32, 16, 8):
        if m % t == 0:
            return t
    return m  # small / odd batch: single full-M block


def fc_forward(x, w1, b1, w2, b2):
    B, K = x.shape
    tm = _pick_tile_m(B)
    return pl.pallas_call(
        _fc_kernel,
        out_shape=jax.ShapeDtypeStruct((B, 128), jnp.float32),
        grid=(B // tm,),
        in_specs=[
            pl.BlockSpec((tm, K), lambda i: (i, 0)),
            pl.BlockSpec((K, 128), lambda i: (0, 0)),
            pl.BlockSpec((1, 128), lambda i: (0, 0)),
            pl.BlockSpec((128, 128), lambda i: (0, 0)),
            pl.BlockSpec((1, 128), lambda i: (0, 0)),
        ],
        out_specs=pl.BlockSpec((tm, 128), lambda i: (i, 0)),
        compiler_params=_parallel(),
    )(x, w1, b1, w2, b2)


# ------------------------------ parameters ----------------------------------

def _conv1_banded_weights(conv1_w_oihw):
    """Fold 3x3 taps + W-shift + output-W-parity into (2,3,30,448) matrices.

    bm[v, ky, w', j*32+ch] = sum_kx [w' == 2j + v + kx] * W1[ch, 0, ky, kx]
    so that  y[2i+p, 2j+v, ch] = sum_ky (Xp[rp, i+ap, :] @ bm[v, ky])[i, j*32+ch].
    """
    w = jnp.transpose(conv1_w_oihw[:, 0], (1, 2, 0))      # (ky, kx, ch)
    wcol = jnp.arange(30)
    jcol = jnp.arange(14)
    vpar = jnp.arange(2)
    kxs = jnp.arange(3)
    sel = (wcol[None, None, :, None] ==
           2 * jcol[None, None, None, :] + vpar[:, None, None, None]
           + kxs[None, :, None, None]).astype(jnp.float32)  # (2,3,30,14)
    bm = jnp.einsum("vxwj,yxc->vywjc", sel, w)               # (2,3,30,14,32)
    return bm.reshape(2, 3, 30, 14 * 32)


def init_params(key):
    ks = jax.random.split(key, 8)

    def rnd(k, shape, fan_in):
        return jax.random.normal(k, shape, jnp.float32) / jnp.sqrt(fan_in)

    # PyTorch-shaped parameters (random init, same shapes as the nn.Module).
    conv1_w = rnd(ks[0], (32, 1, 3, 3), 1 * 9)      # OIHW
    conv1_b = rnd(ks[1], (32,), 1 * 9)
    conv2_w = rnd(ks[2], (64, 32, 3, 3), 32 * 9)    # OIHW
    conv2_b = rnd(ks[3], (64,), 32 * 9)
    # fc1 rows are stored directly in the conv2-output slab order
    # row = (8*a + b)*64 + co  (<-> PyTorch column co*49 + a*7 + b of fc1.weight);
    # rows with b == 7 are padding positions and are zeroed.
    fc1_w = rnd(ks[4], (56 * 64, 128), 64 * 7 * 7)
    fc1_b = rnd(ks[5], (128,), 64 * 7 * 7)
    fc2_w = rnd(ks[6], (128, 10), 128)
    fc2_b = rnd(ks[7], (10,), 128)

    valid = (((jnp.arange(56 * 64) // 64) % 8) != 7).astype(jnp.float32)

    return {
        "conv1_bm": _conv1_banded_weights(conv1_w).astype(jnp.bfloat16),
        "conv1_b": jnp.tile(conv1_b, 14).reshape(1, 448).astype(jnp.float32),
        "conv2_w": jnp.transpose(conv2_w, (2, 3, 1, 0)).reshape(9, 32, 64)
                     .astype(jnp.bfloat16),
        "conv2_b": conv2_b.reshape(1, 64).astype(jnp.float32),
        "fc1_w": (fc1_w * valid[:, None]).astype(jnp.bfloat16),
        "fc1_b": fc1_b.reshape(1, 128).astype(jnp.float32),
        "fc2_w": jnp.pad(fc2_w, ((0, 0), (0, 118))).astype(jnp.bfloat16),
        "fc2_b": jnp.pad(fc2_b, (0, 118)).reshape(1, 128).astype(jnp.float32),
    }


# ------------------------------ forward -------------------------------------

@jax.jit
def cnn_forward(x_nchw, params):
    B = x_nchw.shape[0]
    x = x_nchw.reshape(B, 28, 28).astype(jnp.float32)

    # conv1 input: zero-pad to 30x30 and split H into even/odd rows so the
    # fused 2x2 pool needs only unit-stride in-kernel slices.
    xpad = jnp.pad(x, ((0, 0), (1, 1), (1, 1)))
    xp = jnp.stack([xpad[:, 0::2, :], xpad[:, 1::2, :]], axis=1)      # (B,2,15,30)
    z1 = conv1_pool(xp.astype(jnp.bfloat16),
                    params["conv1_bm"], params["conv1_b"])            # (B,14,448)

    # conv2 input: zero-pad the pooled 14x14x32 map to 16x16 and split both H
    # and W into even/odd halves (tiny bf16 repack, no im2col materialized).
    z = z1.reshape(B, 14, 14, 32)
    zp = jnp.pad(z, ((0, 0), (1, 1), (1, 1), (0, 0)))                 # (B,16,16,32)
    zh = jnp.stack([zp[:, 0::2], zp[:, 1::2]], axis=1)                # (B,2,8,16,32)
    zhw = jnp.stack([zh[:, :, :, 0::2, :], zh[:, :, :, 1::2, :]], axis=2)
    x2 = zhw.reshape(B, 2, 2, 64, 32)
    x2 = jnp.pad(x2, ((0, 0), (0, 0), (0, 0), (0, 8), (0, 0)))        # (B,2,2,72,32)
    z2 = conv2_pool(x2, params["conv2_w"], params["conv2_b"])         # (B,56,64)

    # Flatten is a free contiguous reshape (fc1 rows were permuted at init);
    # fc1+ReLU+fc2 run in one kernel, fc2 padded to 128 lanes and sliced here.
    feat = z2.reshape(B, 56 * 64)
    logits = fc_forward(feat, params["fc1_w"], params["fc1_b"],
                        params["fc2_w"], params["fc2_b"])             # (B,128) f32
    return logits[:, :10]


if __name__ == "__main__":
    key = jax.random.PRNGKey(0)
    k_x, k_p = jax.random.split(key)
    # fc1 expects 64*7*7 features -> input must be (B, 1, 28, 28)
    x = jax.random.normal(k_x, (2, 1, 28, 28), jnp.float32)
    params = init_params(k_p)
    out = cnn_forward(x, params)
    out = jax.block_until_ready(out)
    assert out.shape == (2, 10) and out.dtype == jnp.float32
    print("KERNEL_OK")
</pallas_src>

<mosaic_0001>
module attributes {stable_mosaic.version = 11 : i64} {
  func.func @_conv1_kernel(%arg0: i32, %arg1: memref<1x2x15x30xbf16, #tpu.memory_space<vmem>>, %arg2: memref<2x3x30x448xbf16, #tpu.memory_space<vmem>>, %arg3: memref<1x448xf32, #tpu.memory_space<vmem>>, %arg4: memref<1x14x448xbf16, #tpu.memory_space<vmem>>) attributes {dimension_semantics = [#tpu.dimension_semantics<parallel>], iteration_bounds = array<i64: 2>, scalar_prefetch = 0 : i64, scratch_operands = 0 : i64, tpu.core_type = #tpu.core_type<tc>, window_params = [{transform_indices = @transform_0, window_bounds = array<i64: 1, 2, 15, 30>}, {pipeline_mode = #tpu.pipeline_mode<synchronous>, transform_indices = @transform_1, window_bounds = array<i64: 2, 3, 30, 448>}, {pipeline_mode = #tpu.pipeline_mode<synchronous>, transform_indices = @transform_2, window_bounds = array<i64: 1, 448>}, {transform_indices = @transform_3, window_bounds = array<i64: 1, 14, 448>}]} {
    %c0 = arith.constant 0 : index
    %c0_0 = arith.constant 0 : index
    %c0_1 = arith.constant 0 : index
    %c0_2 = arith.constant 0 : index
    %0 = vector.load %arg1[%c0, %c0_0, %c0_1, %c0_2] : memref<1x2x15x30xbf16, #tpu.memory_space<vmem>>, vector<1x1x14x30xbf16>
    %1 = vector.shape_cast %0 : vector<1x1x14x30xbf16> to vector<14x30xbf16>
    %c0_3 = arith.constant 0 : index
    %c0_4 = arith.constant 0 : index
    %c0_5 = arith.constant 0 : index
    %c0_6 = arith.constant 0 : index
    %2 = vector.load %arg2[%c0_3, %c0_4, %c0_5, %c0_6] : memref<2x3x30x448xbf16, #tpu.memory_space<vmem>>, vector<1x1x30x448xbf16>
    %3 = vector.shape_cast %2 : vector<1x1x30x448xbf16> to vector<30x448xbf16>
    %cst = arith.constant dense<0.000000e+00> : vector<14x448xf32>
    %4 = tpu.matmul %1, %3, %cst {dimension_numbers = #tpu.dot_dimension_numbers<[1], [0], [0], [1], [0, 0, 1, 1], [], []>} : vector<14x30xbf16>, vector<30x448xbf16>, vector<14x448xf32> -> vector<14x448xf32>
    %c0_7 = arith.constant 0 : index
    %c1 = arith.constant 1 : index
    %c0_8 = arith.constant 0 : index
    %c0_9 = arith.constant 0 : index
    %5 = vector.load %arg1[%c0_7, %c1, %c0_8, %c0_9] : memref<1x2x15x30xbf16, #tpu.memory_space<vmem>>, vector<1x1x14x30xbf16>
    %6 = vector.shape_cast %5 : vector<1x1x14x30xbf16> to vector<14x30xbf16>
    %c0_10 = arith.constant 0 : index
    %c1_11 = arith.constant 1 : index
    %c0_12 = arith.constant 0 : index
    %c0_13 = arith.constant 0 : index
    %7 = vector.load %arg2[%c0_10, %c1_11, %c0_12, %c0_13] : memref<2x3x30x448xbf16, #tpu.memory_space<vmem>>, vector<1x1x30x448xbf16>
    %8 = vector.shape_cast %7 : vector<1x1x30x448xbf16> to vector<30x448xbf16>
    %cst_14 = arith.constant dense<0.000000e+00> : vector<14x448xf32>
    %9 = tpu.matmul %6, %8, %cst_14 {dimension_numbers = #tpu.dot_dimension_numbers<[1], [0], [0], [1], [0, 0, 1, 1], [], []>} : vector<14x30xbf16>, vector<30x448xbf16>, vector<14x448xf32> -> vector<14x448xf32>
    %10 = arith.addf %4, %9 : vector<14x448xf32>
    %c0_15 = arith.constant 0 : index
    %c0_16 = arith.constant 0 : index
    %c1_17 = arith.constant 1 : index
    %c0_18 = arith.constant 0 : index
    %11 = vector.load %arg1[%c0_15, %c0_16, %c1_17, %c0_18] : memref<1x2x15x30xbf16, #tpu.memory_space<vmem>>, vector<1x1x14x30xbf16>
    %12 = vector.shape_cast %11 : vector<1x1x14x30xbf16> to vector<14x30xbf16>
    %c0_19 = arith.constant 0 : index
    %c2 = arith.constant 2 : index
    %c0_20 = arith.constant 0 : index
    %c0_21 = arith.constant 0 : index
    %13 = vector.load %arg2[%c0_19, %c2, %c0_20, %c0_21] : memref<2x3x30x448xbf16, #tpu.memory_space<vmem>>, vector<1x1x30x448xbf16>
    %14 = vector.shape_cast %13 : vector<1x1x30x448xbf16> to vector<30x448xbf16>
    %cst_22 = arith.constant dense<0.000000e+00> : vector<14x448xf32>
    %15 = tpu.matmul %12, %14, %cst_22 {dimension_numbers = #tpu.dot_dimension_numbers<[1], [0], [0], [1], [0, 0, 1, 1], [], []>} : vector<14x30xbf16>, vector<30x448xbf16>, vector<14x448xf32> -> vector<14x448xf32>
    %16 = arith.addf %10, %15 : vector<14x448xf32>
    %c0_23 = arith.constant 0 : index
    %c0_24 = arith.constant 0 : index
    %c0_25 = arith.constant 0 : index
    %c0_26 = arith.constant 0 : index
    %17 = vector.load %arg1[%c0_23, %c0_24, %c0_25, %c0_26] : memref<1x2x15x30xbf16, #tpu.memory_space<vmem>>, vector<1x1x14x30xbf16>
    %18 = vector.shape_cast %17 : vector<1x1x14x30xbf16> to vector<14x30xbf16>
    %c1_27 = arith.constant 1 : index
    %c0_28 = arith.constant 0 : index
    %c0_29 = arith.constant 0 : index
    %c0_30 = arith.constant 0 : index
    %19 = vector.load %arg2[%c1_27, %c0_28, %c0_29, %c0_30] : memref<2x3x30x448xbf16, #tpu.memory_space<vmem>>, vector<1x1x30x448xbf16>
    %20 = vector.shape_cast %19 : vector<1x1x30x448xbf16> to vector<30x448xbf16>
    %cst_31 = arith.constant dense<0.000000e+00> : vector<14x448xf32>
    %21 = tpu.matmul %18, %20, %cst_31 {dimension_numbers = #tpu.dot_dimension_numbers<[1], [0], [0], [1], [0, 0, 1, 1], [], []>} : vector<14x30xbf16>, vector<30x448xbf16>, vector<14x448xf32> -> vector<14x448xf32>
    %c0_32 = arith.constant 0 : index
    %c1_33 = arith.constant 1 : index
    %c0_34 = arith.constant 0 : index
    %c0_35 = arith.constant 0 : index
    %22 = vector.load %arg1[%c0_32, %c1_33, %c0_34, %c0_35] : memref<1x2x15x30xbf16, #tpu.memory_space<vmem>>, vector<1x1x14x30xbf16>
    %23 = vector.shape_cast %22 : vector<1x1x14x30xbf16> to vector<14x30xbf16>
    %c1_36 = arith.constant 1 : index
    %c1_37 = arith.constant 1 : index
    %c0_38 = arith.constant 0 : index
    %c0_39 = arith.constant 0 : index
    %24 = vector.load %arg2[%c1_36, %c1_37, %c0_38, %c0_39] : memref<2x3x30x448xbf16, #tpu.memory_space<vmem>>, vector<1x1x30x448xbf16>
    %25 = vector.shape_cast %24 : vector<1x1x30x448xbf16> to vector<30x448xbf16>
    %cst_40 = arith.constant dense<0.000000e+00> : vector<14x448xf32>
    %26 = tpu.matmul %23, %25, %cst_40 {dimension_numbers = #tpu.dot_dimension_numbers<[1], [0], [0], [1], [0, 0, 1, 1], [], []>} : vector<14x30xbf16>, vector<30x448xbf16>, vector<14x448xf32> -> vector<14x448xf32>
    %27 = arith.addf %21, %26 : vector<14x448xf32>
    %c0_41 = arith.constant 0 : index
    %c0_42 = arith.constant 0 : index
    %c1_43 = arith.constant 1 : index
    %c0_44 = arith.constant 0 : index
    %28 = vector.load %arg1[%c0_41, %c0_42, %c1_43, %c0_44] : memref<1x2x15x30xbf16, #tpu.memory_space<vmem>>, vector<1x1x14x30xbf16>
    %29 = vector.shape_cast %28 : vector<1x1x14x30xbf16> to vector<14x30xbf16>
    %c1_45 = arith.constant 1 : index
    %c2_46 = arith.constant 2 : index
    %c0_47 = arith.constant 0 : index
    %c0_48 = arith.constant 0 : index
    %30 = vector.load %arg2[%c1_45, %c2_46, %c0_47, %c0_48] : memref<2x3x30x448xbf16, #tpu.memory_space<vmem>>, vector<1x1x30x448xbf16>
    %31 = vector.shape_cast %30 : vector<1x1x30x448xbf16> to vector<30x448xbf16>
    %cst_49 = arith.constant dense<0.000000e+00> : vector<14x448xf32>
    %32 = tpu.matmul %29, %31, %cst_49 {dimension_numbers = #tpu.dot_dimension_numbers<[1], [0], [0], [1], [0, 0, 1, 1], [], []>} : vector<14x30xbf16>, vector<30x448xbf16>, vector<14x448xf32> -> vector<14x448xf32>
    %33 = arith.addf %27, %32 : vector<14x448xf32>
    %34 = arith.maximumf %16, %33 : vector<14x448xf32>
    %c0_50 = arith.constant 0 : index
    %c1_51 = arith.constant 1 : index
    %c0_52 = arith.constant 0 : index
    %c0_53 = arith.constant 0 : index
    %35 = vector.load %arg1[%c0_50, %c1_51, %c0_52, %c0_53] : memref<1x2x15x30xbf16, #tpu.memory_space<vmem>>, vector<1x1x14x30xbf16>
    %36 = vector.shape_cast %35 : vector<1x1x14x30xbf16> to vector<14x30xbf16>
    %c0_54 = arith.constant 0 : index
    %c0_55 = arith.constant 0 : index
    %c0_56 = arith.constant 0 : index
    %c0_57 = arith.constant 0 : index
    %37 = vector.load %arg2[%c0_54, %c0_55, %c0_56, %c0_57] : memref<2x3x30x448xbf16, #tpu.memory_space<vmem>>, vector<1x1x30x448xbf16>
    %38 = vector.shape_cast %37 : vector<1x1x30x448xbf16> to vector<30x448xbf16>
    %cst_58 = arith.constant dense<0.000000e+00> : vector<14x448xf32>
    %39 = tpu.matmul %36, %38, %cst_58 {dimension_numbers = #tpu.dot_dimension_numbers<[1], [0], [0], [1], [0, 0, 1, 1], [], []>} : vector<14x30xbf16>, vector<30x448xbf16>, vector<14x448xf32> -> vector<14x448xf32>
    %c0_59 = arith.constant 0 : index
    %c0_60 = arith.constant 0 : index
    %c1_61 = arith.constant 1 : index
    %c0_62 = arith.constant 0 : index
    %40 = vector.load %arg1[%c0_59, %c0_60, %c1_61, %c0_62] : memref<1x2x15x30xbf16, #tpu.memory_space<vmem>>, vector<1x1x14x30xbf16>
    %41 = vector.shape_cast %40 : vector<1x1x14x30xbf16> to vector<14x30xbf16>
    %c0_63 = arith.constant 0 : index
    %c1_64 = arith.constant 1 : index
    %c0_65 = arith.constant 0 : index
    %c0_66 = arith.constant 0 : index
    %42 = vector.load %arg2[%c0_63, %c1_64, %c0_65, %c0_66] : memref<2x3x30x448xbf16, #tpu.memory_space<vmem>>, vector<1x1x30x448xbf16>
    %43 = vector.shape_cast %42 : vector<1x1x30x448xbf16> to vector<30x448xbf16>
    %cst_67 = arith.constant dense<0.000000e+00> : vector<14x448xf32>
    %44 = tpu.matmul %41, %43, %cst_67 {dimension_numbers = #tpu.dot_dimension_numbers<[1], [0], [0], [1], [0, 0, 1, 1], [], []>} : vector<14x30xbf16>, vector<30x448xbf16>, vector<14x448xf32> -> vector<14x448xf32>
    %45 = arith.addf %39, %44 : vector<14x448xf32>
    %c0_68 = arith.constant 0 : index
    %c1_69 = arith.constant 1 : index
    %c1_70 = arith.constant 1 : index
    %c0_71 = arith.constant 0 : index
    %46 = vector.load %arg1[%c0_68, %c1_69, %c1_70, %c0_71] : memref<1x2x15x30xbf16, #tpu.memory_space<vmem>>, vector<1x1x14x30xbf16>
    %47 = vector.shape_cast %46 : vector<1x1x14x30xbf16> to vector<14x30xbf16>
    %c0_72 = arith.constant 0 : index
    %c2_73 = arith.constant 2 : index
    %c0_74 = arith.constant 0 : index
    %c0_75 = arith.constant 0 : index
    %48 = vector.load %arg2[%c0_72, %c2_73, %c0_74, %c0_75] : memref<2x3x30x448xbf16, #tpu.memory_space<vmem>>, vector<1x1x30x448xbf16>
    %49 = vector.shape_cast %48 : vector<1x1x30x448xbf16> to vector<30x448xbf16>
    %cst_76 = arith.constant dense<0.000000e+00> : vector<14x448xf32>
    %50 = tpu.matmul %47, %49, %cst_76 {dimension_numbers = #tpu.dot_dimension_numbers<[1], [0], [0], [1], [0, 0, 1, 1], [], []>} : vector<14x30xbf16>, vector<30x448xbf16>, vector<14x448xf32> -> vector<14x448xf32>
    %51 = arith.addf %45, %50 : vector<14x448xf32>
    %52 = arith.maximumf %34, %51 : vector<14x448xf32>
    %c0_77 = arith.constant 0 : index
    %c1_78 = arith.constant 1 : index
    %c0_79 = arith.constant 0 : index
    %c0_80 = arith.constant 0 : index
    %53 = vector.load %arg1[%c0_77, %c1_78, %c0_79, %c0_80] : memref<1x2x15x30xbf16, #tpu.memory_space<vmem>>, vector<1x1x14x30xbf16>
    %54 = vector.shape_cast %53 : vector<1x1x14x30xbf16> to vector<14x30xbf16>
    %c1_81 = arith.constant 1 : index
    %c0_82 = arith.constant 0 : index
    %c0_83 = arith.constant 0 : index
    %c0_84 = arith.constant 0 : index
    %55 = vector.load %arg2[%c1_81, %c0_82, %c0_83, %c0_84] : memref<2x3x30x448xbf16, #tpu.memory_space<vmem>>, vector<1x1x30x448xbf16>
    %56 = vector.shape_cast %55 : vector<1x1x30x448xbf16> to vector<30x448xbf16>
    %cst_85 = arith.constant dense<0.000000e+00> : vector<14x448xf32>
    %57 = tpu.matmul %54, %56, %cst_85 {dimension_numbers = #tpu.dot_dimension_numbers<[1], [0], [0], [1], [0, 0, 1, 1], [], []>} : vector<14x30xbf16>, vector<30x448xbf16>, vector<14x448xf32> -> vector<14x448xf32>
    %c0_86 = arith.constant 0 : index
    %c0_87 = arith.constant 0 : index
    %c1_88 = arith.constant 1 : index
    %c0_89 = arith.constant 0 : index
    %58 = vector.load %arg1[%c0_86, %c0_87, %c1_88, %c0_89] : memref<1x2x15x30xbf16, #tpu.memory_space<vmem>>, vector<1x1x14x30xbf16>
    %59 = vector.shape_cast %58 : vector<1x1x14x30xbf16> to vector<14x30xbf16>
    %c1_90 = arith.constant 1 : index
    %c1_91 = arith.constant 1 : index
    %c0_92 = arith.constant 0 : index
    %c0_93 = arith.constant 0 : index
    %60 = vector.load %arg2[%c1_90, %c1_91, %c0_92, %c0_93] : memref<2x3x30x448xbf16, #tpu.memory_space<vmem>>, vector<1x1x30x448xbf16>
    %61 = vector.shape_cast %60 : vector<1x1x30x448xbf16> to vector<30x448xbf16>
    %cst_94 = arith.constant dense<0.000000e+00> : vector<14x448xf32>
    %62 = tpu.matmul %59, %61, %cst_94 {dimension_numbers = #tpu.dot_dimension_numbers<[1], [0], [0], [1], [0, 0, 1, 1], [], []>} : vector<14x30xbf16>, vector<30x448xbf16>, vector<14x448xf32> -> vector<14x448xf32>
    %63 = arith.addf %57, %62 : vector<14x448xf32>
    %c0_95 = arith.constant 0 : index
    %c1_96 = arith.constant 1 : index
    %c1_97 = arith.constant 1 : index
    %c0_98 = arith.constant 0 : index
    %64 = vector.load %arg1[%c0_95, %c1_96, %c1_97, %c0_98] : memref<1x2x15x30xbf16, #tpu.memory_space<vmem>>, vector<1x1x14x30xbf16>
    %65 = vector.shape_cast %64 : vector<1x1x14x30xbf16> to vector<14x30xbf16>
    %c1_99 = arith.constant 1 : index
    %c2_100 = arith.constant 2 : index
    %c0_101 = arith.constant 0 : index
    %c0_102 = arith.constant 0 : index
    %66 = vector.load %arg2[%c1_99, %c2_100, %c0_101, %c0_102] : memref<2x3x30x448xbf16, #tpu.memory_space<vmem>>, vector<1x1x30x448xbf16>
    %67 = vector.shape_cast %66 : vector<1x1x30x448xbf16> to vector<30x448xbf16>
    %cst_103 = arith.constant dense<0.000000e+00> : vector<14x448xf32>
    %68 = tpu.matmul %65, %67, %cst_103 {dimension_numbers = #tpu.dot_dimension_numbers<[1], [0], [0], [1], [0, 0, 1, 1], [], []>} : vector<14x30xbf16>, vector<30x448xbf16>, vector<14x448xf32> -> vector<14x448xf32>
    %69 = arith.addf %63, %68 : vector<14x448xf32>
    %70 = arith.maximumf %52, %69 : vector<14x448xf32>
    %c0_104 = arith.constant 0 : index
    %c0_105 = arith.constant 0 : index
    %71 = vector.load %arg3[%c0_104, %c0_105] : memref<1x448xf32, #tpu.memory_space<vmem>>, vector<1x448xf32>
    %72 = vector.broadcast %71 : vector<1x448xf32> to vector<14x448xf32>
    %73 = arith.addf %70, %72 : vector<14x448xf32>
    %cst_106 = arith.constant 0.000000e+00 : f32
    %74 = vector.broadcast %cst_106 : f32 to vector<14x448xf32>
    %75 = arith.maximumf %73, %74 : vector<14x448xf32>
    %76 = vector.shape_cast %75 : vector<14x448xf32> to vector<1x14x448xf32>
    %77 = arith.truncf %76 : vector<1x14x448xf32> to vector<1x14x448xbf16>
    %c0_107 = arith.constant 0 : index
    %c0_108 = arith.constant 0 : index
    %c0_109 = arith.constant 0 : index
    %78 = vector.load %arg4[%c0_107, %c0_108, %c0_109] : memref<1x14x448xbf16, #tpu.memory_space<vmem>>, vector<1x14x448xbf16>
    tpu.vector_store %arg4[%c0_107, %c0_108, %c0_109], %77 {strides = array<i32>} : memref<1x14x448xbf16, #tpu.memory_space<vmem>>, vector<1x14x448xbf16>,
    return
  }
  func.func @transform_0(%arg0: i32) -> (i32, i32, i32, i32) {
    %c0_i32 = arith.constant 0 : i32
    %c0_i32_0 = arith.constant 0 : i32
    %c0_i32_1 = arith.constant 0 : i32
    %c0_i32_2 = arith.constant 0 : i32
    return %arg0, %c0_i32, %c0_i32_0, %c0_i32_1 : i32, i32, i32, i32
  }
  func.func @transform_1(%arg0: i32) -> (i32, i32, i32, i32) {
    %c0_i32 = arith.constant 0 : i32
    %c0_i32_0 = arith.constant 0 : i32
    %c0_i32_1 = arith.constant 0 : i32
    %c0_i32_2 = arith.constant 0 : i32
    %c0_i32_3 = arith.constant 0 : i32
    return %c0_i32, %c0_i32_0, %c0_i32_1, %c0_i32_2 : i32, i32, i32, i32
  }
  func.func @transform_2(%arg0: i32) -> (i32, i32) {
    %c0_i32 = arith.constant 0 : i32
    %c0_i32_0 = arith.constant 0 : i32
    %c0_i32_1 = arith.constant 0 : i32
    return %c0_i32, %c0_i32_0 : i32, i32
  }
  func.func @transform_3(%arg0: i32) -> (i32, i32, i32) {
    %c0_i32 = arith.constant 0 : i32
    %c0_i32_0 = arith.constant 0 : i32
    %c0_i32_1 = arith.constant 0 : i32
    return %arg0, %c0_i32, %c0_i32_0 : i32, i32, i32
  }
}

module attributes {stable_mosaic.version = 11 : i64} {
  func.func @_conv2_kernel(%arg0: i32, %arg1: memref<1x2x2x72x32xbf16, #tpu.memory_space<vmem>>, %arg2: memref<9x32x64xbf16, #tpu.memory_space<vmem>>, %arg3: memref<1x64xf32, #tpu.memory_space<vmem>>, %arg4: memref<1x56x64xbf16, #tpu.memory_space<vmem>>) attributes {dimension_semantics = [#tpu.dimension_semantics<parallel>], iteration_bounds = array<i64: 2>, scalar_prefetch = 0 : i64, scratch_operands = 0 : i64, tpu.core_type = #tpu.core_type<tc>, window_params = [{transform_indices = @transform_0, window_bounds = array<i64: 1, 2, 2, 72, 32>}, {pipeline_mode = #tpu.pipeline_mode<synchronous>, transform_indices = @transform_1, window_bounds = array<i64: 9, 32, 64>}, {pipeline_mode = #tpu.pipeline_mode<synchronous>, transform_indices = @transform_2, window_bounds = array<i64: 1, 64>}, {transform_indices = @transform_3, window_bounds = array<i64: 1, 56, 64>}]} {
    %c0 = arith.constant 0 : index
    %c0_0 = arith.constant 0 : index
    %c0_1 = arith.constant 0 : index
    %c0_2 = arith.constant 0 : index
    %c0_3 = arith.constant 0 : index
    %0 = vector.load %arg1[%c0, %c0_0, %c0_1, %c0_2, %c0_3] : memref<1x2x2x72x32xbf16, #tpu.memory_space<vmem>>, vector<1x1x1x56x32xbf16>
    %1 = vector.shape_cast %0 : vector<1x1x1x56x32xbf16> to vector<56x32xbf16>
    %c0_4 = arith.constant 0 : index
    %c0_5 = arith.constant 0 : index
    %c0_6 = arith.constant 0 : index
    %2 = vector.load %arg2[%c0_4, %c0_5, %c0_6] : memref<9x32x64xbf16, #tpu.memory_space<vmem>>, vector<1x32x64xbf16>
    %3 = vector.shape_cast %2 : vector<1x32x64xbf16> to vector<32x64xbf16>
    %cst = arith.constant dense<0.000000e+00> : vector<56x64xf32>
    %4 = tpu.matmul %1, %3, %cst {dimension_numbers = #tpu.dot_dimension_numbers<[1], [0], [0], [1], [0, 0, 1, 1], [], []>} : vector<56x32xbf16>, vector<32x64xbf16>, vector<56x64xf32> -> vector<56x64xf32>
    %c0_7 = arith.constant 0 : index
    %c0_8 = arith.constant 0 : index
    %c1 = arith.constant 1 : index
    %c0_9 = arith.constant 0 : index
    %c0_10 = arith.constant 0 : index
    %5 = vector.load %arg1[%c0_7, %c0_8, %c1, %c0_9, %c0_10] : memref<1x2x2x72x32xbf16, #tpu.memory_space<vmem>>, vector<1x1x1x56x32xbf16>
    %6 = vector.shape_cast %5 : vector<1x1x1x56x32xbf16> to vector<56x32xbf16>
    %c1_11 = arith.constant 1 : index
    %c0_12 = arith.constant 0 : index
    %c0_13 = arith.constant 0 : index
    %7 = vector.load %arg2[%c1_11, %c0_12, %c0_13] : memref<9x32x64xbf16, #tpu.memory_space<vmem>>, vector<1x32x64xbf16>
    %8 = vector.shape_cast %7 : vector<1x32x64xbf16> to vector<32x64xbf16>
    %cst_14 = arith.constant dense<0.000000e+00> : vector<56x64xf32>
    %9 = tpu.matmul %6, %8, %cst_14 {dimension_numbers = #tpu.dot_dimension_numbers<[1], [0], [0], [1], [0, 0, 1, 1], [], []>} : vector<56x32xbf16>, vector<32x64xbf16>, vector<56x64xf32> -> vector<56x64xf32>
    %10 = arith.addf %4, %9 : vector<56x64xf32>
    %c0_15 = arith.constant 0 : index
    %c0_16 = arith.constant 0 : index
    %c0_17 = arith.constant 0 : index
    %c1_18 = arith.constant 1 : index
    %c0_19 = arith.constant 0 : index
    %11 = vector.load %arg1[%c0_15, %c0_16, %c0_17, %c1_18, %c0_19] : memref<1x2x2x72x32xbf16, #tpu.memory_space<vmem>>, vector<1x1x1x56x32xbf16>
    %12 = vector.shape_cast %11 : vector<1x1x1x56x32xbf16> to vector<56x32xbf16>
    %c2 = arith.constant 2 : index
    %c0_20 = arith.constant 0 : index
    %c0_21 = arith.constant 0 : index
    %13 = vector.load %arg2[%c2, %c0_20, %c0_21] : memref<9x32x64xbf16, #tpu.memory_space<vmem>>, vector<1x32x64xbf16>
    %14 = vector.shape_cast %13 : vector<1x32x64xbf16> to vector<32x64xbf16>
    %cst_22 = arith.constant dense<0.000000e+00> : vector<56x64xf32>
    %15 = tpu.matmul %12, %14, %cst_22 {dimension_numbers = #tpu.dot_dimension_numbers<[1], [0], [0], [1], [0, 0, 1, 1], [], []>} : vector<56x32xbf16>, vector<32x64xbf16>, vector<56x64xf32> -> vector<56x64xf32>
    %16 = arith.addf %10, %15 : vector<56x64xf32>
    %c0_23 = arith.constant 0 : index
    %c1_24 = arith.constant 1 : index
    %c0_25 = arith.constant 0 : index
    %c0_26 = arith.constant 0 : index
    %c0_27 = arith.constant 0 : index
    %17 = vector.load %arg1[%c0_23, %c1_24, %c0_25, %c0_26, %c0_27] : memref<1x2x2x72x32xbf16, #tpu.memory_space<vmem>>, vector<1x1x1x56x32xbf16>
    %18 = vector.shape_cast %17 : vector<1x1x1x56x32xbf16> to vector<56x32xbf16>
    %c3 = arith.constant 3 : index
    %c0_28 = arith.constant 0 : index
    %c0_29 = arith.constant 0 : index
    %19 = vector.load %arg2[%c3, %c0_28, %c0_29] : memref<9x32x64xbf16, #tpu.memory_space<vmem>>, vector<1x32x64xbf16>
    %20 = vector.shape_cast %19 : vector<1x32x64xbf16> to vector<32x64xbf16>
    %cst_30 = arith.constant dense<0.000000e+00> : vector<56x64xf32>
    %21 = tpu.matmul %18, %20, %cst_30 {dimension_numbers = #tpu.dot_dimension_numbers<[1], [0], [0], [1], [0, 0, 1, 1], [], []>} : vector<56x32xbf16>, vector<32x64xbf16>, vector<56x64xf32> -> vector<56x64xf32>
    %22 = arith.addf %16, %21 : vector<56x64xf32>
    %c0_31 = arith.constant 0 : index
    %c1_32 = arith.constant 1 : index
    %c1_33 = arith.constant 1 : index
    %c0_34 = arith.constant 0 : index
    %c0_35 = arith.constant 0 : index
    %23 = vector.load %arg1[%c0_31, %c1_32, %c1_33, %c0_34, %c0_35] : memref<1x2x2x72x32xbf16, #tpu.memory_space<vmem>>, vector<1x1x1x56x32xbf16>
    %24 = vector.shape_cast %23 : vector<1x1x1x56x32xbf16> to vector<56x32xbf16>
    %c4 = arith.constant 4 : index
    %c0_36 = arith.constant 0 : index
    %c0_37 = arith.constant 0 : index
    %25 = vector.load %arg2[%c4, %c0_36, %c0_37] : memref<9x32x64xbf16, #tpu.memory_space<vmem>>, vector<1x32x64xbf16>
    %26 = vector.shape_cast %25 : vector<1x32x64xbf16> to vector<32x64xbf16>
    %cst_38 = arith.constant dense<0.000000e+00> : vector<56x64xf32>
    %27 = tpu.matmul %24, %26, %cst_38 {dimension_numbers = #tpu.dot_dimension_numbers<[1], [0], [0], [1], [0, 0, 1, 1], [], []>} : vector<56x32xbf16>, vector<32x64xbf16>, vector<56x64xf32> -> vector<56x64xf32>
    %28 = arith.addf %22, %27 : vector<56x64xf32>
    %c0_39 = arith.constant 0 : index
    %c1_40 = arith.constant 1 : index
    %c0_41 = arith.constant 0 : index
    %c1_42 = arith.constant 1 : index
    %c0_43 = arith.constant 0 : index
    %29 = vector.load %arg1[%c0_39, %c1_40, %c0_41, %c1_42, %c0_43] : memref<1x2x2x72x32xbf16, #tpu.memory_space<vmem>>, vector<1x1x1x56x32xbf16>
    %30 = vector.shape_cast %29 : vector<1x1x1x56x32xbf16> to vector<56x32xbf16>
    %c5 = arith.constant 5 : index
    %c0_44 = arith.constant 0 : index
    %c0_45 = arith.constant 0 : index
    %31 = vector.load %arg2[%c5, %c0_44, %c0_45] : memref<9x32x64xbf16, #tpu.memory_space<vmem>>, vector<1x32x64xbf16>
    %32 = vector.shape_cast %31 : vector<1x32x64xbf16> to vector<32x64xbf16>
    %cst_46 = arith.constant dense<0.000000e+00> : vector<56x64xf32>
    %33 = tpu.matmul %30, %32, %cst_46 {dimension_numbers = #tpu.dot_dimension_numbers<[1], [0], [0], [1], [0, 0, 1, 1], [], []>} : vector<56x32xbf16>, vector<32x64xbf16>, vector<56x64xf32> -> vector<56x64xf32>
    %34 = arith.addf %28, %33 : vector<56x64xf32>
    %c0_47 = arith.constant 0 : index
    %c0_48 = arith.constant 0 : index
    %c0_49 = arith.constant 0 : index
    %c8 = arith.constant 8 : index
    %c0_50 = arith.constant 0 : index
    %35 = vector.load %arg1[%c0_47, %c0_48, %c0_49, %c8, %c0_50] : memref<1x2x2x72x32xbf16, #tpu.memory_space<vmem>>, vector<1x1x1x56x32xbf16>
    %36 = vector.shape_cast %35 : vector<1x1x1x56x32xbf16> to vector<56x32xbf16>
    %c6 = arith.constant 6 : index
    %c0_51 = arith.constant 0 : index
    %c0_52 = arith.constant 0 : index
    %37 = vector.load %arg2[%c6, %c0_51, %c0_52] : memref<9x32x64xbf16, #tpu.memory_space<vmem>>, vector<1x32x64xbf16>
    %38 = vector.shape_cast %37 : vector<1x32x64xbf16> to vector<32x64xbf16>
    %cst_53 = arith.constant dense<0.000000e+00> : vector<56x64xf32>
    %39 = tpu.matmul %36, %38, %cst_53 {dimension_numbers = #tpu.dot_dimension_numbers<[1], [0], [0], [1], [0, 0, 1, 1], [], []>} : vector<56x32xbf16>, vector<32x64xbf16>, vector<56x64xf32> -> vector<56x64xf32>
    %40 = arith.addf %34, %39 : vector<56x64xf32>
    %c0_54 = arith.constant 0 : index
    %c0_55 = arith.constant 0 : index
    %c1_56 = arith.constant 1 : index
    %c8_57 = arith.constant 8 : index
    %c0_58 = arith.constant 0 : index
    %41 = vector.load %arg1[%c0_54, %c0_55, %c1_56, %c8_57, %c0_58] : memref<1x2x2x72x32xbf16, #tpu.memory_space<vmem>>, vector<1x1x1x56x32xbf16>
    %42 = vector.shape_cast %41 : vector<1x1x1x56x32xbf16> to vector<56x32xbf16>
    %c7 = arith.constant 7 : index
    %c0_59 = arith.constant 0 : index
    %c0_60 = arith.constant 0 : index
    %43 = vector.load %arg2[%c7, %c0_59, %c0_60] : memref<9x32x64xbf16, #tpu.memory_space<vmem>>, vector<1x32x64xbf16>
    %44 = vector.shape_cast %43 : vector<1x32x64xbf16> to vector<32x64xbf16>
    %cst_61 = arith.constant dense<0.000000e+00> : vector<56x64xf32>
    %45 = tpu.matmul %42, %44, %cst_61 {dimension_numbers = #tpu.dot_dimension_numbers<[1], [0], [0], [1], [0, 0, 1, 1], [], []>} : vector<56x32xbf16>, vector<32x64xbf16>, vector<56x64xf32> -> vector<56x64xf32>
    %46 = arith.addf %40, %45 : vector<56x64xf32>
    %c0_62 = arith.constant 0 : index
    %c0_63 = arith.constant 0 : index
    %c0_64 = arith.constant 0 : index
    %c9 = arith.constant 9 : index
    %c0_65 = arith.constant 0 : index
    %47 = vector.load %arg1[%c0_62, %c0_63, %c0_64, %c9, %c0_65] : memref<1x2x2x72x32xbf16, #tpu.memory_space<vmem>>, vector<1x1x1x56x32xbf16>
    %48 = vector.shape_cast %47 : vector<1x1x1x56x32xbf16> to vector<56x32xbf16>
    %c8_66 = arith.constant 8 : index
    %c0_67 = arith.constant 0 : index
    %c0_68 = arith.constant 0 : index
    %49 = vector.load %arg2[%c8_66, %c0_67, %c0_68] : memref<9x32x64xbf16, #tpu.memory_space<vmem>>, vector<1x32x64xbf16>
    %50 = vector.shape_cast %49 : vector<1x32x64xbf16> to vector<32x64xbf16>
    %cst_69 = arith.constant dense<0.000000e+00> : vector<56x64xf32>
    %51 = tpu.matmul %48, %50, %cst_69 {dimension_numbers = #tpu.dot_dimension_numbers<[1], [0], [0], [1], [0, 0, 1, 1], [], []>} : vector<56x32xbf16>, vector<32x64xbf16>, vector<56x64xf32> -> vector<56x64xf32>
    %52 = arith.addf %46, %51 : vector<56x64xf32>
    %c0_70 = arith.constant 0 : index
    %c0_71 = arith.constant 0 : index
    %c1_72 = arith.constant 1 : index
    %c0_73 = arith.constant 0 : index
    %c0_74 = arith.constant 0 : index
    %53 = vector.load %arg1[%c0_70, %c0_71, %c1_72, %c0_73, %c0_74] : memref<1x2x2x72x32xbf16, #tpu.memory_space<vmem>>, vector<1x1x1x56x32xbf16>
    %54 = vector.shape_cast %53 : vector<1x1x1x56x32xbf16> to vector<56x32xbf16>
    %c0_75 = arith.constant 0 : index
    %c0_76 = arith.constant 0 : index
    %c0_77 = arith.constant 0 : index
    %55 = vector.load %arg2[%c0_75, %c0_76, %c0_77] : memref<9x32x64xbf16, #tpu.memory_space<vmem>>, vector<1x32x64xbf16>
    %56 = vector.shape_cast %55 : vector<1x32x64xbf16> to vector<32x64xbf16>
    %cst_78 = arith.constant dense<0.000000e+00> : vector<56x64xf32>
    %57 = tpu.matmul %54, %56, %cst_78 {dimension_numbers = #tpu.dot_dimension_numbers<[1], [0], [0], [1], [0, 0, 1, 1], [], []>} : vector<56x32xbf16>, vector<32x64xbf16>, vector<56x64xf32> -> vector<56x64xf32>
    %c0_79 = arith.constant 0 : index
    %c0_80 = arith.constant 0 : index
    %c0_81 = arith.constant 0 : index
    %c1_82 = arith.constant 1 : index
    %c0_83 = arith.constant 0 : index
    %58 = vector.load %arg1[%c0_79, %c0_80, %c0_81, %c1_82, %c0_83] : memref<1x2x2x72x32xbf16, #tpu.memory_space<vmem>>, vector<1x1x1x56x32xbf16>
    %59 = vector.shape_cast %58 : vector<1x1x1x56x32xbf16> to vector<56x32xbf16>
    %c1_84 = arith.constant 1 : index
    %c0_85 = arith.constant 0 : index
    %c0_86 = arith.constant 0 : index
    %60 = vector.load %arg2[%c1_84, %c0_85, %c0_86] : memref<9x32x64xbf16, #tpu.memory_space<vmem>>, vector<1x32x64xbf16>
    %61 = vector.shape_cast %60 : vector<1x32x64xbf16> to vector<32x64xbf16>
    %cst_87 = arith.constant dense<0.000000e+00> : vector<56x64xf32>
    %62 = tpu.matmul %59, %61, %cst_87 {dimension_numbers = #tpu.dot_dimension_numbers<[1], [0], [0], [1], [0, 0, 1, 1], [], []>} : vector<56x32xbf16>, vector<32x64xbf16>, vector<56x64xf32> -> vector<56x64xf32>
    %63 = arith.addf %57, %62 : vector<56x64xf32>
    %c0_88 = arith.constant 0 : index
    %c0_89 = arith.constant 0 : index
    %c1_90 = arith.constant 1 : index
    %c1_91 = arith.constant 1 : index
    %c0_92 = arith.constant 0 : index
    %64 = vector.load %arg1[%c0_88, %c0_89, %c1_90, %c1_91, %c0_92] : memref<1x2x2x72x32xbf16, #tpu.memory_space<vmem>>, vector<1x1x1x56x32xbf16>
    %65 = vector.shape_cast %64 : vector<1x1x1x56x32xbf16> to vector<56x32xbf16>
    %c2_93 = arith.constant 2 : index
    %c0_94 = arith.constant 0 : index
    %c0_95 = arith.constant 0 : index
    %66 = vector.load %arg2[%c2_93, %c0_94, %c0_95] : memref<9x32x64xbf16, #tpu.memory_space<vmem>>, vector<1x32x64xbf16>
    %67 = vector.shape_cast %66 : vector<1x32x64xbf16> to vector<32x64xbf16>
    %cst_96 = arith.constant dense<0.000000e+00> : vector<56x64xf32>
    %68 = tpu.matmul %65, %67, %cst_96 {dimension_numbers = #tpu.dot_dimension_numbers<[1], [0], [0], [1], [0, 0, 1, 1], [], []>} : vector<56x32xbf16>, vector<32x64xbf16>, vector<56x64xf32> -> vector<56x64xf32>
    %69 = arith.addf %63, %68 : vector<56x64xf32>
    %c0_97 = arith.constant 0 : index
    %c1_98 = arith.constant 1 : index
    %c1_99 = arith.constant 1 : index
    %c0_100 = arith.constant 0 : index
    %c0_101 = arith.constant 0 : index
    %70 = vector.load %arg1[%c0_97, %c1_98, %c1_99, %c0_100, %c0_101] : memref<1x2x2x72x32xbf16, #tpu.memory_space<vmem>>, vector<1x1x1x56x32xbf16>
    %71 = vector.shape_cast %70 : vector<1x1x1x56x32xbf16> to vector<56x32xbf16>
    %c3_102 = arith.constant 3 : index
    %c0_103 = arith.constant 0 : index
    %c0_104 = arith.constant 0 : index
    %72 = vector.load %arg2[%c3_102, %c0_103, %c0_104] : memref<9x32x64xbf16, #tpu.memory_space<vmem>>, vector<1x32x64xbf16>
    %73 = vector.shape_cast %72 : vector<1x32x64xbf16> to vector<32x64xbf16>
    %cst_105 = arith.constant dense<0.000000e+00> : vector<56x64xf32>
    %74 = tpu.matmul %71, %73, %cst_105 {dimension_numbers = #tpu.dot_dimension_numbers<[1], [0], [0], [1], [0, 0, 1, 1], [], []>} : vector<56x32xbf16>, vector<32x64xbf16>, vector<56x64xf32> -> vector<56x64xf32>
    %75 = arith.addf %69, %74 : vector<56x64xf32>
    %c0_106 = arith.constant 0 : index
    %c1_107 = arith.constant 1 : index
    %c0_108 = arith.constant 0 : index
    %c1_109 = arith.constant 1 : index
    %c0_110 = arith.constant 0 : index
    %76 = vector.load %arg1[%c0_106, %c1_107, %c0_108, %c1_109, %c0_110] : memref<1x2x2x72x32xbf16, #tpu.memory_space<vmem>>, vector<1x1x1x56x32xbf16>
    %77 = vector.shape_cast %76 : vector<1x1x1x56x32xbf16> to vector<56x32xbf16>
    %c4_111 = arith.constant 4 : index
    %c0_112 = arith.constant 0 : index
    %c0_113 = arith.constant 0 : index
    %78 = vector.load %arg2[%c4_111, %c0_112, %c0_113] : memref<9x32x64xbf16, #tpu.memory_space<vmem>>, vector<1x32x64xbf16>
    %79 = vector.shape_cast %78 : vector<1x32x64xbf16> to vector<32x64xbf16>
    %cst_114 = arith.constant dense<0.000000e+00> : vector<56x64xf32>
    %80 = tpu.matmul %77, %79, %cst_114 {dimension_numbers = #tpu.dot_dimension_numbers<[1], [0], [0], [1], [0, 0, 1, 1], [], []>} : vector<56x32xbf16>, vector<32x64xbf16>, vector<56x64xf32> -> vector<56x64xf32>
    %81 = arith.addf %75, %80 : vector<56x64xf32>
    %c0_115 = arith.constant 0 : index
    %c1_116 = arith.constant 1 : index
    %c1_117 = arith.constant 1 : index
    %c1_118 = arith.constant 1 : index
    %c0_119 = arith.constant 0 : index
    %82 = vector.load %arg1[%c0_115, %c1_116, %c1_117, %c1_118, %c0_119] : memref<1x2x2x72x32xbf16, #tpu.memory_space<vmem>>, vector<1x1x1x56x32xbf16>
    %83 = vector.shape_cast %82 : vector<1x1x1x56x32xbf16> to vector<56x32xbf16>
    %c5_120 = arith.constant 5 : index
    %c0_121 = arith.constant 0 : index
    %c0_122 = arith.constant 0 : index
    %84 = vector.load %arg2[%c5_120, %c0_121, %c0_122] : memref<9x32x64xbf16, #tpu.memory_space<vmem>>, vector<1x32x64xbf16>
    %85 = vector.shape_cast %84 : vector<1x32x64xbf16> to vector<32x64xbf16>
    %cst_123 = arith.constant dense<0.000000e+00> : vector<56x64xf32>
    %86 = tpu.matmul %83, %85, %cst_123 {dimension_numbers = #tpu.dot_dimension_numbers<[1], [0], [0], [1], [0, 0, 1, 1], [], []>} : vector<56x32xbf16>, vector<32x64xbf16>, vector<56x64xf32> -> vector<56x64xf32>
    %87 = arith.addf %81, %86 : vector<56x64xf32>
    %c0_124 = arith.constant 0 : index
    %c0_125 = arith.constant 0 : index
    %c1_126 = arith.constant 1 : index
    %c8_127 = arith.constant 8 : index
    %c0_128 = arith.constant 0 : index
    %88 = vector.load %arg1[%c0_124, %c0_125, %c1_126, %c8_127, %c0_128] : memref<1x2x2x72x32xbf16, #tpu.memory_space<vmem>>, vector<1x1x1x56x32xbf16>
    %89 = vector.shape_cast %88 : vector<1x1x1x56x32xbf16> to vector<56x32xbf16>
    %c6_129 = arith.constant 6 : index
    %c0_130 = arith.constant 0 : index
    %c0_131 = arith.constant 0 : index
    %90 = vector.load %arg2[%c6_129, %c0_130, %c0_131] : memref<9x32x64xbf16, #tpu.memory_space<vmem>>, vector<1x32x64xbf16>
    %91 = vector.shape_cast %90 : vector<1x32x64xbf16> to vector<32x64xbf16>
    %cst_132 = arith.constant dense<0.000000e+00> : vector<56x64xf32>
    %92 = tpu.matmul %89, %91, %cst_132 {dimension_numbers = #tpu.dot_dimension_numbers<[1], [0], [0], [1], [0, 0, 1, 1], [], []>} : vector<56x32xbf16>, vector<32x64xbf16>, vector<56x64xf32> -> vector<56x64xf32>
    %93 = arith.addf %87, %92 : vector<56x64xf32>
    %c0_133 = arith.constant 0 : index
    %c0_134 = arith.constant 0 : index
    %c0_135 = arith.constant 0 : index
    %c9_136 = arith.constant 9 : index
    %c0_137 = arith.constant 0 : index
    %94 = vector.load %arg1[%c0_133, %c0_134, %c0_135, %c9_136, %c0_137] : memref<1x2x2x72x32xbf16, #tpu.memory_space<vmem>>, vector<1x1x1x56x32xbf16>
    %95 = vector.shape_cast %94 : vector<1x1x1x56x32xbf16> to vector<56x32xbf16>
    %c7_138 = arith.constant 7 : index
    %c0_139 = arith.constant 0 : index
    %c0_140 = arith.constant 0 : index
    %96 = vector.load %arg2[%c7_138, %c0_139, %c0_140] : memref<9x32x64xbf16, #tpu.memory_space<vmem>>, vector<1x32x64xbf16>
    %97 = vector.shape_cast %96 : vector<1x32x64xbf16> to vector<32x64xbf16>
    %cst_141 = arith.constant dense<0.000000e+00> : vector<56x64xf32>
    %98 = tpu.matmul %95, %97, %cst_141 {dimension_numbers = #tpu.dot_dimension_numbers<[1], [0], [0], [1], [0, 0, 1, 1], [], []>} : vector<56x32xbf16>, vector<32x64xbf16>, vector<56x64xf32> -> vector<56x64xf32>
    %99 = arith.addf %93, %98 : vector<56x64xf32>
    %c0_142 = arith.constant 0 : index
    %c0_143 = arith.constant 0 : index
    %c1_144 = arith.constant 1 : index
    %c9_145 = arith.constant 9 : index
    %c0_146 = arith.constant 0 : index
    %100 = vector.load %arg1[%c0_142, %c0_143, %c1_144, %c9_145, %c0_146] : memref<1x2x2x72x32xbf16, #tpu.memory_space<vmem>>, vector<1x1x1x56x32xbf16>
    %101 = vector.shape_cast %100 : vector<1x1x1x56x32xbf16> to vector<56x32xbf16>
    %c8_147 = arith.constant 8 : index
    %c0_148 = arith.constant 0 : index
    %c0_149 = arith.constant 0 : index
    %102 = vector.load %arg2[%c8_147, %c0_148, %c0_149] : memref<9x32x64xbf16, #tpu.memory_space<vmem>>, vector<1x32x64xbf16>
    %103 = vector.shape_cast %102 : vector<1x32x64xbf16> to vector<32x64xbf16>
    %cst_150 = arith.constant dense<0.000000e+00> : vector<56x64xf32>
    %104 = tpu.matmul %101, %103, %cst_150 {dimension_numbers = #tpu.dot_dimension_numbers<[1], [0], [0], [1], [0, 0, 1, 1], [], []>} : vector<56x32xbf16>, vector<32x64xbf16>, vector<56x64xf32> -> vector<56x64xf32>
    %105 = arith.addf %99, %104 : vector<56x64xf32>
    %106 = arith.maximumf %52, %105 : vector<56x64xf32>
    %c0_151 = arith.constant 0 : index
    %c1_152 = arith.constant 1 : index
    %c0_153 = arith.constant 0 : index
    %c0_154 = arith.constant 0 : index
    %c0_155 = arith.constant 0 : index
    %107 = vector.load %arg1[%c0_151, %c1_152, %c0_153, %c0_154, %c0_155] : memref<1x2x2x72x32xbf16, #tpu.memory_space<vmem>>, vector<1x1x1x56x32xbf16>
    %108 = vector.shape_cast %107 : vector<1x1x1x56x32xbf16> to vector<56x32xbf16>
    %c0_156 = arith.constant 0 : index
    %c0_157 = arith.constant 0 : index
    %c0_158 = arith.constant 0 : index
    %109 = vector.load %arg2[%c0_156, %c0_157, %c0_158] : memref<9x32x64xbf16, #tpu.memory_space<vmem>>, vector<1x32x64xbf16>
    %110 = vector.shape_cast %109 : vector<1x32x64xbf16> to vector<32x64xbf16>
    %cst_159 = arith.constant dense<0.000000e+00> : vector<56x64xf32>
    %111 = tpu.matmul %108, %110, %cst_159 {dimension_numbers = #tpu.dot_dimension_numbers<[1], [0], [0], [1], [0, 0, 1, 1], [], []>} : vector<56x32xbf16>, vector<32x64xbf16>, vector<56x64xf32> -> vector<56x64xf32>
    %c0_160 = arith.constant 0 : index
    %c1_161 = arith.constant 1 : index
    %c1_162 = arith.constant 1 : index
    %c0_163 = arith.constant 0 : index
    %c0_164 = arith.constant 0 : index
    %112 = vector.load %arg1[%c0_160, %c1_161, %c1_162, %c0_163, %c0_164] : memref<1x2x2x72x32xbf16, #tpu.memory_space<vmem>>, vector<1x1x1x56x32xbf16>
    %113 = vector.shape_cast %112 : vector<1x1x1x56x32xbf16> to vector<56x32xbf16>
    %c1_165 = arith.constant 1 : index
    %c0_166 = arith.constant 0 : index
    %c0_167 = arith.constant 0 : index
    %114 = vector.load %arg2[%c1_165, %c0_166, %c0_167] : memref<9x32x64xbf16, #tpu.memory_space<vmem>>, vector<1x32x64xbf16>
    %115 = vector.shape_cast %114 : vector<1x32x64xbf16> to vector<32x64xbf16>
    %cst_168 = arith.constant dense<0.000000e+00> : vector<56x64xf32>
    %116 = tpu.matmul %113, %115, %cst_168 {dimension_numbers = #tpu.dot_dimension_numbers<[1], [0], [0], [1], [0, 0, 1, 1], [], []>} : vector<56x32xbf16>, vector<32x64xbf16>, vector<56x64xf32> -> vector<56x64xf32>
    %117 = arith.addf %111, %116 : vector<56x64xf32>
    %c0_169 = arith.constant 0 : index
    %c1_170 = arith.constant 1 : index
    %c0_171 = arith.constant 0 : index
    %c1_172 = arith.constant 1 : index
    %c0_173 = arith.constant 0 : index
    %118 = vector.load %arg1[%c0_169, %c1_170, %c0_171, %c1_172, %c0_173] : memref<1x2x2x72x32xbf16, #tpu.memory_space<vmem>>, vector<1x1x1x56x32xbf16>
    %119 = vector.shape_cast %118 : vector<1x1x1x56x32xbf16> to vector<56x32xbf16>
    %c2_174 = arith.constant 2 : index
    %c0_175 = arith.constant 0 : index
    %c0_176 = arith.constant 0 : index
    %120 = vector.load %arg2[%c2_174, %c0_175, %c0_176] : memref<9x32x64xbf16, #tpu.memory_space<vmem>>, vector<1x32x64xbf16>
    %121 = vector.shape_cast %120 : vector<1x32x64xbf16> to vector<32x64xbf16>
    %cst_177 = arith.constant dense<0.000000e+00> : vector<56x64xf32>
    %122 = tpu.matmul %119, %121, %cst_177 {dimension_numbers = #tpu.dot_dimension_numbers<[1], [0], [0], [1], [0, 0, 1, 1], [], []>} : vector<56x32xbf16>, vector<32x64xbf16>, vector<56x64xf32> -> vector<56x64xf32>
    %123 = arith.addf %117, %122 : vector<56x64xf32>
    %c0_178 = arith.constant 0 : index
    %c0_179 = arith.constant 0 : index
    %c0_180 = arith.constant 0 : index
    %c8_181 = arith.constant 8 : index
    %c0_182 = arith.constant 0 : index
    %124 = vector.load %arg1[%c0_178, %c0_179, %c0_180, %c8_181, %c0_182] : memref<1x2x2x72x32xbf16, #tpu.memory_space<vmem>>, vector<1x1x1x56x32xbf16>
    %125 = vector.shape_cast %124 : vector<1x1x1x56x32xbf16> to vector<56x32xbf16>
    %c3_183 = arith.constant 3 : index
    %c0_184 = arith.constant 0 : index
    %c0_185 = arith.constant 0 : index
    %126 = vector.load %arg2[%c3_183, %c0_184, %c0_185] : memref<9x32x64xbf16, #tpu.memory_space<vmem>>, vector<1x32x64xbf16>
    %127 = vector.shape_cast %126 : vector<1x32x64xbf16> to vector<32x64xbf16>
    %cst_186 = arith.constant dense<0.000000e+00> : vector<56x64xf32>
    %128 = tpu.matmul %125, %127, %cst_186 {dimension_numbers = #tpu.dot_dimension_numbers<[1], [0], [0], [1], [0, 0, 1, 1], [], []>} : vector<56x32xbf16>, vector<32x64xbf16>, vector<56x64xf32> -> vector<56x64xf32>
    %129 = arith.addf %123, %128 : vector<56x64xf32>
    %c0_187 = arith.constant 0 : index
    %c0_188 = arith.constant 0 : index
    %c1_189 = arith.constant 1 : index
    %c8_190 = arith.constant 8 : index
    %c0_191 = arith.constant 0 : index
    %130 = vector.load %arg1[%c0_187, %c0_188, %c1_189, %c8_190, %c0_191] : memref<1x2x2x72x32xbf16, #tpu.memory_space<vmem>>, vector<1x1x1x56x32xbf16>
    %131 = vector.shape_cast %130 : vector<1x1x1x56x32xbf16> to vector<56x32xbf16>
    %c4_192 = arith.constant 4 : index
    %c0_193 = arith.constant 0 : index
    %c0_194 = arith.constant 0 : index
    %132 = vector.load %arg2[%c4_192, %c0_193, %c0_194] : memref<9x32x64xbf16, #tpu.memory_space<vmem>>, vector<1x32x64xbf16>
    %133 = vector.shape_cast %132 : vector<1x32x64xbf16> to vector<32x64xbf16>
    %cst_195 = arith.constant dense<0.000000e+00> : vector<56x64xf32>
    %134 = tpu.matmul %131, %133, %cst_195 {dimension_numbers = #tpu.dot_dimension_numbers<[1], [0], [0], [1], [0, 0, 1, 1], [], []>} : vector<56x32xbf16>, vector<32x64xbf16>, vector<56x64xf32> -> vector<56x64xf32>
    %135 = arith.addf %129, %134 : vector<56x64xf32>
    %c0_196 = arith.constant 0 : index
    %c0_197 = arith.constant 0 : index
    %c0_198 = arith.constant 0 : index
    %c9_199 = arith.constant 9 : index
    %c0_200 = arith.constant 0 : index
    %136 = vector.load %arg1[%c0_196, %c0_197, %c0_198, %c9_199, %c0_200] : memref<1x2x2x72x32xbf16, #tpu.memory_space<vmem>>, vector<1x1x1x56x32xbf16>
    %137 = vector.shape_cast %136 : vector<1x1x1x56x32xbf16> to vector<56x32xbf16>
    %c5_201 = arith.constant 5 : index
    %c0_202 = arith.constant 0 : index
    %c0_203 = arith.constant 0 : index
    %138 = vector.load %arg2[%c5_201, %c0_202, %c0_203] : memref<9x32x64xbf16, #tpu.memory_space<vmem>>, vector<1x32x64xbf16>
    %139 = vector.shape_cast %138 : vector<1x32x64xbf16> to vector<32x64xbf16>
    %cst_204 = arith.constant dense<0.000000e+00> : vector<56x64xf32>
    %140 = tpu.matmul %137, %139, %cst_204 {dimension_numbers = #tpu.dot_dimension_numbers<[1], [0], [0], [1], [0, 0, 1, 1], [], []>} : vector<56x32xbf16>, vector<32x64xbf16>, vector<56x64xf32> -> vector<56x64xf32>
    %141 = arith.addf %135, %140 : vector<56x64xf32>
    %c0_205 = arith.constant 0 : index
    %c1_206 = arith.constant 1 : index
    %c0_207 = arith.constant 0 : index
    %c8_208 = arith.constant 8 : index
    %c0_209 = arith.constant 0 : index
    %142 = vector.load %arg1[%c0_205, %c1_206, %c0_207, %c8_208, %c0_209] : memref<1x2x2x72x32xbf16, #tpu.memory_space<vmem>>, vector<1x1x1x56x32xbf16>
    %143 = vector.shape_cast %142 : vector<1x1x1x56x32xbf16> to vector<56x32xbf16>
    %c6_210 = arith.constant 6 : index
    %c0_211 = arith.constant 0 : index
    %c0_212 = arith.constant 0 : index
    %144 = vector.load %arg2[%c6_210, %c0_211, %c0_212] : memref<9x32x64xbf16, #tpu.memory_space<vmem>>, vector<1x32x64xbf16>
    %145 = vector.shape_cast %144 : vector<1x32x64xbf16> to vector<32x64xbf16>
    %cst_213 = arith.constant dense<0.000000e+00> : vector<56x64xf32>
    %146 = tpu.matmul %143, %145, %cst_213 {dimension_numbers = #tpu.dot_dimension_numbers<[1], [0], [0], [1], [0, 0, 1, 1], [], []>} : vector<56x32xbf16>, vector<32x64xbf16>, vector<56x64xf32> -> vector<56x64xf32>
    %147 = arith.addf %141, %146 : vector<56x64xf32>
    %c0_214 = arith.constant 0 : index
    %c1_215 = arith.constant 1 : index
    %c1_216 = arith.constant 1 : index
    %c8_217 = arith.constant 8 : index
    %c0_218 = arith.constant 0 : index
    %148 = vector.load %arg1[%c0_214, %c1_215, %c1_216, %c8_217, %c0_218] : memref<1x2x2x72x32xbf16, #tpu.memory_space<vmem>>, vector<1x1x1x56x32xbf16>
    %149 = vector.shape_cast %148 : vector<1x1x1x56x32xbf16> to vector<56x32xbf16>
    %c7_219 = arith.constant 7 : index
    %c0_220 = arith.constant 0 : index
    %c0_221 = arith.constant 0 : index
    %150 = vector.load %arg2[%c7_219, %c0_220, %c0_221] : memref<9x32x64xbf16, #tpu.memory_space<vmem>>, vector<1x32x64xbf16>
    %151 = vector.shape_cast %150 : vector<1x32x64xbf16> to vector<32x64xbf16>
    %cst_222 = arith.constant dense<0.000000e+00> : vector<56x64xf32>
    %152 = tpu.matmul %149, %151, %cst_222 {dimension_numbers = #tpu.dot_dimension_numbers<[1], [0], [0], [1], [0, 0, 1, 1], [], []>} : vector<56x32xbf16>, vector<32x64xbf16>, vector<56x64xf32> -> vector<56x64xf32>
    %153 = arith.addf %147, %152 : vector<56x64xf32>
    %c0_223 = arith.constant 0 : index
    %c1_224 = arith.constant 1 : index
    %c0_225 = arith.constant 0 : index
    %c9_226 = arith.constant 9 : index
    %c0_227 = arith.constant 0 : index
    %154 = vector.load %arg1[%c0_223, %c1_224, %c0_225, %c9_226, %c0_227] : memref<1x2x2x72x32xbf16, #tpu.memory_space<vmem>>, vector<1x1x1x56x32xbf16>
    %155 = vector.shape_cast %154 : vector<1x1x1x56x32xbf16> to vector<56x32xbf16>
    %c8_228 = arith.constant 8 : index
    %c0_229 = arith.constant 0 : index
    %c0_230 = arith.constant 0 : index
    %156 = vector.load %arg2[%c8_228, %c0_229, %c0_230] : memref<9x32x64xbf16, #tpu.memory_space<vmem>>, vector<1x32x64xbf16>
    %157 = vector.shape_cast %156 : vector<1x32x64xbf16> to vector<32x64xbf16>
    %cst_231 = arith.constant dense<0.000000e+00> : vector<56x64xf32>
    %158 = tpu.matmul %155, %157, %cst_231 {dimension_numbers = #tpu.dot_dimension_numbers<[1], [0], [0], [1], [0, 0, 1, 1], [], []>} : vector<56x32xbf16>, vector<32x64xbf16>, vector<56x64xf32> -> vector<56x64xf32>
    %159 = arith.addf %153, %158 : vector<56x64xf32>
    %160 = arith.maximumf %106, %159 : vector<56x64xf32>
    %c0_232 = arith.constant 0 : index
    %c1_233 = arith.constant 1 : index
    %c1_234 = arith.constant 1 : index
    %c0_235 = arith.constant 0 : index
    %c0_236 = arith.constant 0 : index
    %161 = vector.load %arg1[%c0_232, %c1_233, %c1_234, %c0_235, %c0_236] : memref<1x2x2x72x32xbf16, #tpu.memory_space<vmem>>, vector<1x1x1x56x32xbf16>
    %162 = vector.shape_cast %161 : vector<1x1x1x56x32xbf16> to vector<56x32xbf16>
    %c0_237 = arith.constant 0 : index
    %c0_238 = arith.constant 0 : index
    %c0_239 = arith.constant 0 : index
    %163 = vector.load %arg2[%c0_237, %c0_238, %c0_239] : memref<9x32x64xbf16, #tpu.memory_space<vmem>>, vector<1x32x64xbf16>
    %164 = vector.shape_cast %163 : vector<1x32x64xbf16> to vector<32x64xbf16>
    %cst_240 = arith.constant dense<0.000000e+00> : vector<56x64xf32>
    %165 = tpu.matmul %162, %164, %cst_240 {dimension_numbers = #tpu.dot_dimension_numbers<[1], [0], [0], [1], [0, 0, 1, 1], [], []>} : vector<56x32xbf16>, vector<32x64xbf16>, vector<56x64xf32> -> vector<56x64xf32>
    %c0_241 = arith.constant 0 : index
    %c1_242 = arith.constant 1 : index
    %c0_243 = arith.constant 0 : index
    %c1_244 = arith.constant 1 : index
    %c0_245 = arith.constant 0 : index
    %166 = vector.load %arg1[%c0_241, %c1_242, %c0_243, %c1_244, %c0_245] : memref<1x2x2x72x32xbf16, #tpu.memory_space<vmem>>, vector<1x1x1x56x32xbf16>
    %167 = vector.shape_cast %166 : vector<1x1x1x56x32xbf16> to vector<56x32xbf16>
    %c1_246 = arith.constant 1 : index
    %c0_247 = arith.constant 0 : index
    %c0_248 = arith.constant 0 : index
    %168 = vector.load %arg2[%c1_246, %c0_247, %c0_248] : memref<9x32x64xbf16, #tpu.memory_space<vmem>>, vector<1x32x64xbf16>
    %169 = vector.shape_cast %168 : vector<1x32x64xbf16> to vector<32x64xbf16>
    %cst_249 = arith.constant dense<0.000000e+00> : vector<56x64xf32>
    %170 = tpu.matmul %167, %169, %cst_249 {dimension_numbers = #tpu.dot_dimension_numbers<[1], [0], [0], [1], [0, 0, 1, 1], [], []>} : vector<56x32xbf16>, vector<32x64xbf16>, vector<56x64xf32> -> vector<56x64xf32>
    %171 = arith.addf %165, %170 : vector<56x64xf32>
    %c0_250 = arith.constant 0 : index
    %c1_251 = arith.constant 1 : index
    %c1_252 = arith.constant 1 : index
    %c1_253 = arith.constant 1 : index
    %c0_254 = arith.constant 0 : index
    %172 = vector.load %arg1[%c0_250, %c1_251, %c1_252, %c1_253, %c0_254] : memref<1x2x2x72x32xbf16, #tpu.memory_space<vmem>>, vector<1x1x1x56x32xbf16>
    %173 = vector.shape_cast %172 : vector<1x1x1x56x32xbf16> to vector<56x32xbf16>
    %c2_255 = arith.constant 2 : index
    %c0_256 = arith.constant 0 : index
    %c0_257 = arith.constant 0 : index
    %174 = vector.load %arg2[%c2_255, %c0_256, %c0_257] : memref<9x32x64xbf16, #tpu.memory_space<vmem>>, vector<1x32x64xbf16>
    %175 = vector.shape_cast %174 : vector<1x32x64xbf16> to vector<32x64xbf16>
    %cst_258 = arith.constant dense<0.000000e+00> : vector<56x64xf32>
    %176 = tpu.matmul %173, %175, %cst_258 {dimension_numbers = #tpu.dot_dimension_numbers<[1], [0], [0], [1], [0, 0, 1, 1], [], []>} : vector<56x32xbf16>, vector<32x64xbf16>, vector<56x64xf32> -> vector<56x64xf32>
    %177 = arith.addf %171, %176 : vector<56x64xf32>
    %c0_259 = arith.constant 0 : index
    %c0_260 = arith.constant 0 : index
    %c1_261 = arith.constant 1 : index
    %c8_262 = arith.constant 8 : index
    %c0_263 = arith.constant 0 : index
    %178 = vector.load %arg1[%c0_259, %c0_260, %c1_261, %c8_262, %c0_263] : memref<1x2x2x72x32xbf16, #tpu.memory_space<vmem>>, vector<1x1x1x56x32xbf16>
    %179 = vector.shape_cast %178 : vector<1x1x1x56x32xbf16> to vector<56x32xbf16>
    %c3_264 = arith.constant 3 : index
    %c0_265 = arith.constant 0 : index
    %c0_266 = arith.constant 0 : index
    %180 = vector.load %arg2[%c3_264, %c0_265, %c0_266] : memref<9x32x64xbf16, #tpu.memory_space<vmem>>, vector<1x32x64xbf16>
    %181 = vector.shape_cast %180 : vector<1x32x64xbf16> to vector<32x64xbf16>
    %cst_267 = arith.constant dense<0.000000e+00> : vector<56x64xf32>
    %182 = tpu.matmul %179, %181, %cst_267 {dimension_numbers = #tpu.dot_dimension_numbers<[1], [0], [0], [1], [0, 0, 1, 1], [], []>} : vector<56x32xbf16>, vector<32x64xbf16>, vector<56x64xf32> -> vector<56x64xf32>
    %183 = arith.addf %177, %182 : vector<56x64xf32>
    %c0_268 = arith.constant 0 : index
    %c0_269 = arith.constant 0 : index
    %c0_270 = arith.constant 0 : index
    %c9_271 = arith.constant 9 : index
    %c0_272 = arith.constant 0 : index
    %184 = vector.load %arg1[%c0_268, %c0_269, %c0_270, %c9_271, %c0_272] : memref<1x2x2x72x32xbf16, #tpu.memory_space<vmem>>, vector<1x1x1x56x32xbf16>
    %185 = vector.shape_cast %184 : vector<1x1x1x56x32xbf16> to vector<56x32xbf16>
    %c4_273 = arith.constant 4 : index
    %c0_274 = arith.constant 0 : index
    %c0_275 = arith.constant 0 : index
    %186 = vector.load %arg2[%c4_273, %c0_274, %c0_275] : memref<9x32x64xbf16, #tpu.memory_space<vmem>>, vector<1x32x64xbf16>
    %187 = vector.shape_cast %186 : vector<1x32x64xbf16> to vector<32x64xbf16>
    %cst_276 = arith.constant dense<0.000000e+00> : vector<56x64xf32>
    %188 = tpu.matmul %185, %187, %cst_276 {dimension_numbers = #tpu.dot_dimension_numbers<[1], [0], [0], [1], [0, 0, 1, 1], [], []>} : vector<56x32xbf16>, vector<32x64xbf16>, vector<56x64xf32> -> vector<56x64xf32>
    %189 = arith.addf %183, %188 : vector<56x64xf32>
    %c0_277 = arith.constant 0 : index
    %c0_278 = arith.constant 0 : index
    %c1_279 = arith.constant 1 : index
    %c9_280 = arith.constant 9 : index
    %c0_281 = arith.constant 0 : index
    %190 = vector.load %arg1[%c0_277, %c0_278, %c1_279, %c9_280, %c0_281] : memref<1x2x2x72x32xbf16, #tpu.memory_space<vmem>>, vector<1x1x1x56x32xbf16>
    %191 = vector.shape_cast %190 : vector<1x1x1x56x32xbf16> to vector<56x32xbf16>
    %c5_282 = arith.constant 5 : index
    %c0_283 = arith.constant 0 : index
    %c0_284 = arith.constant 0 : index
    %192 = vector.load %arg2[%c5_282, %c0_283, %c0_284] : memref<9x32x64xbf16, #tpu.memory_space<vmem>>, vector<1x32x64xbf16>
    %193 = vector.shape_cast %192 : vector<1x32x64xbf16> to vector<32x64xbf16>
    %cst_285 = arith.constant dense<0.000000e+00> : vector<56x64xf32>
    %194 = tpu.matmul %191, %193, %cst_285 {dimension_numbers = #tpu.dot_dimension_numbers<[1], [0], [0], [1], [0, 0, 1, 1], [], []>} : vector<56x32xbf16>, vector<32x64xbf16>, vector<56x64xf32> -> vector<56x64xf32>
    %195 = arith.addf %189, %194 : vector<56x64xf32>
    %c0_286 = arith.constant 0 : index
    %c1_287 = arith.constant 1 : index
    %c1_288 = arith.constant 1 : index
    %c8_289 = arith.constant 8 : index
    %c0_290 = arith.constant 0 : index
    %196 = vector.load %arg1[%c0_286, %c1_287, %c1_288, %c8_289, %c0_290] : memref<1x2x2x72x32xbf16, #tpu.memory_space<vmem>>, vector<1x1x1x56x32xbf16>
    %197 = vector.shape_cast %196 : vector<1x1x1x56x32xbf16> to vector<56x32xbf16>
    %c6_291 = arith.constant 6 : index
    %c0_292 = arith.constant 0 : index
    %c0_293 = arith.constant 0 : index
    %198 = vector.load %arg2[%c6_291, %c0_292, %c0_293] : memref<9x32x64xbf16, #tpu.memory_space<vmem>>, vector<1x32x64xbf16>
    %199 = vector.shape_cast %198 : vector<1x32x64xbf16> to vector<32x64xbf16>
    %cst_294 = arith.constant dense<0.000000e+00> : vector<56x64xf32>
    %200 = tpu.matmul %197, %199, %cst_294 {dimension_numbers = #tpu.dot_dimension_numbers<[1], [0], [0], [1], [0, 0, 1, 1], [], []>} : vector<56x32xbf16>, vector<32x64xbf16>, vector<56x64xf32> -> vector<56x64xf32>
    %201 = arith.addf %195, %200 : vector<56x64xf32>
    %c0_295 = arith.constant 0 : index
    %c1_296 = arith.constant 1 : index
    %c0_297 = arith.constant 0 : index
    %c9_298 = arith.constant 9 : index
    %c0_299 = arith.constant 0 : index
    %202 = vector.load %arg1[%c0_295, %c1_296, %c0_297, %c9_298, %c0_299] : memref<1x2x2x72x32xbf16, #tpu.memory_space<vmem>>, vector<1x1x1x56x32xbf16>
    %203 = vector.shape_cast %202 : vector<1x1x1x56x32xbf16> to vector<56x32xbf16>
    %c7_300 = arith.constant 7 : index
    %c0_301 = arith.constant 0 : index
    %c0_302 = arith.constant 0 : index
    %204 = vector.load %arg2[%c7_300, %c0_301, %c0_302] : memref<9x32x64xbf16, #tpu.memory_space<vmem>>, vector<1x32x64xbf16>
    %205 = vector.shape_cast %204 : vector<1x32x64xbf16> to vector<32x64xbf16>
    %cst_303 = arith.constant dense<0.000000e+00> : vector<56x64xf32>
    %206 = tpu.matmul %203, %205, %cst_303 {dimension_numbers = #tpu.dot_dimension_numbers<[1], [0], [0], [1], [0, 0, 1, 1], [], []>} : vector<56x32xbf16>, vector<32x64xbf16>, vector<56x64xf32> -> vector<56x64xf32>
    %207 = arith.addf %201, %206 : vector<56x64xf32>
    %c0_304 = arith.constant 0 : index
    %c1_305 = arith.constant 1 : index
    %c1_306 = arith.constant 1 : index
    %c9_307 = arith.constant 9 : index
    %c0_308 = arith.constant 0 : index
    %208 = vector.load %arg1[%c0_304, %c1_305, %c1_306, %c9_307, %c0_308] : memref<1x2x2x72x32xbf16, #tpu.memory_space<vmem>>, vector<1x1x1x56x32xbf16>
    %209 = vector.shape_cast %208 : vector<1x1x1x56x32xbf16> to vector<56x32xbf16>
    %c8_309 = arith.constant 8 : index
    %c0_310 = arith.constant 0 : index
    %c0_311 = arith.constant 0 : index
    %210 = vector.load %arg2[%c8_309, %c0_310, %c0_311] : memref<9x32x64xbf16, #tpu.memory_space<vmem>>, vector<1x32x64xbf16>
    %211 = vector.shape_cast %210 : vector<1x32x64xbf16> to vector<32x64xbf16>
    %cst_312 = arith.constant dense<0.000000e+00> : vector<56x64xf32>
    %212 = tpu.matmul %209, %211, %cst_312 {dimension_numbers = #tpu.dot_dimension_numbers<[1], [0], [0], [1], [0, 0, 1, 1], [], []>} : vector<56x32xbf16>, vector<32x64xbf16>, vector<56x64xf32> -> vector<56x64xf32>
    %213 = arith.addf %207, %212 : vector<56x64xf32>
    %214 = arith.maximumf %160, %213 : vector<56x64xf32>
    %c0_313 = arith.constant 0 : index
    %c0_314 = arith.constant 0 : index
    %215 = vector.load %arg3[%c0_313, %c0_314] : memref<1x64xf32, #tpu.memory_space<vmem>>, vector<1x64xf32>
    %216 = vector.broadcast %215 : vector<1x64xf32> to vector<56x64xf32>
    %217 = arith.addf %214, %216 : vector<56x64xf32>
    %cst_315 = arith.constant 0.000000e+00 : f32
    %218 = vector.broadcast %cst_315 : f32 to vector<56x64xf32>
    %219 = arith.maximumf %217, %218 : vector<56x64xf32>
    %220 = vector.shape_cast %219 : vector<56x64xf32> to vector<1x56x64xf32>
    %221 = arith.truncf %220 : vector<1x56x64xf32> to vector<1x56x64xbf16>
    %c0_316 = arith.constant 0 : index
    %c0_317 = arith.constant 0 : index
    %c0_318 = arith.constant 0 : index
    %222 = vector.load %arg4[%c0_316, %c0_317, %c0_318] : memref<1x56x64xbf16, #tpu.memory_space<vmem>>, vector<1x56x64xbf16>
    tpu.vector_store %arg4[%c0_316, %c0_317, %c0_318], %221 {strides = array<i32>} : memref<1x56x64xbf16, #tpu.memory_space<vmem>>, vector<1x56x64xbf16>,
    return
  }
  func.func @transform_0(%arg0: i32) -> (i32, i32, i32, i32, i32) {
    %c0_i32 = arith.constant 0 : i32
    %c0_i32_0 = arith.constant 0 : i32
    %c0_i32_1 = arith.constant 0 : i32
    %c0_i32_2 = arith.constant 0 : i32
    %c0_i32_3 = arith.constant 0 : i32
    return %arg0, %c0_i32, %c0_i32_0, %c0_i32_1, %c0_i32_2 : i32, i32, i32, i32, i32
  }
  func.func @transform_1(%arg0: i32) -> (i32, i32, i32) {
    %c0_i32 = arith.constant 0 : i32
    %c0_i32_0 = arith.constant 0 : i32
    %c0_i32_1 = arith.constant 0 : i32
    %c0_i32_2 = arith.constant 0 : i32
    return %c0_i32, %c0_i32_0, %c0_i32_1 : i32, i32, i32
  }
  func.func @transform_2(%arg0: i32) -> (i32, i32) {
    %c0_i32 = arith.constant 0 : i32
    %c0_i32_0 = arith.constant 0 : i32
    %c0_i32_1 = arith.constant 0 : i32
    return %c0_i32, %c0_i32_0 : i32, i32
  }
  func.func @transform_3(%arg0: i32) -> (i32, i32, i32) {
    %c0_i32 = arith.constant 0 : i32
    %c0_i32_0 = arith.constant 0 : i32
    %c0_i32_1 = arith.constant 0 : i32
    return %arg0, %c0_i32, %c0_i32_0 : i32, i32, i32
  }
}

module attributes {stable_mosaic.version = 11 : i64} {
  func.func @_fc_kernel(%arg0: i32, %arg1: memref<2x3584xbf16, #tpu.memory_space<vmem>>, %arg2: memref<3584x128xbf16, #tpu.memory_space<vmem>>, %arg3: memref<1x128xf32, #tpu.memory_space<vmem>>, %arg4: memref<128x128xbf16, #tpu.memory_space<vmem>>, %arg5: memref<1x128xf32, #tpu.memory_space<vmem>>, %arg6: memref<2x128xf32, #tpu.memory_space<vmem>>) attributes {dimension_semantics = [#tpu.dimension_semantics<parallel>], iteration_bounds = array<i64: 1>, scalar_prefetch = 0 : i64, scratch_operands = 0 : i64, tpu.core_type = #tpu.core_type<tc>, window_params = [{transform_indices = @transform_0, window_bounds = array<i64: 2, 3584>}, {pipeline_mode = #tpu.pipeline_mode<synchronous>, transform_indices = @transform_1, window_bounds = array<i64: 3584, 128>}, {pipeline_mode = #tpu.pipeline_mode<synchronous>, transform_indices = @transform_2, window_bounds = array<i64: 1, 128>}, {pipeline_mode = #tpu.pipeline_mode<synchronous>, transform_indices = @transform_3, window_bounds = array<i64: 128, 128>}, {pipeline_mode = #tpu.pipeline_mode<synchronous>, transform_indices = @transform_4, window_bounds = array<i64: 1, 128>}, {transform_indices = @transform_5, window_bounds = array<i64: 2, 128>}]} {
    %c0 = arith.constant 0 : index
    %c0_0 = arith.constant 0 : index
    %0 = vector.load %arg1[%c0, %c0_0] : memref<2x3584xbf16, #tpu.memory_space<vmem>>, vector<2x3584xbf16>
    %c0_1 = arith.constant 0 : index
    %c0_2 = arith.constant 0 : index
    %1 = vector.load %arg2[%c0_1, %c0_2] : memref<3584x128xbf16, #tpu.memory_space<vmem>>, vector<3584x128xbf16>
    %cst = arith.constant dense<0.000000e+00> : vector<2x128xf32>
    %2 = tpu.matmul %0, %1, %cst {dimension_numbers = #tpu.dot_dimension_numbers<[1], [0], [0], [1], [0, 0, 1, 1], [], []>} : vector<2x3584xbf16>, vector<3584x128xbf16>, vector<2x128xf32> -> vector<2x128xf32>
    %c0_3 = arith.constant 0 : index
    %c0_4 = arith.constant 0 : index
    %3 = vector.load %arg3[%c0_3, %c0_4] : memref<1x128xf32, #tpu.memory_space<vmem>>, vector<1x128xf32>
    %4 = vector.broadcast %3 : vector<1x128xf32> to vector<2x128xf32>
    %5 = arith.addf %2, %4 : vector<2x128xf32>
    %cst_5 = arith.constant 0.000000e+00 : f32
    %6 = vector.broadcast %cst_5 : f32 to vector<2x128xf32>
    %7 = arith.maximumf %5, %6 : vector<2x128xf32>
    %8 = arith.truncf %7 : vector<2x128xf32> to vector<2x128xbf16>
    %c0_6 = arith.constant 0 : index
    %c0_7 = arith.constant 0 : index
    %9 = vector.load %arg4[%c0_6, %c0_7] : memref<128x128xbf16, #tpu.memory_space<vmem>>, vector<128x128xbf16>
    %cst_8 = arith.constant dense<0.000000e+00> : vector<2x128xf32>
    %10 = tpu.matmul %8, %9, %cst_8 {dimension_numbers = #tpu.dot_dimension_numbers<[1], [0], [0], [1], [0, 0, 1, 1], [], []>} : vector<2x128xbf16>, vector<128x128xbf16>, vector<2x128xf32> -> vector<2x128xf32>
    %c0_9 = arith.constant 0 : index
    %c0_10 = arith.constant 0 : index
    %11 = vector.load %arg5[%c0_9, %c0_10] : memref<1x128xf32, #tpu.memory_space<vmem>>, vector<1x128xf32>
    %12 = vector.broadcast %11 : vector<1x128xf32> to vector<2x128xf32>
    %13 = arith.addf %10, %12 : vector<2x128xf32>
    %c0_11 = arith.constant 0 : index
    %c0_12 = arith.constant 0 : index
    %14 = vector.load %arg6[%c0_11, %c0_12] : memref<2x128xf32, #tpu.memory_space<vmem>>, vector<2x128xf32>
    tpu.vector_store %arg6[%c0_11, %c0_12], %13 {strides = array<i32>} : memref<2x128xf32, #tpu.memory_space<vmem>>, vector<2x128xf32>,
    return
  }
  func.func @transform_0(%arg0: i32) -> (i32, i32) {
    %c0_i32 = arith.constant 0 : i32
    %c0_i32_0 = arith.constant 0 : i32
    return %arg0, %c0_i32 : i32, i32
  }
  func.func @transform_1(%arg0: i32) -> (i32, i32) {
    %c0_i32 = arith.constant 0 : i32
    %c0_i32_0 = arith.constant 0 : i32
    %c0_i32_1 = arith.constant 0 : i32
    return %c0_i32, %c0_i32_0 : i32, i32
  }
  func.func @transform_2(%arg0: i32) -> (i32, i32) {
    %c0_i32 = arith.constant 0 : i32
    %c0_i32_0 = arith.constant 0 : i32
    %c0_i32_1 = arith.constant 0 : i32
    return %c0_i32, %c0_i32_0 : i32, i32
  }
  func.func @transform_3(%arg0: i32) -> (i32, i32) {
    %c0_i32 = arith.constant 0 : i32
    %c0_i32_0 = arith.constant 0 : i32
    %c0_i32_1 = arith.constant 0 : i32
    return %c0_i32, %c0_i32_0 : i32, i32
  }
  func.func @transform_4(%arg0: i32) -> (i32, i32) {
    %c0_i32 = arith.constant 0 : i32
    %c0_i32_0 = arith.constant 0 : i32
    %c0_i32_1 = arith.constant 0 : i32
    return %c0_i32, %c0_i32_0 : i32, i32
  }
  func.func @transform_5(%arg0: i32) -> (i32, i32) {
    %c0_i32 = arith.constant 0 : i32
    %c0_i32_0 = arith.constant 0 : i32
    return %arg0, %c0_i32 : i32, i32
  }
}

</mosaic_0001>

<bundles_post_ra>
// kernel: cnn_forward.3
= control target key start
LH: loop header
LB: loop body
LE: loop exit
PB: predicated region body
PF: predicated region fallthrough
CT: control target
= control target key end

     0   :  { %s2057_s12 = smov 0   ;;  %s2653_s0 = inlined_call_operand.vmem [shape: bf16[2,2,15,30], index: 0, kind: input, shape index: {}]   ;;  %s2654_s1 = inlined_call_operand.vmem [shape: bf16[2,3,30,448], index: 1, kind: input, shape index: {}]   ;;  %s2655_s2 = inlined_call_operand.vmem [shape: f32[1,448], index: 2, kind: input, shape index: {}]   ;;  %s2656_s3 = inlined_call_operand.vmem [shape: bf16[2,14,448], index: 3, kind: output, shape index: {}]  }
   0x1 LB: > { %s1779_s13 = sadd.s32 4294967295, %s2034_s12   ;;  %p1783_p0 = scmp.ge.s32.totalorder %s2034_s12, 1  ;;  %s2034_s12 = sphi %s2057_s12, %s13_s12  }
   0x2   : > { %p137_p1 = scmp.lt.s32.totalorder %s2034_s12, 3 }
   0x4   : > { %p138_p2 = pnand %p1783_p0, %p137_p1 }
   0x6   : > { %141 = sbr.rel (%p138_p2) target bundleno = 320 (0x140), region = 32 }
   0xb   : > { %v2068_v0 = vld [vmem:[%s2654_s1 + $0x64] ss:$16 sps:$4 sm:$0x7f]   ;;  %vm239_vm0 = vcmask 1046528   ;;  %v2036_v3 = vmov 0   ;;  %p161_p3 = scmp.lt.s32.totalorder %s1779_s13, 1 }
   0xc   : > { %1807 = vmatprep.subr.msk.bf16.mxu0 %vm239_vm0, %v2068_v0  ;;  %v2075_v1 = vld [vmem:[%s2654_s1 + $0x6c] ss:$16 sps:$4 sm:$0x7f]   ;;  %v1956_v2 = vld [vmem:[%s2654_s1 + $0x60] ss:$16 sps:$4 sm:$0x7f]   ;;  %284 = vmatprep.mubr.bf16.mxu0 %v2036_v3 }
   0xd   : > { %v1957_v4 = vld [vmem:[%s2654_s1 + $0x68] ss:$16 sps:$4 sm:$0x7f]   ;;  %v2087_v5 = vld [vmem:[%s2654_s1 + $0x44] ss:$16 sps:$4 sm:$0xff]   ;;  %327 = vmatprep.mubr.bf16.mxu1 %v2036_v3  ;;  %1809 = vmatprep.subr.msk.bf16.mxu1 %vm239_vm0, %v2075_v1  ;;  %v2093_v6 = vsel %vm239_vm0, %v1956_v2, 0 }
   0xe   : > { %v2098_v7 = vld [vmem:[%s2654_s1 + $0x4c] ss:$16 sps:$4 sm:$0xff]   ;;  %265 = vmatpush1.bf16.msra.mxu0 %v2093_v6  ;;  %v2102_v8 = vsel %vm239_vm0, %v1957_v4, 0  ;;  %v2107_v9 = vld [vmem:[%s2654_s1 + $0x40] ss:$16 sps:$4 sm:$0xff]   ;;  %s2692_s13 = smov (!%p161_p3, %s1779_s13), 1 }
   0xf   : > { %v2112_v10 = vld [vmem:[%s2654_s1 + $0x48] ss:$16 sps:$4 sm:$0xff]   ;;  %308 = vmatpush1.bf16.msra.mxu1 %v2102_v8  ;;  %266 = vmatprep.subr.bf16.mxu0 %v2087_v5  ;;  %v2122_v11 = vld [vmem:[%s2654_s1 + $0x24] ss:$16 sps:$4 sm:$0x7f]   ;;  %s1937_s5 = sshll.u32 %s2692_s13, 4 }
  0x10   : > { %309 = vmatprep.subr.bf16.mxu1 %v2098_v7  ;;  %v2128_v12 = vld [vmem:[%s2654_s1 + $0x2c] ss:$16 sps:$4 sm:$0x7f]   ;;  %s2134_s10 = scalar_lea.vmem %s2653_s0, %s1937_s5  ;;  %v1969_v13 = vld [vmem:[%s2654_s1 + $0x20] ss:$16 sps:$4 sm:$0x7f]  }
  0x11   : > { %v1970_v14 = vld [vmem:[%s2654_s1 + $0x28] ss:$16 sps:$4 sm:$0x7f]   ;;  %v1789_v16 = vld [vmem:[%s2134_s10 + $0xc] sm:$0x7]  ;;  %vm235_vm1 = vcmask 244736  }
  0x12   : > { %267 = vmatpush1.bf16.msra.mxu0 %v2107_v9  ;;  %v2144_v15 = vld [vmem:[%s2134_s10 + $0x8] sm:$0xf]  ;;  %v2155_v18 = vsel %vm239_vm0, %v1969_v13, 0  ;;  %v2158_v19 = vsel %vm239_vm0, %v1970_v14, 0  ;;  %v2163_v20 = vld [vmem:[%s2654_s1 + $0x4] ss:$16 sps:$4 sm:$0xff]  }
  0x13   : > { %310 = vmatpush1.bf16.msra.mxu1 %v2112_v10  ;;  %1820 = vmatprep.subr.msk.bf16.mxu0 %vm239_vm0, %v2122_v11  ;;  %v2150_v17 = vcombine.low %v2144_v15, %v1789_v16  ;;  %v2168_v21 = vld [vmem:[%s2654_s1] ss:$16 sps:$4 sm:$0xff]   ;;  %v2173_v22 = vld [vmem:[%s2654_s1 + $0x8] ss:$16 sps:$4 sm:$0xff]   ;;  %v2178_v23 = vld [vmem:[%s2654_s1 + $0xc] ss:$16 sps:$4 sm:$0xff]  }
  0x14   : > { %1822 = vmatprep.subr.msk.bf16.mxu1 %vm239_vm0, %v2128_v12  ;;  %v172_v24 = vld [vmem:[%s2134_s10] sm:$0xf]  ;;  %v173_v25 = vld [vmem:[%s2134_s10 + $0x4] sm:$0x7]  ;;  %v2231_v38 = vld [vmem:[%s2654_s1 + $0x8c] ss:$16 sps:$4 sm:$0xff]  }
  0x15   : > { %1808 = vmatmul.mubr.msk.bf16.vlgmr.msra.gmra.mxu0 %vm235_vm1, %v2150_v17  ;;  %v480_v26 = vld [vmem:[%s2134_s10 + $0x4] sm:$0xf]  ;;  %v2199_v29 = vld [vmem:[%s2654_s1 + $0xac] ss:$16 sps:$4 sm:$0x7f]   ;;  %v2209_v33 = vcombine.low %v172_v24, %v173_v25  ;;  %vm1715_vm2 = vcmask 1043456  }
  0x16   : > { %1810 = vmatmul.mubr.msk.bf16.vlgmr.msra.gmra.mxu1 %vm235_vm1, %v2150_v17  ;;  %407 = vmatpush1.bf16.msra.mxu0 %v2155_v18  ;;  %v1832_v27 = vcombine.low %v172_v24, %v480_v26  ;;  %v2192_v28 = vld [vmem:[%s2654_s1 + $0xa4] ss:$16 sps:$4 sm:$0x7f]   ;;  %v1983_v30 = vld [vmem:[%s2654_s1 + $0xa0] ss:$16 sps:$4 sm:$0x7f]  }
  0x17   : > { %450 = vmatpush1.bf16.msra.mxu1 %v2158_v19  ;;  %408 = vmatprep.subr.bf16.mxu0 %v2163_v20  ;;  %v1984_v32 = vld [vmem:[%s2654_s1 + $0xa8] ss:$16 sps:$4 sm:$0x7f]   ;;  %v2214_v35 = vsel %vm239_vm0, %v1983_v30, 0  ;;  %v2219_v36 = vld [vmem:[%s2654_s1 + $0x84] ss:$16 sps:$4 sm:$0xff]  }
  0x18   : > { %451 = vmatprep.subr.bf16.mxu1 %v2178_v23  ;;  %426 = vmatprep.mubr.bf16.mxu0 %v2036_v3  ;;  %v496_v31 = vshll.u32 %v1832_v27, 16  ;;  %v494_v34 = vshrl.u32 %v1832_v27, 16  ;;  %v2226_v37 = vsel %vm239_vm0, %v1984_v32, 0  ;;  %v2236_v40 = vld [vmem:[%s2654_s1 + $0x80] ss:$16 sps:$4 sm:$0xff]   ;;  %vm1716_vm3 = vcmask 523268  }
  0x19   : > { %469 = vmatprep.mubr.bf16.mxu1 %v2036_v3  ;;  %v2241_v41 = vld [vmem:[%s2654_s1 + $0x88] ss:$16 sps:$4 sm:$0xff]   ;;  %v2250_v42 = vld [vmem:[%s2654_s1 + $0x124] ss:$16 sps:$4 sm:$0x7f]   ;;  %s1938_s18 = sshll.u32 %s2692_s13, 5  ;;  %vm1717_vm4 = vmor %vm1716_vm3, %vm1715_vm2 }
  0x1a   : > { %409 = vmatpush1.bf16.msra.mxu0 %v2168_v21  ;;  %v498_v39 = vrot.slane %v496_v31, 1  ;;  %v2255_v43 = vld [vmem:[%s2654_s1 + $0x12c] ss:$16 sps:$4 sm:$0x7f]   ;;  %v2286_v49 = vld [vmem:[%s2654_s1 + $0x104] ss:$16 sps:$4 sm:$0xff]   ;;  %s170_s21 = scalar_lea.vmem %s2656_s3, %s1938_s18 }
  0x1b   : > { %452 = vmatpush1.bf16.msra.mxu1 %v2173_v22  ;;  %1841 = vmatprep.subr.msk.bf16.mxu0 %vm239_vm0, %v2192_v28  ;;  %v1995_v44 = vld [vmem:[%s2654_s1 + $0x120] ss:$16 sps:$4 sm:$0x7f]   ;;  %v1996_v45 = vld [vmem:[%s2654_s1 + $0x128] ss:$16 sps:$4 sm:$0x7f]  }
  0x1c   : > { %1843 = vmatprep.subr.msk.bf16.mxu1 %vm239_vm0, %v2199_v29  ;;  %v2269_v46 = vor.u32 %v498_v39, %v494_v34  ;;  %v2278_v47 = vsel %vm239_vm0, %v1995_v44, 0  ;;  %v2281_v48 = vsel %vm239_vm0, %v1996_v45, 0  ;;  %v2291_v50 = vld [vmem:[%s2654_s1 + $0x10c] ss:$16 sps:$4 sm:$0xff]   ;;  %v2296_v51 = vld [vmem:[%s2654_s1 + $0x100] ss:$16 sps:$4 sm:$0xff]  }
  0x1d   : > { %1821 = vmatmul.mubr.msk.bf16.vlgmr.msra.gmra.mxu0 %vm235_vm1, %v2209_v33  ;;  %v2305_v52 = vld [vmem:[%s2654_s1 + $0xe4] ss:$16 sps:$4 sm:$0x7f]   ;;  %v2310_v53 = vld [vmem:[%s2654_s1 + $0xec] ss:$16 sps:$4 sm:$0x7f]  }
  0x1e   : > { %1823 = vmatmul.mubr.msk.bf16.vlgmr.msra.gmra.mxu1 %vm235_vm1, %v2209_v33  ;;  %564 = vmatpush1.bf16.msra.mxu0 %v2214_v35  ;;  %v2317_v54 = vld [vmem:[%s2654_s1 + $0x108] ss:$16 sps:$4 sm:$0xff]   ;;  %v2007_v55 = vld [vmem:[%s2654_s1 + $0xe0] ss:$16 sps:$4 sm:$0x7f]   ;;  %vm1720_vm5 = vcmask 1042432  }
  0x1f   : > { %607 = vmatpush1.bf16.msra.mxu1 %v2226_v37  ;;  %565 = vmatprep.subr.bf16.mxu0 %v2219_v36  ;;  %v2008_v56 = vld [vmem:[%s2654_s1 + $0xe8] ss:$16 sps:$4 sm:$0x7f]   ;;  %v2334_v57 = vld [vmem:[%s2654_s1 + $0xc4] ss:$16 sps:$4 sm:$0xff]   ;;  %v2341_v58 = vsel %vm239_vm0, %v2007_v55, 0 }
  0x20   : > { %608 = vmatprep.subr.bf16.mxu1 %v2231_v38  ;;  %583 = vmatprep.mubr.bf16.mxu0 %v2036_v3  ;;  %v2344_v59 = vsel %vm239_vm0, %v2008_v56, 0  ;;  %v2349_v60 = vld [vmem:[%s2654_s1 + $0xcc] ss:$16 sps:$4 sm:$0xff]   ;;  %v2358_v61 = vld [vmem:[%s2654_s1 + $0xc0] ss:$16 sps:$4 sm:$0xff]   ;;  %vm1721_vm6 = vcmask 522244  }
  0x21   : > { %626 = vmatprep.mubr.bf16.mxu1 %v2036_v3  ;;  %v2363_v62 = vld [vmem:[%s2654_s1 + $0xc8] ss:$16 sps:$4 sm:$0xff]   ;;  %v2370_v63 = vld [vmem:[%s2654_s1 + $0x164] ss:$16 sps:$4 sm:$0x7f]   ;;  %vm1722_vm7 = vmor %vm1721_vm6, %vm1720_vm5 }
  0x22   : > { %566 = vmatpush1.bf16.msra.mxu0 %v2236_v40  ;;  %v2375_v2 = vld [vmem:[%s2654_s1 + $0x16c] ss:$16 sps:$4 sm:$0x7f]   ;;  %v2019_v4 = vld [vmem:[%s2654_s1 + $0x160] ss:$16 sps:$4 sm:$0x7f]  }
  0x23   : > { %609 = vmatpush1.bf16.msra.mxu1 %v2241_v41  ;;  %1869 = vmatprep.subr.msk.bf16.mxu0 %vm239_vm0, %v2250_v42  ;;  %v2020_v13 = vld [vmem:[%s2654_s1 + $0x168] ss:$16 sps:$4 sm:$0x7f]   ;;  %v2394_v14 = vsel %vm239_vm0, %v2019_v4, 0  ;;  %v2402_v24 = vld [vmem:[%s2654_s1 + $0x144] ss:$16 sps:$4 sm:$0xff]  }
  0x24   : > { %1871 = vmatprep.subr.msk.bf16.mxu1 %vm239_vm0, %v2255_v43  ;;  %v2397_v16 = vsel %vm239_vm0, %v2020_v13, 0  ;;  %v2407_v25 = vld [vmem:[%s2654_s1 + $0x14c] ss:$16 sps:$4 sm:$0xff]   ;;  %v2418_v26 = vld [vmem:[%s2654_s1 + $0x140] ss:$16 sps:$4 sm:$0xff]  }
  0x25   : > { %1842 = vmatmul.mubr.msk.bf16.vlgmr.msra.gmra.mxu0 %vm235_vm1, %v2269_v46  ;;  %v2423_v27 = vld [vmem:[%s2654_s1 + $0x148] ss:$16 sps:$4 sm:$0xff]  }
  0x26   : > { %1844 = vmatmul.mubr.msk.bf16.vlgmr.msra.gmra.mxu1 %vm235_vm1, %v2269_v46  ;;  %724 = vmatpush1.bf16.msra.mxu0 %v2278_v47 }
  0x27   : > { %767 = vmatpush1.bf16.msra.mxu1 %v2281_v48  ;;  %725 = vmatprep.subr.bf16.mxu0 %v2286_v49 }
  0x28   : > { %768 = vmatprep.subr.bf16.mxu1 %v2291_v50  ;;  %743 = vmatprep.mubr.bf16.mxu0 %v2036_v3 }
  0x29   : > { %786 = vmatprep.mubr.bf16.mxu1 %v2036_v3 }
  0x2a   : > { %726 = vmatpush1.bf16.msra.mxu0 %v2296_v51 }
  0x2b   : > { %769 = vmatpush1.bf16.msra.mxu1 %v2317_v54  ;;  %1881 = vmatprep.subr.msk.bf16.mxu0 %vm239_vm0, %v2305_v52 }
  0x2c   : > { %1883 = vmatprep.subr.msk.bf16.mxu1 %vm239_vm0, %v2310_v53 }
  0x2d   : > { %1870 = vmatmul.mubr.msk.bf16.vlgmr.msra.gmra.mxu0 %vm235_vm1, %v2150_v17 }
  0x2e   : > { %1872 = vmatmul.mubr.msk.bf16.vlgmr.msra.gmra.mxu1 %vm235_vm1, %v2150_v17  ;;  %858 = vmatpush1.bf16.msra.mxu0 %v2341_v58 }
  0x2f   : > { %901 = vmatpush1.bf16.msra.mxu1 %v2344_v59  ;;  %859 = vmatprep.subr.bf16.mxu0 %v2334_v57 }
  0x30   : > { %902 = vmatprep.subr.bf16.mxu1 %v2349_v60  ;;  %877 = vmatprep.mubr.bf16.mxu0 %v2036_v3 }
  0x31   : > { %920 = vmatprep.mubr.bf16.mxu1 %v2036_v3 }
  0x32   : > { %860 = vmatpush1.bf16.msra.mxu0 %v2358_v61 }
  0x33   : > { %903 = vmatpush1.bf16.msra.mxu1 %v2363_v62  ;;  %1901 = vmatprep.subr.msk.bf16.mxu0 %vm239_vm0, %v2370_v63 }
  0x34   : > { %1903 = vmatprep.subr.msk.bf16.mxu1 %vm239_vm0, %v2375_v2 }
  0x35   : > { %1882 = vmatmul.mubr.msk.bf16.vlgmr.msra.gmra.mxu0 %vm235_vm1, %v2209_v33 }
  0x36   : > { %1884 = vmatmul.mubr.msk.bf16.vlgmr.msra.gmra.mxu1 %vm235_vm1, %v2209_v33  ;;  %1001 = vmatpush1.bf16.msra.mxu0 %v2394_v14 }
  0x37   : > { %1044 = vmatpush1.bf16.msra.mxu1 %v2397_v16  ;;  %1002 = vmatprep.subr.bf16.mxu0 %v2402_v24 }
  0x38   : > { %1045 = vmatprep.subr.bf16.mxu1 %v2407_v25  ;;  %1020 = vmatprep.mubr.bf16.mxu0 %v2036_v3 }
  0x39   : > { %1063 = vmatprep.mubr.bf16.mxu1 %v2036_v3 }
  0x3a   : > { %1003 = vmatpush1.bf16.msra.mxu0 %v2418_v26 }
  0x3b   : > { %1046 = vmatpush1.bf16.msra.mxu1 %v2423_v27  ;;  %1905 = vmatprep.subr.msk.bf16.mxu0 %vm239_vm0, %v2068_v0  ;;  %v1913_v0 = vld [vmem:[%s2134_s10 + $0xc] sm:$0xf] }
  0x3c   : > { %1907 = vmatprep.subr.msk.bf16.mxu1 %vm239_vm0, %v2075_v1  ;;  %v1914_v1 = vcombine.low %v2144_v15, %v1913_v0 }
  0x3d   : > { %1902 = vmatmul.mubr.msk.bf16.vlgmr.msra.gmra.mxu0 %vm235_vm1, %v2269_v46 }
  0x3e   : > { %1904 = vmatmul.mubr.msk.bf16.vlgmr.msra.gmra.mxu1 %vm235_vm1, %v2269_v46  ;;  %1103 = vmatpush1.bf16.msra.mxu0 %v2093_v6  ;;  %v1267_v6 = vshrl.u32 %v1914_v1, 16 }
  0x3f   : > { %1146 = vmatpush1.bf16.msra.mxu1 %v2102_v8  ;;  %1104 = vmatprep.subr.bf16.mxu0 %v2087_v5  ;;  %v1269_v5 = vshll.u32 %v1914_v1, 16 }
  0x40   : > { %1147 = vmatprep.subr.bf16.mxu1 %v2098_v7  ;;  %1122 = vmatprep.mubr.bf16.mxu0 %v2036_v3 }
  0x41   : > { %1165 = vmatprep.mubr.bf16.mxu1 %v2036_v3  ;;  %v1271_v7 = vrot.slane %v1269_v5, 1 }
  0x42   : > { %1105 = vmatpush1.bf16.msra.mxu0 %v2107_v9 }
  0x43   : > { %1148 = vmatpush1.bf16.msra.mxu1 %v2112_v10  ;;  %1909 = vmatprep.subr.msk.bf16.mxu0 %vm239_vm0, %v2122_v11  ;;  %v1272_v8 = vor.u32 %v1271_v7, %v1267_v6 }
  0x44   : > { %1911 = vmatprep.subr.msk.bf16.mxu1 %vm239_vm0, %v2128_v12 }
  0x45   : > { %1906 = vmatmul.mubr.msk.bf16.vlgmr.msra.gmra.mxu0 %vm235_vm1, %v2269_v46 }
  0x46   : > { %1908 = vmatmul.mubr.msk.bf16.vlgmr.msra.gmra.mxu1 %vm235_vm1, %v2269_v46  ;;  %1189 = vmatpush1.bf16.msra.mxu0 %v2155_v18 }
  0x47   : > { %1232 = vmatpush1.bf16.msra.mxu1 %v2158_v19  ;;  %1190 = vmatprep.subr.bf16.mxu0 %v2163_v20 }
  0x48   : > { %1233 = vmatprep.subr.bf16.mxu1 %v2178_v23  ;;  %1208 = vmatprep.mubr.bf16.mxu0 %v2036_v3 }
  0x49   : > { %1251 = vmatprep.mubr.bf16.mxu1 %v2036_v3 }
  0x4a   : > { %1191 = vmatpush1.bf16.msra.mxu0 %v2168_v21 }
  0x4b   : > { %1234 = vmatpush1.bf16.msra.mxu1 %v2173_v22  ;;  %1915 = vmatprep.subr.msk.bf16.mxu0 %vm239_vm0, %v2192_v28 }
  0x4c   : > { %1917 = vmatprep.subr.msk.bf16.mxu1 %vm239_vm0, %v2199_v29 }
  0x4d   : > { %1910 = vmatmul.mubr.msk.bf16.vlgmr.msra.gmra.mxu0 %vm235_vm1, %v2150_v17 }
  0x4e   : > { %1912 = vmatmul.mubr.msk.bf16.vlgmr.msra.gmra.mxu1 %vm235_vm1, %v2150_v17  ;;  %1289 = vmatpush1.bf16.msra.mxu0 %v2214_v35 }
  0x4f   : > { %1332 = vmatpush1.bf16.msra.mxu1 %v2226_v37  ;;  %1290 = vmatprep.subr.bf16.mxu0 %v2219_v36 }
  0x50   : > { %1333 = vmatprep.subr.bf16.mxu1 %v2231_v38  ;;  %1308 = vmatprep.mubr.bf16.mxu0 %v2036_v3 }
  0x51   : > { %1351 = vmatprep.mubr.bf16.mxu1 %v2036_v3 }
  0x52   : > { %1291 = vmatpush1.bf16.msra.mxu0 %v2236_v40 }
  0x53   : > { %1334 = vmatpush1.bf16.msra.mxu1 %v2241_v41  ;;  %1919 = vmatprep.subr.msk.bf16.mxu0 %vm239_vm0, %v2250_v42 }
  0x54   : > { %1921 = vmatprep.subr.msk.bf16.mxu1 %vm239_vm0, %v2255_v43 }
  0x55   : > { %1916 = vmatmul.mubr.msk.bf16.vlgmr.msra.gmra.mxu0 %vm235_vm1, %v1272_v8 }
  0x56   : > { %1918 = vmatmul.mubr.msk.bf16.vlgmr.msra.gmra.mxu1 %vm235_vm1, %v1272_v8  ;;  %1391 = vmatpush1.bf16.msra.mxu0 %v2278_v47 }
  0x57   : > { %1434 = vmatpush1.bf16.msra.mxu1 %v2281_v48  ;;  %1392 = vmatprep.subr.bf16.mxu0 %v2286_v49 }
  0x58   : > { %1435 = vmatprep.subr.bf16.mxu1 %v2291_v50  ;;  %1410 = vmatprep.mubr.bf16.mxu0 %v2036_v3 }
  0x59   : > { %1453 = vmatprep.mubr.bf16.mxu1 %v2036_v3 }
  0x5a   : > { %1393 = vmatpush1.bf16.msra.mxu0 %v2296_v51 }
  0x5b   : > { %1436 = vmatpush1.bf16.msra.mxu1 %v2317_v54  ;;  %1923 = vmatprep.subr.msk.bf16.mxu0 %vm239_vm0, %v2305_v52 }
  0x5c   : > { %1925 = vmatprep.subr.msk.bf16.mxu1 %vm239_vm0, %v2310_v53 }
  0x5d   : > { %1920 = vmatmul.mubr.msk.bf16.vlgmr.msra.gmra.mxu0 %vm235_vm1, %v2269_v46 }
  0x5e   : > { %1922 = vmatmul.mubr.msk.bf16.vlgmr.msra.gmra.mxu1 %vm235_vm1, %v2269_v46  ;;  %1477 = vmatpush1.bf16.msra.mxu0 %v2341_v58 }
  0x5f   : > { %1520 = vmatpush1.bf16.msra.mxu1 %v2344_v59  ;;  %1478 = vmatprep.subr.bf16.mxu0 %v2334_v57 }
  0x60   : > { %1521 = vmatprep.subr.bf16.mxu1 %v2349_v60  ;;  %1496 = vmatprep.mubr.bf16.mxu0 %v2036_v3 }
  0x61   : > { %1539 = vmatprep.mubr.bf16.mxu1 %v2036_v3 }
  0x62   : > { %1479 = vmatpush1.bf16.msra.mxu0 %v2358_v61 }
  0x63   : > { %1522 = vmatpush1.bf16.msra.mxu1 %v2363_v62  ;;  %1927 = vmatprep.subr.msk.bf16.mxu0 %vm239_vm0, %v2370_v63 }
  0x64   : > { %1929 = vmatprep.subr.msk.bf16.mxu1 %vm239_vm0, %v2375_v2 }
  0x65   : > { %1924 = vmatmul.mubr.msk.bf16.vlgmr.msra.gmra.mxu0 %vm235_vm1, %v2150_v17 }
  0x66   : > { %1926 = vmatmul.mubr.msk.bf16.vlgmr.msra.gmra.mxu1 %vm235_vm1, %v2150_v17  ;;  %1563 = vmatpush1.bf16.msra.mxu0 %v2394_v14 }
  0x67   : > { %1606 = vmatpush1.bf16.msra.mxu1 %v2397_v16  ;;  %1564 = vmatprep.subr.bf16.mxu0 %v2402_v24 }
  0x68   : > { %1607 = vmatprep.subr.bf16.mxu1 %v2407_v25  ;;  %1582 = vmatprep.mubr.bf16.mxu0 %v2036_v3 }
  0x69   : > { %1625 = vmatprep.mubr.bf16.mxu1 %v2036_v3 }
  0x6a   : > { %1565 = vmatpush1.bf16.msra.mxu0 %v2418_v26 }
  0x6b   : > { %1608 = vmatpush1.bf16.msra.mxu1 %v2423_v27 }
  0x6d   : > { %1928 = vmatmul.mubr.msk.bf16.vlgmr.msra.gmra.mxu0 %vm235_vm1, %v1272_v8 }
  0x6e   : > { %1930 = vmatmul.mubr.msk.bf16.vlgmr.msra.gmra.mxu1 %vm235_vm1, %v1272_v8 }
  0xd5   : > { %v286_v9 = vpop.f32.mrf.mxu0 }
  0xd6   : > { %v329_v10 = vpop.f32.mrf.mxu1 }
  0xd7   : > { %v288_v11 = vpop.f32.mrf.mxu0 }
  0xd8   : > { %v331_v12 = vpop.f32.mrf.mxu1 }
  0xd9   : > { %v290_v15 = vpop.f32.mrf.mxu0 }
  0xda   : > { %v333_v17 = vpop.f32.mrf.mxu1 }
  0xdb   : > { %v292_v18 = vpop.f32.mrf.mxu0 }
  0xdc   : > { %v335_v19 = vpop.f32.mrf.mxu1 }
  0xdd   : > { %v428_v20 = vpop.f32.mrf.mxu0 }
  0xde   : > { %v471_v21 = vpop.f32.mrf.mxu1  ;;  %v429_v22 = vadd.f32 %v428_v20, %v286_v9 }
  0xdf   : > { %v472_v3 = vadd.f32 %v471_v21, %v329_v10  ;;  %v430_v23 = vpop.f32.mrf.mxu0 }
  0xe0   : > { %v473_v28 = vpop.f32.mrf.mxu1  ;;  %v431_v29 = vadd.f32 %v430_v23, %v288_v11 }
  0xe1   : > { %v474_v30 = vadd.f32 %v473_v28, %v331_v12  ;;  %v432_v31 = vpop.f32.mrf.mxu0 }
  0xe2   : > { %v475_v32 = vpop.f32.mrf.mxu1  ;;  %v433_v33 = vadd.f32 %v432_v31, %v290_v15 }
  0xe3   : > { %v476_v34 = vadd.f32 %v475_v32, %v333_v17  ;;  %v434_v35 = vpop.f32.mrf.mxu0 }
  0xe4   : > { %v477_v36 = vpop.f32.mrf.mxu1  ;;  %v435_v37 = vadd.f32 %v434_v35, %v292_v18 }
  0xe5   : > { %v478_v38 = vadd.f32 %v477_v36, %v335_v19  ;;  %v585_v39 = vpop.f32.mrf.mxu0 }
  0xe6   : > { %v628_v40 = vpop.f32.mrf.mxu1  ;;  %v2529_v41 = vadd.f32 %v585_v39, %v429_v22 }
  0xe7   : > { %v2531_v42 = vadd.f32 %v628_v40, %v472_v3  ;;  %v587_v43 = vpop.f32.mrf.mxu0 }
  0xe8   : > { %v630_v44 = vpop.f32.mrf.mxu1  ;;  %v2533_v45 = vadd.f32 %v587_v43, %v431_v29 }
  0xe9   : > { %v2535_v46 = vadd.f32 %v630_v44, %v474_v30  ;;  %v589_v47 = vpop.f32.mrf.mxu0 }
  0xea   : > { %v632_v48 = vpop.f32.mrf.mxu1  ;;  %v2537_v49 = vadd.f32 %v589_v47, %v433_v33 }
  0xeb   : > { %v2539_v50 = vadd.f32 %v632_v48, %v476_v34  ;;  %v591_v51 = vpop.f32.mrf.mxu0 }
  0xec   : > { %v634_v52 = vpop.f32.mrf.mxu1  ;;  %v2541_v53 = vadd.f32 %v591_v51, %v435_v37  ;;  %v1654_v37 = vlaneseq }
  0xed   : > { %v2543_v54 = vadd.f32 %v634_v52, %v478_v38  ;;  %v745_v55 = vpop.f32.mrf.mxu0 }
  0xee   : > { %v788_v56 = vpop.f32.mrf.mxu1  ;;  %v1655_v44 = vshrl.u32 %v1654_v37, 7  ;;  %v1652_v37 = vld [vmem:[%s2655_s2] sm:$0xf] }
  0xef   : > { %v747_v57 = vpop.f32.mrf.mxu0 }
  0xf0   : > { %v790_v58 = vpop.f32.mrf.mxu1 }
  0xf1   : > { %v749_v59 = vpop.f32.mrf.mxu0 }
  0xf2   : > { %v792_v60 = vpop.f32.mrf.mxu1 }
  0xf3   : > { %v751_v61 = vpop.f32.mrf.mxu0 }
  0xf4   : > { %v794_v62 = vpop.f32.mrf.mxu1 }
  0xf5   : > { %v879_v63 = vpop.f32.mrf.mxu0 }
  0xf6   : > { %v922_v2 = vpop.f32.mrf.mxu1 }
  0xf7   : > { %v881_v4 = vpop.f32.mrf.mxu0 }
  0xf8   : > { %v924_v13 = vpop.f32.mrf.mxu1 }
  0xf9   : > { %v883_v14 = vpop.f32.mrf.mxu0 }
  0xfa   : > { %v926_v16 = vpop.f32.mrf.mxu1 }
  0xfb   : > { %v885_v24 = vpop.f32.mrf.mxu0 }
  0xfc   : > { %v928_v25 = vpop.f32.mrf.mxu1 }
  0xfd   : > { %v1022_v26 = vpop.f32.mrf.mxu0 }
  0xfe   : > { %v1065_v27 = vpop.f32.mrf.mxu1 }
  0xff   : > { %v1024_v0 = vpop.f32.mrf.mxu0 }
 0x100   : > { %v1067_v1 = vpop.f32.mrf.mxu1 }
 0x101   : > { %v1026_v5 = vpop.f32.mrf.mxu0 }
 0x102   : > { %v1069_v6 = vpop.f32.mrf.mxu1 }
 0x103   : > { %v1028_v7 = vpop.f32.mrf.mxu0 }
 0x104   : > { %v1071_v8 = vpop.f32.mrf.mxu1 }
 0x105   : > { %v1124_v9 = vpop.f32.mrf.mxu0 }
 0x106   : > { %v1167_v10 = vpop.f32.mrf.mxu1 }
 0x107   : > { %v2545_v11 = vpop.f32.mrf.mxu0 }
 0x108   : > { %v2547_v12 = vpop.f32.mrf.mxu1 }
 0x109   : > { %v2549_v15 = vpop.f32.mrf.mxu0 }
 0x10a   : > { %v2551_v17 = vpop.f32.mrf.mxu1 }
 0x10b   : > { %2657 = vst [vmem:[#allocation2_spill] sm:$0xff] %v2551_v17  ;;  %v2553_v18 = vpop.f32.mrf.mxu0 }
 0x10c   : > { %2658 = vst [vmem:[#allocation3_spill] sm:$0xff] %v2553_v18  ;;  %v2555_v19 = vpop.f32.mrf.mxu1  ;;  %v923_v18 = vadd.f32 %v922_v2, %v788_v56 }
 0x10d   : > { %2659 = vst [vmem:[#allocation4_spill] sm:$0xff] %v2555_v19  ;;  %v1210_v20 = vpop.f32.mrf.mxu0  ;;  %v1660_v19 = vsub.s32 1, %v1655_v44 }
 0x10e   : > { %v1253_v21 = vpop.f32.mrf.mxu1  ;;  %v1076_v17 = vadd.f32 %v1065_v27, %v923_v18 }
 0x10f   : > { %v1212_v22 = vpop.f32.mrf.mxu0 }
 0x110   : > { %v1255_v3 = vpop.f32.mrf.mxu1 }
 0x111   : > { %v2557_v23 = vpop.f32.mrf.mxu0 }
 0x112   : > { %2660 = vst [vmem:[#allocation5_spill] sm:$0xff] %v2557_v23  ;;  %v2559_v28 = vpop.f32.mrf.mxu1 }
 0x113   : > { %2661 = vst [vmem:[#allocation6_spill] sm:$0xff] %v2559_v28  ;;  %v2561_v29 = vpop.f32.mrf.mxu0 }
 0x114   : > { %2662 = vst [vmem:[#allocation7_spill] sm:$0xff] %v2561_v29  ;;  %v2563_v30 = vpop.f32.mrf.mxu1  ;;  %v880_v29 = vadd.f32 %v879_v63, %v745_v55 }
 0x115   : > { %2663 = vst [vmem:[#allocation8_spill] sm:$0xff] %v2563_v30  ;;  %v1310_v31 = vpop.f32.mrf.mxu0  ;;  %v1656_v30 = vsub.s32 0, %v1655_v44 }
 0x116   : > { %v1353_v32 = vpop.f32.mrf.mxu1 }
 0x117   : > { %v2565_v33 = vpop.f32.mrf.mxu0 }
 0x118   : > { %2664 = vst [vmem:[#allocation9_spill] sm:$0xff] %v2565_v33  ;;  %v2567_v34 = vpop.f32.mrf.mxu1  ;;  %v886_v33 = vadd.f32 %v885_v24, %v751_v61  ;;  %v1211_v61 = vadd.f32 %v1210_v20, %v1124_v9 }
 0x119   : > { %2665 = vst [vmem:[#allocation10_spill] sm:$0xff] %v2567_v34  ;;  %v2569_v35 = vpop.f32.mrf.mxu0  ;;  %v925_v34 = vadd.f32 %v924_v13, %v790_v58 }
 0x11a   : > { %2666 = vst [vmem:[#allocation11_spill] sm:$0xff] %v2569_v35  ;;  %v2571_v36 = vpop.f32.mrf.mxu1  ;;  %v1664_v35 = vsub.s32 2, %v1655_v44 }
 0x11b   : > { %2667 = vst [vmem:[#allocation12_spill] sm:$0xff] %v2571_v36  ;;  %v2573_v38 = vpop.f32.mrf.mxu0  ;;  %v1668_v36 = vsub.s32 3, %v1655_v44  ;;  %v1077_v44 = vadd.f32 %v1067_v1, %v925_v34  ;;  %v1256_v1 = vadd.f32 %v1255_v3, %v2547_v12  ;;  %v2679_v3 = vld [vmem:[#allocation3_spill] sm:$0xff] }
 0x11c   : > { %2668 = vst [vmem:[#allocation13_spill] sm:$0xff] %v2573_v38  ;;  %v2575_v39 = vpop.f32.mrf.mxu1  ;;  %v882_v38 = vadd.f32 %v881_v4, %v747_v57  ;;  %v2592_v57 = vrot.slane %v1652_v37, %v1656_v30  ;;  %v2594_v58 = vrot.slane %v1652_v37, %v1664_v35 }
 0x11d   : > { %2669 = vst [vmem:[#allocation14_spill] sm:$0xff] %v2575_v39  ;;  %v1412_v40 = vpop.f32.mrf.mxu0  ;;  %v884_v39 = vadd.f32 %v883_v14, %v749_v59  ;;  %v2596_v59 = vadd.f32 %v1028_v7, %v886_v33  ;;  %v2600_v14 = vrot.slane %v1652_v37, %v1660_v19  ;;  %v1085_v27 = vmax.f32 %v2535_v46, %v1077_v44 }
 0x11e   : > { %v1455_v43 = vpop.f32.mrf.mxu1  ;;  %v1075_v23 = vadd.f32 %v1024_v0, %v882_v38  ;;  %v1213_v0 = vadd.f32 %v1212_v22, %v2545_v11  ;;  %v2675_v11 = vld [vmem:[#allocation2_spill] sm:$0xff] }
 0x11f   : > { %v2577_v47 = vpop.f32.mrf.mxu0  ;;  %v1078_v63 = vadd.f32 %v1026_v5, %v884_v39  ;;  %v1362_v5 = vadd.f32 %v1310_v31, %v1211_v61  ;;  %v2677_v18 = vld [vmem:[#allocation9_spill] sm:$0xff] }
 0x120   : > { %2670 = vst [vmem:[#allocation15_spill] sm:$0xff] %v2577_v47  ;;  %v2579_v48 = vpop.f32.mrf.mxu1  ;;  %v927_v47 = vadd.f32 %v926_v16, %v792_v60  ;;  %v2602_v16 = vrot.slane %v1652_v37, %v1668_v36  ;;  %v1363_v19 = vadd.f32 %v2677_v18, %v1213_v0  ;;  %v2678_v20 = vld [vmem:[#allocation10_spill] sm:$0xff] }
 0x121   : > { %2671 = vst [vmem:[#allocation16_spill] sm:$0xff] %v2579_v48  ;;  %v2581_v51 = vpop.f32.mrf.mxu0  ;;  %v929_v48 = vadd.f32 %v928_v25, %v794_v62  ;;  %v1254_v62 = vadd.f32 %v1253_v21, %v1167_v10  ;;  %v1084_v25 = vmax.f32 %v2531_v42, %v1076_v17  ;;  %v1086_v9 = vmax.f32 %v2537_v49, %v1078_v63  ;;  %v2676_v17 = vld [vmem:[#allocation6_spill] sm:$0xff]  ;;  %v2683_v33 = vld [vmem:[#allocation11_spill] sm:$0xff] }
 0x122   : > { %2672 = vst [vmem:[#allocation17_spill] sm:$0xff] %v2581_v51  ;;  %v2583_v52 = vpop.f32.mrf.mxu1  ;;  %v1080_v2 = vadd.f32 %v1069_v6, %v927_v47  ;;  %v1258_v12 = vadd.f32 %v2676_v17, %v2675_v11  ;;  %v1365_v21 = vadd.f32 %v2678_v20, %v1256_v1  ;;  %v2684_v35 = vld [vmem:[#allocation12_spill] sm:$0xff] }
 0x123   : > { %2673 = vst [vmem:[#allocation18_spill] sm:$0xff] %v2583_v52  ;;  %v2588_v28 = vpop.f32.mrf.mxu0  ;;  %v1074_v52 = vadd.f32 %v1022_v26, %v880_v29  ;;  %v2598_v60 = vadd.f32 %v1071_v8, %v929_v48  ;;  %v1083_v26 = vmax.f32 %v2533_v45, %v1075_v23  ;;  %v1364_v6 = vadd.f32 %v1353_v32, %v1254_v62  ;;  %v2674_v45 = vld [vmem:[#allocation5_spill] sm:$0xff]  ;;  %v2681_v29 = vld [vmem:[#allocation4_spill] sm:$0xff] }
 0x124   : > { %v2590_v51 = vpop.f32.mrf.mxu1  ;;  %v1088_v10 = vmax.f32 %v2539_v50, %v1080_v2  ;;  %v1215_v46 = vadd.f32 %v2674_v45, %v2549_v15  ;;  %v2680_v50 = vld [vmem:[#allocation7_spill] sm:$0xff]  ;;  %v1368_v36 = vadd.f32 %v2684_v35, %v1258_v12 }
 0x125   : > { %v1498_v55 = vpop.f32.mrf.mxu0  ;;  %v1082_v24 = vmax.f32 %v2529_v41, %v1074_v52  ;;  %v1087_v41 = vmax.f32 %v2541_v53, %v2596_v59  ;;  %v1089_v42 = vmax.f32 %v2543_v54, %v2598_v60  ;;  %v1217_v23 = vadd.f32 %v2680_v50, %v2679_v3  ;;  %v2682_v53 = vld [vmem:[#allocation8_spill] sm:$0xff] }
 0x126   : > { %v1541_v56 = vpop.f32.mrf.mxu1  ;;  %v1260_v30 = vadd.f32 %v2682_v53, %v2681_v29  ;;  %v1499_v31 = vadd.f32 %v1498_v55, %v1412_v40  ;;  %v1372_v32 = vmax.f32 %v1084_v25, %v1364_v6  ;;  %v1366_v34 = vadd.f32 %v2683_v33, %v1215_v46  ;;  %v2687_v40 = vld [vmem:[#allocation13_spill] sm:$0xff]  ;;  %v2688_v55 = vld [vmem:[#allocation14_spill] sm:$0xff] }
 0x127   : > { %v1500_v4 = vpop.f32.mrf.mxu0  ;;  %v1542_v54 = vadd.f32 %v1541_v56, %v1455_v43  ;;  %v1370_v15 = vmax.f32 %v1082_v24, %v1362_v5  ;;  %v2685_v47 = vld [vmem:[#allocation15_spill] sm:$0xff]  ;;  %v1371_v2 = vmax.f32 %v1083_v26, %v1363_v19  ;;  %v1373_v59 = vmax.f32 %v1085_v27, %v1365_v21 }
 0x128   : > { %v1543_v13 = vpop.f32.mrf.mxu1  ;;  %v1501_v48 = vadd.f32 %v1500_v4, %v2685_v47  ;;  %v2686_v52 = vld [vmem:[#allocation16_spill] sm:$0xff]  ;;  %v1367_v43 = vadd.f32 %v2687_v40, %v1217_v23  ;;  %v1369_v56 = vadd.f32 %v2688_v55, %v1260_v30  ;;  %v1374_v1 = vmax.f32 %v1086_v9, %v1366_v34 }
 0x129   : > { %v1502_v7 = vpop.f32.mrf.mxu0  ;;  %v1544_v37 = vadd.f32 %v1543_v13, %v2686_v52  ;;  %v1376_v5 = vmax.f32 %v1088_v10, %v1368_v36  ;;  %v2689_v6 = vld [vmem:[#allocation17_spill] sm:$0xff] }
 0x12a   : > { %v1545_v8 = vpop.f32.mrf.mxu1  ;;  %v1503_v4 = vadd.f32 %v1502_v7, %v2689_v6  ;;  %v2690_v45 = vld [vmem:[#allocation18_spill] sm:$0xff]  ;;  %v1375_v7 = vmax.f32 %v1087_v41, %v1367_v43  ;;  %v1377_v3 = vmax.f32 %v1089_v42, %v1369_v56 }
 0x12b   : > { %v1504_v22 = vpop.f32.mrf.mxu0  ;;  %v1546_v13 = vadd.f32 %v1545_v8, %v2690_v45 }
 0x12c   : > { %v1547_v49 = vpop.f32.mrf.mxu1  ;;  %v1505_v18 = vadd.f32 %v1504_v22, %v2588_v28 }
 0x12d   : > { %v1584_v38 = vpop.f32.mrf.mxu0  ;;  %v1548_v19 = vadd.f32 %v1547_v49, %v2590_v51 }
 0x12e   : > { %v1627_v39 = vpop.f32.mrf.mxu1  ;;  %v1636_v44 = vadd.f32 %v1584_v38, %v1499_v31 }
 0x12f   : > { %v1638_v63 = vadd.f32 %v1627_v39, %v1542_v54  ;;  %v1586_v60 = vpop.f32.mrf.mxu0 }
 0x130   : > { %v1629_v61 = vpop.f32.mrf.mxu1  ;;  %v1644_v62 = vmax.f32 %v1370_v15, %v1636_v44  ;;  %v1637_v25 = vadd.f32 %v1586_v60, %v1501_v48 }
 0x131   : > { %v1646_v24 = vmax.f32 %v1372_v32, %v1638_v63  ;;  %v1639_v0 = vadd.f32 %v1629_v61, %v1544_v37  ;;  %v1588_v46 = vpop.f32.mrf.mxu0 }
 0x132   : > { %v1631_v26 = vpop.f32.mrf.mxu1  ;;  %v1674_v27 = vadd.f32 %v2592_v57, %v1644_v62  ;;  %v1645_v17 = vmax.f32 %v1371_v2, %v1637_v25  ;;  %v1640_v20 = vadd.f32 %v1588_v46, %v1503_v4 }
 0x133   : > { %v1676_v11 = vadd.f32 %v2594_v58, %v1646_v24  ;;  %v1647_v12 = vmax.f32 %v1373_v59, %v1639_v0  ;;  %v1642_v9 = vadd.f32 %v1631_v26, %v1546_v13  ;;  %v1590_v10 = vpop.f32.mrf.mxu0 }
 0x134   : > { %v1633_v21 = vpop.f32.mrf.mxu1  ;;  %v1675_v8 = vadd.f32 %v2600_v14, %v1645_v17  ;;  %v1648_v23 = vmax.f32 %v1374_v1, %v1640_v20  ;;  %v1641_v53 = vadd.f32 %v1590_v10, %v1505_v18  ;;  %v1682_v31 = vmax.f32 %v1674_v27, 0.0 }
 0x135   : > { %v1677_v50 = vadd.f32 %v2602_v16, %v1647_v12  ;;  %v1650_v29 = vmax.f32 %v1376_v5, %v1642_v9  ;;  %v1643_v30 = vadd.f32 %v1633_v21, %v1548_v19  ;;  %v1684_v54 = vmax.f32 %v1676_v11, 0.0 }
 0x136   : > { %v1683_v28 = vmax.f32 %v1675_v8, 0.0  ;;  %v1678_v51 = vadd.f32 %v2592_v57, %v1648_v23  ;;  %v1649_v42 = vmax.f32 %v1375_v7, %v1641_v53 }
 0x137   : > { %v1685_v22 = vmax.f32 %v1677_v50, 0.0  ;;  %v1680_v41 = vadd.f32 %v2594_v58, %v1650_v29  ;;  %v1651_v49 = vmax.f32 %v1377_v3, %v1643_v30 }
 0x138   : > { %v1939_v15 = vpack.c.bf16 %v1683_v28, %v1682_v31  ;;  %v1679_v33 = vadd.f32 %v2600_v14, %v1649_v42  ;;  %v1686_v35 = vmax.f32 %v1678_v51, 0.0 }
 0x139   : > { %v1940_v32 = vpack.c.bf16 %v1685_v22, %v1684_v54  ;;  %v1681_v34 = vadd.f32 %v2602_v16, %v1651_v49  ;;  %v1688_v36 = vmax.f32 %v1680_v41, 0.0 }
 0x13a   : > { %1714 = vst [vmem:[%s170_s21] sm:$0xff] %v1939_v15  ;;  %v1687_v38 = vmax.f32 %v1679_v33, 0.0 }
 0x13b   : > { %1718 = vst.msk [vmem:[%s170_s21 + $0x8] sm:$0xff] %vm1717_vm4, %v1940_v32  ;;  %v1689_v39 = vmax.f32 %v1681_v34, 0.0 }
 0x13c   : > { %v1941_v57 = vpack.c.bf16 %v1687_v38, %v1686_v35 }
 0x13d   : > { %v1942_v47 = vpack.c.bf16 %v1689_v39, %v1688_v36 }
 0x13e   : > { %1719 = vst [vmem:[%s170_s21 + $0x10] sm:$0x77] %v1941_v57 }
 0x13f   : > { %1723 = vst.msk [vmem:[%s170_s21 + $0x18] sm:$0x77] %vm1722_vm7, %v1942_v47 }
 0x140 PF: > { %s13_s12 = sadd.s32 1, %s2034_s12  }
 0x141   : > { %p10_p4 = scmp.ge.s32.totalorder %s13_s12, 4  }
 0x143   :  { %12 = sbr.rel (!%p10_p4) target bundleno = 1 (0x1), region = 68 }

// kernel: cnn_forward.5
= control target key start
LH: loop header
LB: loop body
LE: loop exit
PB: predicated region body
PF: predicated region fallthrough
CT: control target
= control target key end

     0   :  { %v489_v28 = vlaneseq  ;;  %v3549_v36 = vmov 1966171168   ;;  %s4337_s0 = inlined_call_operand.vmem [shape: bf16[2,3584], index: 0, kind: input, shape index: {}]   ;;  %s4338_s1 = inlined_call_operand.vmem [shape: bf16[3584,128], index: 1, kind: input, shape index: {}]   ;;  %s4339_s2 = inlined_call_operand.vmem [shape: f32[1,128], index: 2, kind: input, shape index: {}]   ;;  %s4340_s3 = inlined_call_operand.vmem [shape: bf16[128,128], index: 3, kind: input, shape index: {}]   ;;  %s4341_s4 = inlined_call_operand.vmem [shape: f32[1,128], index: 4, kind: input, shape index: {}]   ;;  %s4342_s5 = inlined_call_operand.hbm [shape: f32[2,128], index: 5, kind: output, shape index: {}]  }
   0x1   :  { %v3292_v0 = vld [vmem:[%s4338_s1 + $0x78] sm:$0xff]   ;;  %v3296_v4 = vld [vmem:[%s4338_s1 + $0x70] sm:$0xff]   ;;  %v3300_v8 = vld [vmem:[%s4338_s1 + $0x68] sm:$0xff]   ;;  %v487_v37 = vunpack.c.l.s4 %v3549_v36 }
   0x2   :  { %v3293_v1 = vld [vmem:[%s4338_s1 + $0xf8] sm:$0xff]   ;;  %2951 = vmatprep.subr.bf16.mxu0 %v3292_v0  ;;  %v3297_v5 = vld [vmem:[%s4338_s1 + $0xf0] sm:$0xff]   ;;  %v3301_v9 = vld [vmem:[%s4338_s1 + $0xe8] sm:$0xff]   ;;  %v490_v33 = vshrl.u32 %v489_v28, 7 }
   0x3   :  { %v3294_v2 = vld [vmem:[%s4338_s1 + $0x38] sm:$0xff]   ;;  %2973 = vmatprep.subr.bf16.mxu1 %v3293_v1  ;;  %v3298_v6 = vld [vmem:[%s4338_s1 + $0x30] sm:$0xff]   ;;  %v3302_v10 = vld [vmem:[%s4338_s1 + $0x28] sm:$0xff]   ;;  %v488_v40 = vunpack.c.0.s8 %v487_v37 }
   0x4   :  { %v3295_v3 = vld [vmem:[%s4338_s1 + $0xb8] sm:$0xff]   ;;  %2952 = vmatpush3.bf16.msra.mxu0 %v3294_v2  ;;  %v3299_v7 = vld [vmem:[%s4338_s1 + $0xb0] sm:$0xff]   ;;  %v3303_v11 = vld [vmem:[%s4338_s1 + $0xa8] sm:$0xff]  }
   0x5   :  { %2974 = vmatpush3.bf16.msra.mxu1 %v3295_v3  ;;  %2953 = vmatprep.subr.bf16.mxu0 %v3296_v4  ;;  %v3304_v12 = vld [vmem:[%s4338_s1 + $0x60] sm:$0xff]   ;;  %v3308_v16 = vld [vmem:[%s4338_s1 + $0x58] sm:$0xff]   ;;  %v3312_v20 = vld [vmem:[%s4338_s1 + $0x50] sm:$0xff]   ;;  %v3688_v41 = vsub.s32 %v488_v40, %v490_v33 }
   0x6   :  { %2975 = vmatprep.subr.bf16.mxu1 %v3297_v5  ;;  %v3305_v13 = vld [vmem:[%s4338_s1 + $0xe0] sm:$0xff]   ;;  %v3309_v17 = vld [vmem:[%s4338_s1 + $0xd8] sm:$0xff]   ;;  %v3313_v21 = vld [vmem:[%s4338_s1 + $0xd0] sm:$0xff]  }
   0x7   :  { %v3306_v14 = vld [vmem:[%s4338_s1 + $0x20] sm:$0xff]   ;;  %v3310_v18 = vld [vmem:[%s4338_s1 + $0x18] sm:$0xff]   ;;  %v3314_v22 = vld [vmem:[%s4338_s1 + $0x10] sm:$0xff]  }
   0x8   :  { %2954 = vmatpush3.bf16.msra.mxu0 %v3298_v6  ;;  %v3307_v15 = vld [vmem:[%s4338_s1 + $0xa0] sm:$0xff]   ;;  %v3311_v19 = vld [vmem:[%s4338_s1 + $0x98] sm:$0xff]   ;;  %v3315_v23 = vld [vmem:[%s4338_s1 + $0x90] sm:$0xff]  }
   0x9   :  { %2976 = vmatpush3.bf16.msra.mxu1 %v3299_v7  ;;  %2955 = vmatprep.subr.bf16.mxu0 %v3300_v8  ;;  %v3316_v24 = vld [vmem:[%s4338_s1 + $0x48] sm:$0xff]   ;;  %v3320_v29 = vld [vmem:[%s4338_s1 + $0x40] sm:$0xff]   ;;  %v3325_v35 = vld [vmem:[%s4338_s1 + $0x178] sm:$0xff]  }
   0xa   :  { %2977 = vmatprep.subr.bf16.mxu1 %v3301_v9  ;;  %v3317_v25 = vld [vmem:[%s4338_s1 + $0xc8] sm:$0xff]   ;;  %v3321_v30 = vld [vmem:[%s4338_s1 + $0xc0] sm:$0xff]   ;;  %v3326_v38 = vld [vmem:[%s4338_s1 + $0x1f8] sm:$0xff]  }
   0xb   :  { %v3318_v26 = vld [vmem:[%s4338_s1 + $0x8] sm:$0xff]   ;;  %v3322_v31 = vld [vmem:[%s4338_s1] sm:$0xff]   ;;  %v3327_v47 = vld [vmem:[%s4338_s1 + $0x138] sm:$0xff]  }
   0xc   :  { %2956 = vmatpush3.bf16.msra.mxu0 %v3302_v10  ;;  %v3319_v27 = vld [vmem:[%s4338_s1 + $0x88] sm:$0xff]   ;;  %v3323_v32 = vld [vmem:[%s4338_s1 + $0x80] sm:$0xff]   ;;  %v3328_v49 = vld [vmem:[%s4338_s1 + $0x1b8] sm:$0xff]  }
   0xd   :  { %2978 = vmatpush3.bf16.msra.mxu1 %v3303_v11  ;;  %2957 = vmatprep.subr.bf16.mxu0 %v3304_v12  ;;  %v22_v34 = vld [vmem:[%s4337_s0] sm:$0xff]  ;;  %v3329_v52 = vld [vmem:[%s4338_s1 + $0x170] sm:$0xff]   ;;  %v3333_v58 = vld [vmem:[%s4338_s1 + $0x168] sm:$0xff]  }
   0xe   :  { %2979 = vmatprep.subr.bf16.mxu1 %v3305_v13  ;;  %v485_v39 = vcombine.high %v22_v34, %v22_v34  ;;  %v492_v42 = vrot.slane %v22_v34, %v3688_v41  ;;  %v3330_v54 = vld [vmem:[%s4338_s1 + $0x1f0] sm:$0xff]   ;;  %v3334_v59 = vld [vmem:[%s4338_s1 + $0x1e8] sm:$0xff]   ;;  %v3337_v62 = vld [vmem:[%s4338_s1 + $0x160] sm:$0xff]  }
   0xf   :  { %v3331_v55 = vld [vmem:[%s4338_s1 + $0x130] sm:$0xff]   ;;  %v3335_v60 = vld [vmem:[%s4338_s1 + $0x128] sm:$0xff]   ;;  %v3338_v63 = vld [vmem:[%s4338_s1 + $0x1e0] sm:$0xff]  }
  0x10   :  { %2958 = vmatpush3.bf16.msra.mxu0 %v3306_v14  ;;  %v3692_v43 = vrot.slane %v485_v39, %v3688_v41  ;;  %v500_v44 = vcombine.high %v492_v42, %v492_v42  ;;  %v508_v45 = vrot.slane %v492_v42, %v3688_v41  ;;  %v3332_v57 = vld [vmem:[%s4338_s1 + $0x1b0] sm:$0xff]   ;;  %v3336_v61 = vld [vmem:[%s4338_s1 + $0x1a8] sm:$0xff]   ;;  %v3339_v0 = vld [vmem:[%s4338_s1 + $0x120] sm:$0xff]  }
  0x11   :  { %2980 = vmatpush3.bf16.msra.mxu1 %v3307_v15  ;;  %2959 = vmatprep.subr.bf16.mxu0 %v3308_v16  ;;  %v3340_v1 = vld [vmem:[%s4338_s1 + $0x1a0] sm:$0xff]   ;;  %v3341_v2 = vld [vmem:[%s4338_s1 + $0x158] sm:$0xff]   ;;  %v3345_v6 = vld [vmem:[%s4338_s1 + $0x150] sm:$0xff]  }
  0x12   :  { %2981 = vmatprep.subr.bf16.mxu1 %v3309_v17  ;;  %v501_v46 = vcombine.high %v3692_v43, %v3692_v43  ;;  %v522_v48 = vrot.slane %v500_v44, %v3688_v41  ;;  %v530_v51 = vcombine.high %v508_v45, %v508_v45  ;;  %v3342_v3 = vld [vmem:[%s4338_s1 + $0x1d8] sm:$0xff]   ;;  %v3346_v7 = vld [vmem:[%s4338_s1 + $0x1d0] sm:$0xff]   ;;  %v3349_v10 = vld [vmem:[%s4338_s1 + $0x148] sm:$0xff]  }
  0x13   :  { %v3343_v4 = vld [vmem:[%s4338_s1 + $0x118] sm:$0xff]   ;;  %v3347_v8 = vld [vmem:[%s4338_s1 + $0x110] sm:$0xff]   ;;  %v3350_v11 = vld [vmem:[%s4338_s1 + $0x1c8] sm:$0xff]  }
  0x14   :  { %2960 = vmatpush3.bf16.msra.mxu0 %v3310_v18  ;;  %v529_v50 = vrot.slane %v501_v46, %v3688_v41  ;;  %2060 = vmatprep.mubr.bf16.mxu0 %v522_v48  ;;  %v532_v53 = vcombine.high %v522_v48, %v522_v48  ;;  %v3344_v5 = vld [vmem:[%s4338_s1 + $0x198] sm:$0xff]   ;;  %v3348_v9 = vld [vmem:[%s4338_s1 + $0x190] sm:$0xff]   ;;  %v3351_v12 = vld [vmem:[%s4338_s1 + $0x108] sm:$0xff]   ;;  %v515_v18 = vrot.slane %v3692_v43, %v3688_v41 }
  0x15   :  { %2982 = vmatpush3.bf16.msra.mxu1 %v3311_v19  ;;  %2961 = vmatprep.subr.bf16.mxu0 %v3312_v20  ;;  %v3352_v13 = vld [vmem:[%s4338_s1 + $0x188] sm:$0xff]   ;;  %v3353_v14 = vld [vmem:[%s4338_s1 + $0x140] sm:$0xff]   ;;  %v3357_v19 = vld [vmem:[%s4338_s1 + $0x278] sm:$0xff]  }
  0x16   :  { %2983 = vmatprep.subr.bf16.mxu1 %v3313_v21  ;;  %v533_v56 = vcombine.high %v529_v50, %v529_v50  ;;  %2100 = vmatprep.mubr.bf16.mxu1 %v532_v53  ;;  %v3354_v15 = vld [vmem:[%s4338_s1 + $0x1c0] sm:$0xff]   ;;  %v3358_v20 = vld [vmem:[%s4338_s1 + $0x2f8] sm:$0xff]   ;;  %v3365_v28 = vld [vmem:[%s4338_s1 + $0x268] sm:$0xff]  }
  0x17   :  { %v3355_v16 = vld [vmem:[%s4338_s1 + $0x100] sm:$0xff]   ;;  %v3359_v21 = vld [vmem:[%s4338_s1 + $0x238] sm:$0xff]   ;;  %v3377_v40 = vld [vmem:[%s4338_s1 + $0x250] sm:$0xff]  }
  0x18   :  { %2962 = vmatpush3.bf16.msra.mxu0 %v3314_v22  ;;  %v3356_v17 = vld [vmem:[%s4338_s1 + $0x180] sm:$0xff]   ;;  %v3360_v22 = vld [vmem:[%s4338_s1 + $0x2b8] sm:$0xff]   ;;  %v3378_v42 = vld [vmem:[%s4338_s1 + $0x2d0] sm:$0xff]  }
  0x19   :  { %2984 = vmatpush3.bf16.msra.mxu1 %v3315_v23  ;;  %2963 = vmatprep.subr.bf16.mxu0 %v3316_v24  ;;  %v531_v23 = vcombine.high %v515_v18, %v515_v18  ;;  %v3361_v24 = vld [vmem:[%s4338_s1 + $0x270] sm:$0xff]   ;;  %v3370_v33 = vld [vmem:[%s4338_s1 + $0x2e0] sm:$0xff]   ;;  %v3373_v36 = vld [vmem:[%s4338_s1 + $0x258] sm:$0xff]  }
  0x1a   :  { %2985 = vmatprep.subr.bf16.mxu1 %v3317_v25  ;;  %v3362_v25 = vld [vmem:[%s4338_s1 + $0x2f0] sm:$0xff]   ;;  %v3371_v34 = vld [vmem:[%s4338_s1 + $0x220] sm:$0xff]   ;;  %v3374_v37 = vld [vmem:[%s4338_s1 + $0x2d8] sm:$0xff]  }
  0x1b   :  { %v3376_v39 = vld [vmem:[%s4338_s1 + $0x298] sm:$0xff]   ;;  %v3379_v43 = vld [vmem:[%s4338_s1 + $0x210] sm:$0xff]   ;;  %v23_v46 = vld [vmem:[%s4337_s0 + $0x8] sm:$0xff] }
  0x1c   :  { %2964 = vmatpush3.bf16.msra.mxu0 %v3318_v26  ;;  %v3363_v26 = vld [vmem:[%s4338_s1 + $0x230] sm:$0xff]   ;;  %v541_v48 = vrot.slane %v23_v46, %v3688_v41 }
  0x1d   :  { %2986 = vmatpush3.bf16.msra.mxu1 %v3319_v27  ;;  %2965 = vmatprep.subr.bf16.mxu0 %v3320_v29  ;;  %v3364_v27 = vld [vmem:[%s4338_s1 + $0x2b0] sm:$0xff]   ;;  %v3366_v29 = vld [vmem:[%s4338_s1 + $0x2e8] sm:$0xff]  }
  0x1e   :  { %2987 = vmatprep.subr.bf16.mxu1 %v3321_v30  ;;  %v3367_v30 = vld [vmem:[%s4338_s1 + $0x228] sm:$0xff]   ;;  %v3380_v44 = vld [vmem:[%s4338_s1 + $0x290] sm:$0xff]  }
  0x20   :  { %2966 = vmatpush3.bf16.msra.mxu0 %v3322_v31  ;;  %v3368_v31 = vld [vmem:[%s4338_s1 + $0x2a8] sm:$0xff]  }
  0x21   :  { %2988 = vmatpush3.bf16.msra.mxu1 %v3323_v32  ;;  %2995 = vmatprep.subr.bf16.mxu0 %v3325_v35  ;;  %v3369_v32 = vld [vmem:[%s4338_s1 + $0x260] sm:$0xff]  }
  0x22   :  { %3017 = vmatprep.subr.bf16.mxu1 %v3326_v38  ;;  %v3372_v35 = vld [vmem:[%s4338_s1 + $0x2a0] sm:$0xff]   ;;  %v3375_v38 = vld [vmem:[%s4338_s1 + $0x218] sm:$0xff]  }
  0x23   :  { %2061 = vmatmul.mubr.bf16.vlgmr.msra.gmra.mxu0 %v508_v45  ;;  %v3381_v45 = vld [vmem:[%s4338_s1 + $0x248] sm:$0xff]  }
  0x24   :  { %2996 = vmatpush3.bf16.msra.mxu0 %v3327_v47  ;;  %2101 = vmatmul.mubr.bf16.vlgmr.msra.gmra.mxu1 %v530_v51  ;;  %v3382_v47 = vld [vmem:[%s4338_s1 + $0x2c8] sm:$0xff]  }
  0x25   :  { %2997 = vmatprep.subr.bf16.mxu0 %v3329_v52  ;;  %3018 = vmatpush3.bf16.msra.mxu1 %v3328_v49  ;;  %v534_v49 = vcombine.high %v23_v46, %v23_v46  ;;  %v3384_v51 = vld [vmem:[%s4338_s1 + $0x288] sm:$0xff]   ;;  %v549_v52 = vcombine.high %v541_v48, %v541_v48 }
  0x26   :  { %2140 = vmatprep.mubr.bf16.mxu0 %v529_v50  ;;  %3019 = vmatprep.subr.bf16.mxu1 %v3330_v54  ;;  %v3383_v50 = vld [vmem:[%s4338_s1 + $0x208] sm:$0xff]   ;;  %v3385_v54 = vld [vmem:[%s4338_s1 + $0x240] sm:$0xff]  }
  0x27   :  { %2180 = vmatprep.mubr.bf16.mxu1 %v533_v56  ;;  %v3880_v53 = vrot.slane %v534_v49, %v3688_v41  ;;  %v571_v56 = vrot.slane %v549_v52, %v3688_v41  ;;  %v3432_v46 = vld [vmem:[%s4338_s1 + $0x428] sm:$0xff]   ;;  %v3435_v49 = vld [vmem:[%s4338_s1 + $0x4e0] sm:$0xff]   ;;  %v3438_v52 = vld [vmem:[%s4338_s1 + $0x458] sm:$0xff]  }
  0x28   :  { %2998 = vmatpush3.bf16.msra.mxu0 %v3331_v55  ;;  %v3386_v55 = vld [vmem:[%s4338_s1 + $0x2c0] sm:$0xff]  }
  0x29   :  { %2999 = vmatprep.subr.bf16.mxu0 %v3333_v58  ;;  %3020 = vmatpush3.bf16.msra.mxu1 %v3332_v57  ;;  %v550_v57 = vcombine.high %v3880_v53, %v3880_v53  ;;  %v3387_v58 = vld [vmem:[%s4338_s1 + $0x200] sm:$0xff]  }
  0x2a   :  { %3021 = vmatprep.subr.bf16.mxu1 %v3334_v59  ;;  %v3388_v59 = vld [vmem:[%s4338_s1 + $0x280] sm:$0xff]  }
  0x2c   :  { %3000 = vmatpush3.bf16.msra.mxu0 %v3335_v60  ;;  %v581_v60 = vcombine.high %v571_v56, %v571_v56 }
  0x2d   :  { %3001 = vmatprep.subr.bf16.mxu0 %v3337_v62  ;;  %3022 = vmatpush3.bf16.msra.mxu1 %v3336_v61  ;;  %v557_v61 = vrot.slane %v541_v48, %v3688_v41  ;;  %v3389_v62 = vld [vmem:[%s4338_s1 + $0x378] sm:$0xff]   ;;  %v3434_v48 = vld [vmem:[%s4338_s1 + $0x460] sm:$0xff]  }
  0x2e   :  { %3023 = vmatprep.subr.bf16.mxu1 %v3338_v63  ;;  %v3390_v63 = vld [vmem:[%s4338_s1 + $0x3f8] sm:$0xff]  }
  0x30   :  { %3002 = vmatpush3.bf16.msra.mxu0 %v3339_v0  ;;  %v578_v0 = vrot.slane %v550_v57, %v3688_v41  ;;  %v3443_v57 = vld [vmem:[%s4338_s1 + $0x4d0] sm:$0xff]  }
  0x31   :  { %3003 = vmatprep.subr.bf16.mxu0 %v3341_v2  ;;  %3024 = vmatpush3.bf16.msra.mxu1 %v3340_v1  ;;  %v3391_v1 = vld [vmem:[%s4338_s1 + $0x338] sm:$0xff]  }
  0x32   :  { %3025 = vmatprep.subr.bf16.mxu1 %v3342_v3  ;;  %v3392_v2 = vld [vmem:[%s4338_s1 + $0x3b8] sm:$0xff]   ;;  %v579_v3 = vcombine.high %v557_v61, %v557_v61 }
  0x34   :  { %3004 = vmatpush3.bf16.msra.mxu0 %v3343_v4  ;;  %v3393_v4 = vld [vmem:[%s4338_s1 + $0x370] sm:$0xff]  }
  0x35   :  { %3005 = vmatprep.subr.bf16.mxu0 %v3345_v6  ;;  %3026 = vmatpush3.bf16.msra.mxu1 %v3344_v5  ;;  %v3394_v5 = vld [vmem:[%s4338_s1 + $0x3f0] sm:$0xff]   ;;  %v582_v6 = vcombine.high %v578_v0, %v578_v0 }
  0x36   :  { %3027 = vmatprep.subr.bf16.mxu1 %v3346_v7  ;;  %v3395_v7 = vld [vmem:[%s4338_s1 + $0x330] sm:$0xff]  }
  0x38   :  { %3006 = vmatpush3.bf16.msra.mxu0 %v3347_v8  ;;  %v3396_v8 = vld [vmem:[%s4338_s1 + $0x3b0] sm:$0xff]  }
  0x39   :  { %3007 = vmatprep.subr.bf16.mxu0 %v3349_v10  ;;  %3028 = vmatpush3.bf16.msra.mxu1 %v3348_v9  ;;  %v3397_v9 = vld [vmem:[%s4338_s1 + $0x368] sm:$0xff]  }
  0x3a   :  { %3029 = vmatprep.subr.bf16.mxu1 %v3350_v11  ;;  %v3398_v10 = vld [vmem:[%s4338_s1 + $0x3e8] sm:$0xff]  }
  0x3b   :  { %v3399_v11 = vld [vmem:[%s4338_s1 + $0x328] sm:$0xff]  }
  0x3c   :  { %3008 = vmatpush3.bf16.msra.mxu0 %v3351_v12  ;;  %v3400_v12 = vld [vmem:[%s4338_s1 + $0x3a8] sm:$0xff]  }
  0x3d   :  { %3009 = vmatprep.subr.bf16.mxu0 %v3353_v14  ;;  %3030 = vmatpush3.bf16.msra.mxu1 %v3352_v13  ;;  %v3401_v13 = vld [vmem:[%s4338_s1 + $0x360] sm:$0xff]  }
  0x3e   :  { %3031 = vmatprep.subr.bf16.mxu1 %v3354_v15  ;;  %v3402_v14 = vld [vmem:[%s4338_s1 + $0x3e0] sm:$0xff]  }
  0x3f   :  { %v3403_v15 = vld [vmem:[%s4338_s1 + $0x320] sm:$0xff]  }
  0x40   :  { %3010 = vmatpush3.bf16.msra.mxu0 %v3355_v16  ;;  %v3404_v16 = vld [vmem:[%s4338_s1 + $0x3a0] sm:$0xff]  }
  0x41   :  { %3039 = vmatprep.subr.bf16.mxu0 %v3357_v19  ;;  %3032 = vmatpush3.bf16.msra.mxu1 %v3356_v17  ;;  %v3405_v17 = vld [vmem:[%s4338_s1 + $0x358] sm:$0xff]  }
  0x42   :  { %3061 = vmatprep.subr.bf16.mxu1 %v3358_v20  ;;  %v3407_v19 = vld [vmem:[%s4338_s1 + $0x318] sm:$0xff]  }
  0x43   :  { %2141 = vmatmul.mubr.bf16.vlgmr.msra.gmra.mxu0 %v515_v18  ;;  %v3406_v18 = vld [vmem:[%s4338_s1 + $0x3d8] sm:$0xff]  }
  0x44   :  { %3040 = vmatpush3.bf16.msra.mxu0 %v3359_v21  ;;  %2181 = vmatmul.mubr.bf16.vlgmr.msra.gmra.mxu1 %v531_v23  ;;  %v3408_v20 = vld [vmem:[%s4338_s1 + $0x398] sm:$0xff]   ;;  %v3409_v21 = vld [vmem:[%s4338_s1 + $0x350] sm:$0xff]  }
  0x45   :  { %3041 = vmatprep.subr.bf16.mxu0 %v3361_v24  ;;  %3062 = vmatpush3.bf16.msra.mxu1 %v3360_v22  ;;  %v3410_v22 = vld [vmem:[%s4338_s1 + $0x3d0] sm:$0xff]  }
  0x46   :  { %3063 = vmatprep.subr.bf16.mxu1 %v3362_v25  ;;  %2220 = vmatprep.mubr.bf16.mxu0 %v571_v56  ;;  %v3411_v23 = vld [vmem:[%s4338_s1 + $0x310] sm:$0xff]   ;;  %v3413_v25 = vld [vmem:[%s4338_s1 + $0x348] sm:$0xff]  }
  0x47   :  { %2260 = vmatprep.mubr.bf16.mxu1 %v581_v60  ;;  %v3412_v24 = vld [vmem:[%s4338_s1 + $0x390] sm:$0xff]   ;;  %v3446_v60 = vld [vmem:[%s4338_s1 + $0x448] sm:$0xff]  }
  0x48   :  { %3042 = vmatpush3.bf16.msra.mxu0 %v3363_v26  ;;  %v3414_v26 = vld [vmem:[%s4338_s1 + $0x3c8] sm:$0xff]   ;;  %v3442_v56 = vld [vmem:[%s4338_s1 + $0x450] sm:$0xff]  }
  0x49   :  { %3043 = vmatprep.subr.bf16.mxu0 %v3365_v28  ;;  %3064 = vmatpush3.bf16.msra.mxu1 %v3364_v27  ;;  %v3415_v27 = vld [vmem:[%s4338_s1 + $0x308] sm:$0xff]  }
  0x4a   :  { %3065 = vmatprep.subr.bf16.mxu1 %v3366_v29  ;;  %v3416_v28 = vld [vmem:[%s4338_s1 + $0x388] sm:$0xff]   ;;  %v3417_v29 = vld [vmem:[%s4338_s1 + $0x340] sm:$0xff]  }
  0x4c   :  { %3044 = vmatpush3.bf16.msra.mxu0 %v3367_v30  ;;  %v3418_v30 = vld [vmem:[%s4338_s1 + $0x3c0] sm:$0xff]  }
  0x4d   :  { %3045 = vmatprep.subr.bf16.mxu0 %v3369_v32  ;;  %3066 = vmatpush3.bf16.msra.mxu1 %v3368_v31  ;;  %v3419_v31 = vld [vmem:[%s4338_s1 + $0x300] sm:$0xff]  }
  0x4e   :  { %3067 = vmatprep.subr.bf16.mxu1 %v3370_v33  ;;  %v3420_v32 = vld [vmem:[%s4338_s1 + $0x380] sm:$0xff]   ;;  %v564_v33 = vrot.slane %v3880_v53, %v3688_v41  ;;  %v3439_v53 = vld [vmem:[%s4338_s1 + $0x4d8] sm:$0xff]  }
  0x50   :  { %3046 = vmatpush3.bf16.msra.mxu0 %v3371_v34  ;;  %v3422_v34 = vld [vmem:[%s4338_s1 + $0x478] sm:$0xff]  }
  0x51   :  { %3047 = vmatprep.subr.bf16.mxu0 %v3373_v36  ;;  %3068 = vmatpush3.bf16.msra.mxu1 %v3372_v35  ;;  %v3423_v35 = vld [vmem:[%s4338_s1 + $0x4f8] sm:$0xff]  }
  0x52   :  { %3069 = vmatprep.subr.bf16.mxu1 %v3374_v37  ;;  %v3424_v36 = vld [vmem:[%s4338_s1 + $0x438] sm:$0xff]  }
  0x53   :  { %v3425_v37 = vld [vmem:[%s4338_s1 + $0x4b8] sm:$0xff]  }
  0x54   :  { %3048 = vmatpush3.bf16.msra.mxu0 %v3375_v38  ;;  %v580_v38 = vcombine.high %v564_v33, %v564_v33 }
  0x55   :  { %3049 = vmatprep.subr.bf16.mxu0 %v3377_v40  ;;  %3070 = vmatpush3.bf16.msra.mxu1 %v3376_v39  ;;  %v3426_v39 = vld [vmem:[%s4338_s1 + $0x470] sm:$0xff]  }
  0x56   :  { %3071 = vmatprep.subr.bf16.mxu1 %v3378_v42  ;;  %v3427_v40 = vld [vmem:[%s4338_s1 + $0x4f0] sm:$0xff]  }
  0x57   :  { %v3428_v42 = vld [vmem:[%s4338_s1 + $0x430] sm:$0xff]  }
  0x58   :  { %3050 = vmatpush3.bf16.msra.mxu0 %v3379_v43  ;;  %v3429_v43 = vld [vmem:[%s4338_s1 + $0x4b0] sm:$0xff]  }
  0x59   :  { %3051 = vmatprep.subr.bf16.mxu0 %v3381_v45  ;;  %3072 = vmatpush3.bf16.msra.mxu1 %v3380_v44  ;;  %v3430_v44 = vld [vmem:[%s4338_s1 + $0x468] sm:$0xff]  }
  0x5a   :  { %3073 = vmatprep.subr.bf16.mxu1 %v3382_v47  ;;  %v3431_v45 = vld [vmem:[%s4338_s1 + $0x4e8] sm:$0xff]  }
  0x5b   :  { %v3433_v47 = vld [vmem:[%s4338_s1 + $0x4a8] sm:$0xff]  }
  0x5c   :  { %3052 = vmatpush3.bf16.msra.mxu0 %v3383_v50  ;;  %v3436_v50 = vld [vmem:[%s4338_s1 + $0x420] sm:$0xff]  }
  0x5d   :  { %3053 = vmatprep.subr.bf16.mxu0 %v3385_v54  ;;  %3074 = vmatpush3.bf16.msra.mxu1 %v3384_v51  ;;  %v3437_v51 = vld [vmem:[%s4338_s1 + $0x4a0] sm:$0xff]   ;;  %v3440_v54 = vld [vmem:[%s4338_s1 + $0x418] sm:$0xff]  }
  0x5e   :  { %3075 = vmatprep.subr.bf16.mxu1 %v3386_v55  ;;  %v3441_v55 = vld [vmem:[%s4338_s1 + $0x498] sm:$0xff]  }
  0x60   :  { %3054 = vmatpush3.bf16.msra.mxu0 %v3387_v58  ;;  %v3444_v58 = vld [vmem:[%s4338_s1 + $0x410] sm:$0xff]  }
  0x61   :  { %3083 = vmatprep.subr.bf16.mxu0 %v3389_v62  ;;  %3076 = vmatpush3.bf16.msra.mxu1 %v3388_v59  ;;  %v3445_v59 = vld [vmem:[%s4338_s1 + $0x490] sm:$0xff]   ;;  %v3447_v62 = vld [vmem:[%s4338_s1 + $0x4c8] sm:$0xff]  }
  0x62   :  { %3105 = vmatprep.subr.bf16.mxu1 %v3390_v63 }
  0x63   :  { %2221 = vmatmul.mubr.bf16.vlgmr.msra.gmra.mxu0 %v557_v61  ;;  %v24_v61 = vld [vmem:[%s4337_s0 + $0x10] sm:$0xff] }
  0x64   :  { %3084 = vmatpush3.bf16.msra.mxu0 %v3391_v1  ;;  %2300 = vmatprep.mubr.bf16.mxu0 %v578_v0  ;;  %v590_v63 = vrot.slane %v24_v61, %v3688_v41  ;;  %v583_v0 = vcombine.high %v24_v61, %v24_v61  ;;  %v3448_v1 = vld [vmem:[%s4338_s1 + $0x408] sm:$0xff]  }
  0x65   :  { %2261 = vmatmul.mubr.bf16.vlgmr.msra.gmra.mxu1 %v579_v3  ;;  %3085 = vmatprep.subr.bf16.mxu0 %v3393_v4  ;;  %v3497_v61 = vld [vmem:[%s4338_s1 + $0x628] sm:$0xff]  }
  0x66   :  { %3106 = vmatpush3.bf16.msra.mxu1 %v3392_v2  ;;  %2340 = vmatprep.mubr.bf16.mxu1 %v582_v6  ;;  %v3449_v2 = vld [vmem:[%s4338_s1 + $0x488] sm:$0xff]   ;;  %v598_v3 = vcombine.high %v590_v63, %v590_v63  ;;  %v4086_v4 = vrot.slane %v583_v0, %v3688_v41  ;;  %v3451_v6 = vld [vmem:[%s4338_s1 + $0x4c0] sm:$0xff]  }
  0x67   :  { %3107 = vmatprep.subr.bf16.mxu1 %v3394_v5  ;;  %v3450_v5 = vld [vmem:[%s4338_s1 + $0x440] sm:$0xff]  }
  0x68   :  { %3086 = vmatpush3.bf16.msra.mxu0 %v3395_v7  ;;  %v620_v7 = vrot.slane %v598_v3, %v3688_v41  ;;  %v3500_v0 = vld [vmem:[%s4338_s1 + $0x6e0] sm:$0xff]   ;;  %v3503_v3 = vld [vmem:[%s4338_s1 + $0x658] sm:$0xff]  }
  0x69   :  { %3087 = vmatprep.subr.bf16.mxu0 %v3397_v9  ;;  %v3452_v9 = vld [vmem:[%s4338_s1 + $0x400] sm:$0xff]  }
  0x6a   :  { %3108 = vmatpush3.bf16.msra.mxu1 %v3396_v8  ;;  %v599_v8 = vcombine.high %v4086_v4, %v4086_v4 }
  0x6b   :  { %3109 = vmatprep.subr.bf16.mxu1 %v3398_v10  ;;  %v3453_v10 = vld [vmem:[%s4338_s1 + $0x480] sm:$0xff]  }
  0x6c   :  { %3088 = vmatpush3.bf16.msra.mxu0 %v3399_v11  ;;  %v630_v11 = vcombine.high %v620_v7, %v620_v7 }
  0x6d   :  { %3089 = vmatprep.subr.bf16.mxu0 %v3401_v13  ;;  %v3454_v13 = vld [vmem:[%s4338_s1 + $0x578] sm:$0xff]  }
  0x6e   :  { %3110 = vmatpush3.bf16.msra.mxu1 %v3400_v12  ;;  %v606_v12 = vrot.slane %v590_v63, %v3688_v41  ;;  %v3499_v63 = vld [vmem:[%s4338_s1 + $0x660] sm:$0xff]  }
  0x6f   :  { %3111 = vmatprep.subr.bf16.mxu1 %v3402_v14  ;;  %v3455_v14 = vld [vmem:[%s4338_s1 + $0x5f8] sm:$0xff]  }
  0x70   :  { %3090 = vmatpush3.bf16.msra.mxu0 %v3403_v15  ;;  %v627_v15 = vrot.slane %v599_v8, %v3688_v41  ;;  %v3508_v8 = vld [vmem:[%s4338_s1 + $0x6d0] sm:$0xff]  }
  0x71   :  { %3091 = vmatprep.subr.bf16.mxu0 %v3405_v17  ;;  %v3457_v17 = vld [vmem:[%s4338_s1 + $0x5b8] sm:$0xff]  }
  0x72   :  { %3112 = vmatpush3.bf16.msra.mxu1 %v3404_v16  ;;  %v3456_v16 = vld [vmem:[%s4338_s1 + $0x538] sm:$0xff]  }
  0x73   :  { %3113 = vmatprep.subr.bf16.mxu1 %v3406_v18  ;;  %v628_v18 = vcombine.high %v606_v12, %v606_v12 }
  0x74   :  { %3092 = vmatpush3.bf16.msra.mxu0 %v3407_v19  ;;  %v3458_v19 = vld [vmem:[%s4338_s1 + $0x570] sm:$0xff]  }
  0x75   :  { %3093 = vmatprep.subr.bf16.mxu0 %v3409_v21  ;;  %v631_v21 = vcombine.high %v627_v15, %v627_v15 }
  0x76   :  { %3114 = vmatpush3.bf16.msra.mxu1 %v3408_v20  ;;  %v3459_v20 = vld [vmem:[%s4338_s1 + $0x5f0] sm:$0xff]  }
  0x77   :  { %3115 = vmatprep.subr.bf16.mxu1 %v3410_v22  ;;  %v3460_v22 = vld [vmem:[%s4338_s1 + $0x530] sm:$0xff]  }
  0x78   :  { %3094 = vmatpush3.bf16.msra.mxu0 %v3411_v23  ;;  %v3461_v23 = vld [vmem:[%s4338_s1 + $0x5b0] sm:$0xff]  }
  0x79   :  { %3095 = vmatprep.subr.bf16.mxu0 %v3413_v25  ;;  %v3463_v25 = vld [vmem:[%s4338_s1 + $0x5e8] sm:$0xff]  }
  0x7a   :  { %3116 = vmatpush3.bf16.msra.mxu1 %v3412_v24  ;;  %v3462_v24 = vld [vmem:[%s4338_s1 + $0x568] sm:$0xff]  }
  0x7b   :  { %3117 = vmatprep.subr.bf16.mxu1 %v3414_v26  ;;  %v3464_v26 = vld [vmem:[%s4338_s1 + $0x528] sm:$0xff]  }
  0x7c   :  { %3096 = vmatpush3.bf16.msra.mxu0 %v3415_v27  ;;  %v3465_v27 = vld [vmem:[%s4338_s1 + $0x5a8] sm:$0xff]  }
  0x7d   :  { %3097 = vmatprep.subr.bf16.mxu0 %v3417_v29  ;;  %v3467_v29 = vld [vmem:[%s4338_s1 + $0x5e0] sm:$0xff]  }
  0x7e   :  { %3118 = vmatpush3.bf16.msra.mxu1 %v3416_v28  ;;  %v3466_v28 = vld [vmem:[%s4338_s1 + $0x560] sm:$0xff]  }
  0x7f   :  { %3119 = vmatprep.subr.bf16.mxu1 %v3418_v30  ;;  %v3468_v30 = vld [vmem:[%s4338_s1 + $0x520] sm:$0xff]  }
  0x80   :  { %3098 = vmatpush3.bf16.msra.mxu0 %v3419_v31  ;;  %v3469_v31 = vld [vmem:[%s4338_s1 + $0x5a0] sm:$0xff]  }
  0x81   :  { %3127 = vmatprep.subr.bf16.mxu0 %v3422_v34  ;;  %v3472_v34 = vld [vmem:[%s4338_s1 + $0x518] sm:$0xff]  }
  0x82   :  { %3120 = vmatpush3.bf16.msra.mxu1 %v3420_v32  ;;  %v3470_v32 = vld [vmem:[%s4338_s1 + $0x558] sm:$0xff]  }
  0x83   :  { %2301 = vmatmul.mubr.bf16.vlgmr.msra.gmra.mxu0 %v564_v33  ;;  %3149 = vmatprep.subr.bf16.mxu1 %v3423_v35  ;;  %v3471_v33 = vld [vmem:[%s4338_s1 + $0x5d8] sm:$0xff]  }
  0x84   :  { %3128 = vmatpush3.bf16.msra.mxu0 %v3424_v36  ;;  %2380 = vmatprep.mubr.bf16.mxu0 %v620_v7  ;;  %v3473_v35 = vld [vmem:[%s4338_s1 + $0x598] sm:$0xff]   ;;  %v3474_v36 = vld [vmem:[%s4338_s1 + $0x550] sm:$0xff]  }
  0x85   :  { %2341 = vmatmul.mubr.bf16.vlgmr.msra.gmra.mxu1 %v580_v38  ;;  %3129 = vmatprep.subr.bf16.mxu0 %v3426_v39  ;;  %v3476_v38 = vld [vmem:[%s4338_s1 + $0x510] sm:$0xff]  }
  0x86   :  { %3150 = vmatpush3.bf16.msra.mxu1 %v3425_v37  ;;  %2420 = vmatprep.mubr.bf16.mxu1 %v630_v11  ;;  %v3475_v37 = vld [vmem:[%s4338_s1 + $0x5d0] sm:$0xff]   ;;  %v3511_v11 = vld [vmem:[%s4338_s1 + $0x648] sm:$0xff]  }
  0x87   :  { %3151 = vmatprep.subr.bf16.mxu1 %v3427_v40  ;;  %v3477_v39 = vld [vmem:[%s4338_s1 + $0x590] sm:$0xff]   ;;  %v3478_v40 = vld [vmem:[%s4338_s1 + $0x548] sm:$0xff]  }
  0x88   :  { %3130 = vmatpush3.bf16.msra.mxu0 %v3428_v42  ;;  %v3479_v42 = vld [vmem:[%s4338_s1 + $0x5c8] sm:$0xff]   ;;  %v3507_v7 = vld [vmem:[%s4338_s1 + $0x650] sm:$0xff]  }
  0x89   :  { %3131 = vmatprep.subr.bf16.mxu0 %v3430_v44  ;;  %v3481_v44 = vld [vmem:[%s4338_s1 + $0x588] sm:$0xff]  }
  0x8a   :  { %3152 = vmatpush3.bf16.msra.mxu1 %v3429_v43  ;;  %v3480_v43 = vld [vmem:[%s4338_s1 + $0x508] sm:$0xff]  }
  0x8b   :  { %3153 = vmatprep.subr.bf16.mxu1 %v3431_v45  ;;  %v3482_v45 = vld [vmem:[%s4338_s1 + $0x540] sm:$0xff]  }
  0x8c   :  { %3132 = vmatpush3.bf16.msra.mxu0 %v3432_v46  ;;  %v3483_v46 = vld [vmem:[%s4338_s1 + $0x5c0] sm:$0xff]  }
  0x8d   :  { %3133 = vmatprep.subr.bf16.mxu0 %v3434_v48  ;;  %v3485_v48 = vld [vmem:[%s4338_s1 + $0x580] sm:$0xff]  }
  0x8e   :  { %3154 = vmatpush3.bf16.msra.mxu1 %v3433_v47  ;;  %v3484_v47 = vld [vmem:[%s4338_s1 + $0x500] sm:$0xff]  }
  0x8f   :  { %3155 = vmatprep.subr.bf16.mxu1 %v3435_v49  ;;  %v613_v49 = vrot.slane %v4086_v4, %v3688_v41  ;;  %v3504_v4 = vld [vmem:[%s4338_s1 + $0x6d8] sm:$0xff]  }
  0x90   :  { %3134 = vmatpush3.bf16.msra.mxu0 %v3436_v50  ;;  %v3487_v50 = vld [vmem:[%s4338_s1 + $0x678] sm:$0xff]  }
  0x91   :  { %3135 = vmatprep.subr.bf16.mxu0 %v3438_v52  ;;  %v3489_v52 = vld [vmem:[%s4338_s1 + $0x638] sm:$0xff]  }
  0x92   :  { %3156 = vmatpush3.bf16.msra.mxu1 %v3437_v51  ;;  %v3488_v51 = vld [vmem:[%s4338_s1 + $0x6f8] sm:$0xff]  }
  0x93   :  { %3157 = vmatprep.subr.bf16.mxu1 %v3439_v53  ;;  %v3490_v53 = vld [vmem:[%s4338_s1 + $0x6b8] sm:$0xff]  }
  0x94   :  { %3136 = vmatpush3.bf16.msra.mxu0 %v3440_v54  ;;  %v629_v54 = vcombine.high %v613_v49, %v613_v49 }
  0x95   :  { %3137 = vmatprep.subr.bf16.mxu0 %v3442_v56  ;;  %v3492_v56 = vld [vmem:[%s4338_s1 + $0x6f0] sm:$0xff]  }
  0x96   :  { %3158 = vmatpush3.bf16.msra.mxu1 %v3441_v55  ;;  %v3491_v55 = vld [vmem:[%s4338_s1 + $0x670] sm:$0xff]  }
  0x97   :  { %3159 = vmatprep.subr.bf16.mxu1 %v3443_v57  ;;  %v3493_v57 = vld [vmem:[%s4338_s1 + $0x630] sm:$0xff]  }
  0x98   :  { %3138 = vmatpush3.bf16.msra.mxu0 %v3444_v58  ;;  %v3494_v58 = vld [vmem:[%s4338_s1 + $0x6b0] sm:$0xff]  }
  0x99   :  { %3139 = vmatprep.subr.bf16.mxu0 %v3446_v60  ;;  %v3496_v60 = vld [vmem:[%s4338_s1 + $0x6e8] sm:$0xff]  }
  0x9a   :  { %3160 = vmatpush3.bf16.msra.mxu1 %v3445_v59  ;;  %v3495_v59 = vld [vmem:[%s4338_s1 + $0x668] sm:$0xff]  }
  0x9b   :  { %3161 = vmatprep.subr.bf16.mxu1 %v3447_v62  ;;  %v3498_v62 = vld [vmem:[%s4338_s1 + $0x6a8] sm:$0xff]  }
  0x9c   :  { %3140 = vmatpush3.bf16.msra.mxu0 %v3448_v1  ;;  %v3501_v1 = vld [vmem:[%s4338_s1 + $0x620] sm:$0xff]  }
  0x9d   :  { %3141 = vmatprep.subr.bf16.mxu0 %v3450_v5  ;;  %v3505_v5 = vld [vmem:[%s4338_s1 + $0x618] sm:$0xff]  }
  0x9e   :  { %3162 = vmatpush3.bf16.msra.mxu1 %v3449_v2  ;;  %v3502_v2 = vld [vmem:[%s4338_s1 + $0x6a0] sm:$0xff]  }
  0x9f   :  { %3163 = vmatprep.subr.bf16.mxu1 %v3451_v6  ;;  %v3506_v6 = vld [vmem:[%s4338_s1 + $0x698] sm:$0xff]  }
  0xa0   :  { %3142 = vmatpush3.bf16.msra.mxu0 %v3452_v9  ;;  %v3509_v9 = vld [vmem:[%s4338_s1 + $0x610] sm:$0xff]  }
  0xa1   :  { %3171 = vmatprep.subr.bf16.mxu0 %v3454_v13  ;;  %v3513_v13 = vld [vmem:[%s4338_s1 + $0x608] sm:$0xff]  }
  0xa2   :  { %3164 = vmatpush3.bf16.msra.mxu1 %v3453_v10  ;;  %v3510_v10 = vld [vmem:[%s4338_s1 + $0x690] sm:$0xff]  }
  0xa3   :  { %2381 = vmatmul.mubr.bf16.vlgmr.msra.gmra.mxu0 %v606_v12  ;;  %3193 = vmatprep.subr.bf16.mxu1 %v3455_v14  ;;  %v3512_v12 = vld [vmem:[%s4338_s1 + $0x6c8] sm:$0xff]   ;;  %v2717_v14 = vld.sshfl [vmem:[%s4337_s0 + $0x18] sm:$0x33 pattern:$0x75316420] }
  0xa4   :  { %3172 = vmatpush3.bf16.msra.mxu0 %v3456_v16  ;;  %2460 = vmatprep.mubr.bf16.mxu0 %v627_v15  ;;  %v3515_v15 = vld [vmem:[%s4338_s1 + $0x640] sm:$0xff]   ;;  %v639_v16 = vcombine.high %v2717_v14, %v2717_v14 }
  0xa5   :  { %2421 = vmatmul.mubr.bf16.vlgmr.msra.gmra.mxu1 %v628_v18  ;;  %3173 = vmatprep.subr.bf16.mxu0 %v3458_v19  ;;  %v3516_v18 = vld [vmem:[%s4338_s1 + $0x6c0] sm:$0xff]  }
  0xa6   :  { %3194 = vmatpush3.bf16.msra.mxu1 %v3457_v17  ;;  %2500 = vmatprep.mubr.bf16.mxu1 %v631_v21  ;;  %v3514_v17 = vld [vmem:[%s4338_s1 + $0x688] sm:$0xff]   ;;  %v653_v19 = vrot.slane %v639_v16, %v3688_v41  ;;  %v3517_v21 = vld [vmem:[%s4338_s1 + $0x600] sm:$0xff]  }
  0xa7   :  { %3195 = vmatprep.subr.bf16.mxu1 %v3459_v20 }
  0xa8   :  { %3174 = vmatpush3.bf16.msra.mxu0 %v3460_v22  ;;  %v655_v20 = vcombine.high %v653_v19, %v653_v19 }
  0xa9   :  { %3175 = vmatprep.subr.bf16.mxu0 %v3462_v24 }
  0xaa   :  { %3196 = vmatpush3.bf16.msra.mxu1 %v3461_v23 }
  0xab   :  { %3197 = vmatprep.subr.bf16.mxu1 %v3463_v25 }
  0xac   :  { %3176 = vmatpush3.bf16.msra.mxu0 %v3464_v26 }
  0xad   :  { %3177 = vmatprep.subr.bf16.mxu0 %v3466_v28 }
  0xae   :  { %3198 = vmatpush3.bf16.msra.mxu1 %v3465_v27 }
  0xaf   :  { %3199 = vmatprep.subr.bf16.mxu1 %v3467_v29 }
  0xb0   :  { %3178 = vmatpush3.bf16.msra.mxu0 %v3468_v30 }
  0xb1   :  { %3179 = vmatprep.subr.bf16.mxu0 %v3470_v32 }
  0xb2   :  { %3200 = vmatpush3.bf16.msra.mxu1 %v3469_v31 }
  0xb3   :  { %3201 = vmatprep.subr.bf16.mxu1 %v3471_v33 }
  0xb4   :  { %3180 = vmatpush3.bf16.msra.mxu0 %v3472_v34 }
  0xb5   :  { %3181 = vmatprep.subr.bf16.mxu0 %v3474_v36 }
  0xb6   :  { %3202 = vmatpush3.bf16.msra.mxu1 %v3473_v35 }
  0xb7   :  { %3203 = vmatprep.subr.bf16.mxu1 %v3475_v37 }
  0xb8   :  { %3182 = vmatpush3.bf16.msra.mxu0 %v3476_v38 }
  0xb9   :  { %3183 = vmatprep.subr.bf16.mxu0 %v3478_v40 }
  0xba   :  { %3204 = vmatpush3.bf16.msra.mxu1 %v3477_v39 }
  0xbb   :  { %3205 = vmatprep.subr.bf16.mxu1 %v3479_v42 }
  0xbc   :  { %3184 = vmatpush3.bf16.msra.mxu0 %v3480_v43 }
  0xbd   :  { %3185 = vmatprep.subr.bf16.mxu0 %v3482_v45 }
  0xbe   :  { %3206 = vmatpush3.bf16.msra.mxu1 %v3481_v44 }
  0xbf   :  { %3207 = vmatprep.subr.bf16.mxu1 %v3483_v46 }
  0xc0   :  { %3186 = vmatpush3.bf16.msra.mxu0 %v3484_v47 }
  0xc1   :  { %3215 = vmatprep.subr.bf16.mxu0 %v3487_v50 }
  0xc2   :  { %3208 = vmatpush3.bf16.msra.mxu1 %v3485_v48 }
  0xc3   :  { %2461 = vmatmul.mubr.bf16.vlgmr.msra.gmra.mxu0 %v613_v49  ;;  %3237 = vmatprep.subr.bf16.mxu1 %v3488_v51 }
  0xc4   :  { %3216 = vmatpush3.bf16.msra.mxu0 %v3489_v52  ;;  %2540 = vmatprep.mubr.bf16.mxu0 %v653_v19 }
  0xc5   :  { %2501 = vmatmul.mubr.bf16.vlgmr.msra.gmra.mxu1 %v629_v54  ;;  %3217 = vmatprep.subr.bf16.mxu0 %v3491_v55 }
  0xc6   :  { %3238 = vmatpush3.bf16.msra.mxu1 %v3490_v53 }
  0xc7   :  { %3239 = vmatprep.subr.bf16.mxu1 %v3492_v56 }
  0xc8   :  { %3218 = vmatpush3.bf16.msra.mxu0 %v3493_v57 }
  0xc9   :  { %3219 = vmatprep.subr.bf16.mxu0 %v3495_v59 }
  0xca   :  { %3240 = vmatpush3.bf16.msra.mxu1 %v3494_v58 }
  0xcb   :  { %3241 = vmatprep.subr.bf16.mxu1 %v3496_v60 }
  0xcc   :  { %3220 = vmatpush3.bf16.msra.mxu0 %v3497_v61 }
  0xcd   :  { %3221 = vmatprep.subr.bf16.mxu0 %v3499_v63 }
  0xce   :  { %3242 = vmatpush3.bf16.msra.mxu1 %v3498_v62 }
  0xcf   :  { %3243 = vmatprep.subr.bf16.mxu1 %v3500_v0 }
  0xd0   :  { %3222 = vmatpush3.bf16.msra.mxu0 %v3501_v1 }
  0xd1   :  { %3223 = vmatprep.subr.bf16.mxu0 %v3503_v3 }
  0xd2   :  { %3244 = vmatpush3.bf16.msra.mxu1 %v3502_v2 }
  0xd3   :  { %3245 = vmatprep.subr.bf16.mxu1 %v3504_v4 }
  0xd4   :  { %3224 = vmatpush3.bf16.msra.mxu0 %v3505_v5 }
  0xd5   :  { %3225 = vmatprep.subr.bf16.mxu0 %v3507_v7 }
  0xd6   :  { %3246 = vmatpush3.bf16.msra.mxu1 %v3506_v6 }
  0xd7   :  { %3247 = vmatprep.subr.bf16.mxu1 %v3508_v8 }
  0xd8   :  { %3226 = vmatpush3.bf16.msra.mxu0 %v3509_v9 }
  0xd9   :  { %3227 = vmatprep.subr.bf16.mxu0 %v3511_v11 }
  0xda   :  { %3248 = vmatpush3.bf16.msra.mxu1 %v3510_v10 }
  0xdb   :  { %3249 = vmatprep.subr.bf16.mxu1 %v3512_v12 }
  0xdc   :  { %3228 = vmatpush3.bf16.msra.mxu0 %v3513_v13 }
  0xdd   :  { %10 = vsyncpa [#allocation3], 0  ;;  %3229 = vmatprep.subr.bf16.mxu0 %v3515_v15  ;;  %2580 = vmatprep.mubr.bf16.mxu1 %v655_v20  ;;  %v646_v22 = vrot.slane %v2717_v14, %v3688_v41  ;;  %v3518_v23 = vld [vmem:[%s4338_s1 + $0x680] sm:$0xff]   ;;  %v3519_v50 = vld [vmem:[%s4340_s3 + $0x38] sm:$0xff]   ;;  %v3550_v51 = vmov 0.0   ;;  %vm3551_vm0 = vmmov 0  }
  0xde   :  { %3250 = vmatpush3.bf16.msra.mxu1 %v3514_v17  ;;  %v2716_v27 = vld [vmem:[%s4339_s2] ss:$0 sm:$0xff]  ;;  %v3520_v52 = vld [vmem:[%s4340_s3 + $0x30] sm:$0xff]   ;;  %v3521_v53 = vld [vmem:[%s4340_s3 + $0x28] sm:$0xff]   ;;  %s3552_s15 = smov [#allocation2]  }
  0xdf   :  { %3251 = vmatprep.subr.bf16.mxu1 %v3516_v18  ;;  %v654_v24 = vcombine.high %v646_v22, %v646_v22  ;;  %v3522_v54 = vld [vmem:[%s4340_s3 + $0x20] sm:$0xff]   ;;  %v3523_v55 = vld [vmem:[%s4340_s3 + $0x18] sm:$0xff]   ;;  %v3524_v59 = vld [vmem:[%s4340_s3 + $0x10] sm:$0xff]   ;;  %s2708_s16 = sshll.u32 %s3552_s15, 4  ;;  %s2709_s16 = int_to_ptr.vmem [resolvable:$true] %s2708_s16 }
  0xe0   :  { %3230 = vmatpush3.bf16.msra.mxu0 %v3517_v21  ;;  %v3525_v3 = vld [vmem:[%s4340_s3 + $0x8] sm:$0xff]   ;;  %v3526_v6 = vld [vmem:[%s4340_s3] sm:$0xff]   ;;  %s3527_s17 = scalar_lea.vmem %s2709_s16, 32  ;;  %p3532_p1 = scmp.lt.s32.totalorder %s2709_s16, %s2709_s16 }
  0xe1   :  { %3268 = vmatprep.subr.bf16.mxu0 %v3550_v51  ;;  %p3528_p0 = scmp.ne.s32.totalorder %s2709_s16, %s3527_s17  ;;  %p3533_p2 = scmp.lt.s32.totalorder %s3527_s17, %s3527_s17 }
  0xe2   :  { %3252 = vmatpush3.bf16.msra.mxu1 %v3518_v23 }
  0xe3   :  { %v2967_v25 = vpop.f32.mrf.mxu0  ;;  %2541 = vmatmul.mubr.bf16.vlgmr.msra.gmra.mxu0 %v646_v22  ;;  %p3534_p3 = por %p3533_p2, %p3532_p1 }
  0xe4   :  { %v2989_v26 = vpop.f32.mrf.mxu1  ;;  %3269 = vmatpush3.bf16.msra.mxu0 %v3519_v50  ;;  %3284 = vmatprep.mubr.msk.bf16.mxu0 %vm3551_vm0, %v3550_v51 }
  0xe5   :  { %2581 = vmatmul.mubr.bf16.vlgmr.msra.gmra.mxu1 %v654_v24  ;;  %v2968_v28 = vpop.f32.mrf.mxu0  ;;  %3270 = vmatprep.subr.bf16.mxu0 %v3550_v51  ;;  %p3535_p4 = pnand %p3534_p3, %p3528_p0 }
  0xe6   :  { %v2969_v29 = vadd.f32 %v2968_v28, %v2967_v25  ;;  %v2990_v41 = vpop.f32.mrf.mxu1 }
  0xe7   :  { %v2970_v30 = vpop.f32.mrf.mxu0  ;;  %v2991_v32 = vadd.f32 %v2990_v41, %v2989_v26 }
  0xe8   :  { %v2063_v31 = vadd.f32 %v2969_v29, %v2716_v27  ;;  %v2992_v33 = vpop.f32.mrf.mxu1  ;;  %3271 = vmatpush3.bf16.msra.mxu0 %v3520_v52 }
  0xe9   :  { %v2971_v34 = vpop.f32.mrf.mxu0  ;;  %3272 = vmatprep.subr.bf16.mxu0 %v3550_v51 }
  0xea   :  { %v2103_v35 = vadd.f32 %v2991_v32, %v2063_v31  ;;  %v2993_v36 = vpop.f32.mrf.mxu1 }
  0xec   :  { %3273 = vmatpush3.bf16.msra.mxu0 %v3521_v53 }
  0xed   :  { %3274 = vmatprep.subr.bf16.mxu0 %v3550_v51 }
  0xf0   :  { %3275 = vmatpush3.bf16.msra.mxu0 %v3522_v54 }
  0xf1   :  { %3276 = vmatprep.subr.bf16.mxu0 %v3550_v51 }
  0xf4   :  { %3277 = vmatpush3.bf16.msra.mxu0 %v3523_v55 }
  0xf5   :  { %3278 = vmatprep.subr.bf16.mxu0 %v3550_v51 }
  0xf8   :  { %3279 = vmatpush3.bf16.msra.mxu0 %v3524_v59 }
  0xf9   :  { %3280 = vmatprep.subr.bf16.mxu0 %v3550_v51 }
  0xfc   :  { %3281 = vmatpush3.bf16.msra.mxu0 %v3525_v3 }
  0xfd   :  { %3282 = vmatprep.subr.bf16.mxu0 %v3550_v51 }
 0x100   :  { %3283 = vmatpush3.bf16.msra.mxu0 %v3526_v6 }
 0x103   :  { %v3011_v37 = vpop.f32.mrf.mxu0 }
 0x104   :  { %v3033_v38 = vpop.f32.mrf.mxu1 }
 0x105   :  { %v3012_v39 = vpop.f32.mrf.mxu0 }
 0x106   :  { %v3013_v40 = vadd.f32 %v3012_v39, %v3011_v37  ;;  %v3034_v42 = vpop.f32.mrf.mxu1 }
 0x107   :  { %v3014_v43 = vpop.f32.mrf.mxu0  ;;  %v3035_v45 = vadd.f32 %v3034_v42, %v3033_v38 }
 0x108   :  { %v2143_v44 = vadd.f32 %v3013_v40, %v2103_v35  ;;  %v3036_v46 = vpop.f32.mrf.mxu1 }
 0x109   :  { %v3015_v47 = vpop.f32.mrf.mxu0 }
 0x10a   :  { %v2183_v48 = vadd.f32 %v3035_v45, %v2143_v44  ;;  %v3037_v49 = vpop.f32.mrf.mxu1 }
 0x123   :  { %v3055_v56 = vpop.f32.mrf.mxu0 }
 0x125   :  { %v3077_v57 = vpop.f32.mrf.mxu1  ;;  %v3056_v58 = vpop.f32.mrf.mxu0 }
 0x126   :  { %v3057_v60 = vadd.f32 %v3056_v58, %v3055_v56 }
 0x127   :  { %v3078_v61 = vpop.f32.mrf.mxu1  ;;  %v3058_v62 = vpop.f32.mrf.mxu0 }
 0x128   :  { %v2223_v63 = vadd.f32 %v3057_v60, %v2183_v48  ;;  %v3079_v0 = vadd.f32 %v3078_v61, %v3077_v57  ;;  %v2942_v57 = vld [vmem:[%s4341_s4] ss:$0 sm:$0xff] }
 0x129   :  { %v3080_v1 = vpop.f32.mrf.mxu1  ;;  %v3059_v2 = vpop.f32.mrf.mxu0 }
 0x12a   :  { %v2263_v4 = vadd.f32 %v3079_v0, %v2223_v63 }
 0x12b   :  { %v3081_v5 = vpop.f32.mrf.mxu1 }
 0x143   :  { %v3099_v7 = vpop.f32.mrf.mxu0 }
 0x145   :  { %v3121_v8 = vpop.f32.mrf.mxu1  ;;  %v3100_v9 = vpop.f32.mrf.mxu0 }
 0x146   :  { %v3101_v10 = vadd.f32 %v3100_v9, %v3099_v7 }
 0x147   :  { %v3122_v11 = vpop.f32.mrf.mxu1  ;;  %v3102_v12 = vpop.f32.mrf.mxu0 }
 0x148   :  { %v2303_v13 = vadd.f32 %v3101_v10, %v2263_v4  ;;  %v3123_v14 = vadd.f32 %v3122_v11, %v3121_v8 }
 0x149   :  { %v3124_v15 = vpop.f32.mrf.mxu1  ;;  %v3103_v16 = vpop.f32.mrf.mxu0 }
 0x14a   :  { %v2343_v17 = vadd.f32 %v3123_v14, %v2303_v13 }
 0x14b   :  { %v3125_v18 = vpop.f32.mrf.mxu1 }
 0x163   :  { %v3143_v19 = vpop.f32.mrf.mxu0 }
 0x165   :  { %v3165_v20 = vpop.f32.mrf.mxu1  ;;  %v3144_v21 = vpop.f32.mrf.mxu0 }
 0x166   :  { %v3145_v34 = vadd.f32 %v3144_v21, %v3143_v19 }
 0x167   :  { %v3166_v22 = vpop.f32.mrf.mxu1  ;;  %v3146_v23 = vpop.f32.mrf.mxu0 }
 0x168   :  { %v2383_v35 = vadd.f32 %v3145_v34, %v2343_v17  ;;  %v3167_v36 = vadd.f32 %v3166_v22, %v3165_v20 }
 0x169   :  { %v3168_v24 = vpop.f32.mrf.mxu1  ;;  %v3147_v25 = vpop.f32.mrf.mxu0 }
 0x16a   :  { %v2423_v38 = vadd.f32 %v3167_v36, %v2383_v35 }
 0x16b   :  { %v3169_v26 = vpop.f32.mrf.mxu1 }
 0x183   :  { %v3187_v27 = vpop.f32.mrf.mxu0 }
 0x185   :  { %v3209_v28 = vpop.f32.mrf.mxu1  ;;  %v3188_v29 = vpop.f32.mrf.mxu0 }
 0x186   :  { %v3189_v37 = vadd.f32 %v3188_v29, %v3187_v27 }
 0x187   :  { %v3210_v41 = vpop.f32.mrf.mxu1  ;;  %v3190_v30 = vpop.f32.mrf.mxu0 }
 0x188   :  { %v2463_v39 = vadd.f32 %v3189_v37, %v2423_v38  ;;  %v3211_v40 = vadd.f32 %v3210_v41, %v3209_v28 }
 0x189   :  { %v3212_v31 = vpop.f32.mrf.mxu1  ;;  %v3191_v32 = vpop.f32.mrf.mxu0 }
 0x18a   :  { %v2503_v45 = vadd.f32 %v3211_v40, %v2463_v39 }
 0x18b   :  { %v3213_v33 = vpop.f32.mrf.mxu1 }
 0x1a3   :  { %v3231_v42 = vpop.f32.mrf.mxu0 }
 0x1a5   :  { %v3253_v43 = vpop.f32.mrf.mxu1  ;;  %v3232_v44 = vpop.f32.mrf.mxu0 }
 0x1a6   :  { %v3233_v46 = vadd.f32 %v3232_v44, %v3231_v42 }
 0x1a7   :  { %v3254_v47 = vpop.f32.mrf.mxu1  ;;  %v3234_v48 = vpop.f32.mrf.mxu0 }
 0x1a8   :  { %v2543_v49 = vadd.f32 %v3233_v46, %v2503_v45  ;;  %v3255_v50 = vadd.f32 %v3254_v47, %v3253_v43 }
 0x1a9   :  { %v3256_v51 = vpop.f32.mrf.mxu1  ;;  %v3235_v52 = vpop.f32.mrf.mxu0 }
 0x1aa   :  { %v2583_v53 = vadd.f32 %v3255_v50, %v2543_v49 }
 0x1ab   :  { %v3257_v54 = vpop.f32.mrf.mxu1 }
 0x1ac   :  { %v2588_v55 = vmax.f32 %v2583_v53, 0.0 }
 0x1ae   :  { %v2589_v56 = vpack.c.bf16 %v2588_v55, %v2588_v55 }
 0x1b0   :  { %3285 = vmatmul.mubr.bf16.vlgmr.msra.gmra.mxu0 %v2589_v56 }
 0x270   :  { %v2695_v58 = vpop.f32.mrf.mxu0 }
 0x271   :  { %v2696_v59 = vadd.f32 %v2942_v57, %v2695_v58 }
 0x272   :  { %v3286_v60 = vpop.f32.mrf.mxu0 }
 0x273   :  { %2701 = vst [vmem:[#allocation2] sm:$0x3] %v2696_v59 }
 0x274   :  { %v2698_v61 = vpop.f32.mrf.mxu0 }
 0x275   :  { %3538 = shalt.err (!%p3535_p4)
}
 0x276   :  { %2711 = dma.vmem_to_hbm [thread:$0]  %s2709_s16, 32, %s4342_s5, [#allocation3]   ;;  %v3287_v62 = vpop.f32.mrf.mxu0 }
 0x277   :  { %3547 = dma.done.wait [#allocation3], 32  }
 0x278   :  { %3548 = vsyncadd [#allocation3], 4294967264 }
 0x279   :  { %2715 = vsyncpa [#allocation3], 1 }

// kernel: cnn_forward.4
= control target key start
LH: loop header
LB: loop body
LE: loop exit
PB: predicated region body
PF: predicated region fallthrough
CT: control target
= control target key end

     0   :  { %s4893_s12 = smov 0   ;;  %s5829_s0 = inlined_call_operand.vmem [shape: bf16[2,2,2,72,32], index: 0, kind: input, shape index: {}]   ;;  %s5830_s1 = inlined_call_operand.vmem [shape: bf16[9,32,64], index: 1, kind: input, shape index: {}]   ;;  %s5831_s2 = inlined_call_operand.vmem [shape: f32[1,64], index: 2, kind: input, shape index: {}]   ;;  %s5832_s3 = inlined_call_operand.vmem [shape: bf16[2,56,64], index: 3, kind: output, shape index: {}]  }
   0x1 LB: > { %s3755_s13 = sadd.s32 4294967295, %s4871_s12   ;;  %p3759_p0 = scmp.ge.s32.totalorder %s4871_s12, 1  ;;  %s4871_s12 = sphi %s4893_s12, %s13_s12  }
   0x2   : > { %p137_p1 = scmp.lt.s32.totalorder %s4871_s12, 3 }
   0x4   : > { %p138_p2 = pnand %p3759_p0, %p137_p1 }
   0x6   : > { %141 = sbr.rel (%p138_p2) target bundleno = 512 (0x200), region = 32 }
   0xb   : > { %v4904_v0 = vld [vmem:[%s5830_s1 + $0x18] sm:$0xff]   ;;  %p161_p3 = scmp.lt.s32.totalorder %s3755_s13, 1  ;;  %v4909_v1 = vld [vmem:[%s5830_s1 + $0x8] sm:$0xff]   ;;  %v4915_v2 = vld [vmem:[%s5830_s1 + $0x10] sm:$0xff]   ;;  %vm226_vm0 = vcmask 261120   ;;  %vm3692_vm2 = vcmask 519168  }
   0xc   : > { %4325 = vmatprep.subr.bf16.mxu0 %v4904_v0  ;;  %5852 = vst [vmem:[#allocation2_spill] sm:$0xff] %v4915_v2  ;;  %4337 = vmatprep.subr.bf16.mxu1 %v4909_v1  ;;  %v4924_v3 = vld [vmem:[%s5830_s1] sm:$0xff]   ;;  %v4932_v4 = vld [vmem:[%s5830_s1 + $0x28] sm:$0xff]   ;;  %v4938_v5 = vld [vmem:[%s5830_s1 + $0x38] sm:$0xff]   ;;  %vm442_vm1 = vsmask.f32 7424 }
   0xd   : > { %s5887_s13 = smov (!%p161_p3, %s3755_s13), 1  ;;  %4326 = vmatpush3.bf16.msra.mxu0 %v4904_v0  ;;  %4338 = vmatpush3.bf16.msra.mxu1 %v4909_v1  ;;  %v4955_v8 = vld [vmem:[%s5830_s1 + $0x20] sm:$0xff]   ;;  %v4985_v15 = vld [vmem:[%s5830_s1 + $0x30] sm:$0xff]   ;;  %v5022_v33 = vld [vmem:[%s5830_s1 + $0x48] sm:$0xff]  }
   0xe   : > { %4327 = vmatprep.subr.bf16.mxu0 %v4915_v2  ;;  %s4757_s22 = smul.u32 144, %s5887_s13  ;;  %4339 = vmatprep.subr.bf16.mxu1 %v4924_v3  ;;  %v5027_v36 = vld [vmem:[%s5830_s1 + $0x58] sm:$0xff]   ;;  %v5053_v49 = vld [vmem:[%s5830_s1 + $0x40] sm:$0xff]   ;;  %v5060_v51 = vld [vmem:[%s5830_s1 + $0x50] sm:$0xff]  }
   0xf   : > { %s4758_s14 = smul.u32 28, %s5887_s13 }
  0x10   : > { %s4943_s29 = scalar_lea.vmem %s5829_s0, %s4757_s22 }
  0x11   : > { %4328 = vmatpush3.bf16.msra.mxu0 %v4915_v2  ;;  %v4947_v6 = vld [vmem:[%s4943_s29 + $0x24] sm:$0xff]   ;;  %4340 = vmatpush3.bf16.msra.mxu1 %v4924_v3  ;;  %v4960_v9 = vld [vmem:[%s4943_s29 + $0x2c] sm:$0xff]   ;;  %v4968_v11 = vld [vmem:[%s4943_s29 + $0x34] sm:$0xff]   ;;  %s5806_s13 = scalar_lea.vmem %s5832_s3, %s4758_s14 }
  0x12   : > { %v4772_v7 = vld [vmem:[%s4943_s29] sm:$0xff]   ;;  %4349 = vmatprep.subr.bf16.mxu0 %v4932_v4  ;;  %4329 = vmatprep.mubr.msk.bf16.mxu0 %vm226_vm0, %v4947_v6  ;;  %v4774_v10 = vld [vmem:[%s4943_s29 + $0x8] sm:$0xff]   ;;  %v4778_v12 = vld [vmem:[%s4943_s29 + $0x10] sm:$0xff]  }
  0x13   : > { %4361 = vmatprep.subr.bf16.mxu1 %v4938_v5  ;;  %4341 = vmatprep.mubr.msk.bf16.mxu1 %vm226_vm0, %v4772_v7  ;;  %v4977_v13 = vld [vmem:[%s4943_s29 + $0x3c] ss:$0 sps:$4 sm:$0xff]   ;;  %v4780_v14 = vld [vmem:[%s4943_s29 + $0x18] ss:$0 sps:$4 sm:$0xff]   ;;  %v409_v16 = vld [vmem:[%s4943_s29] sm:$0xf] }
  0x14   : > { %4330 = vmatmul.mubr.msk.bf16.vlgmr.msra.gmra.mxu0 %vm226_vm0, %v4960_v9  ;;  %4342 = vmatmul.mubr.msk.bf16.vlgmr.msra.gmra.mxu1 %vm226_vm0, %v4774_v10  ;;  %v4989_v17 = vld [vmem:[%s4943_s29 + $0x4] sm:$0xf]  ;;  %v4993_v18 = vld [vmem:[%s4943_s29 + $0x8] sm:$0xf]  ;;  %v4996_v19 = vld [vmem:[%s4943_s29 + $0xc] sm:$0xf] }
  0x15   : > { %4350 = vmatpush3.bf16.msra.mxu0 %v4932_v4  ;;  %4362 = vmatpush3.bf16.msra.mxu1 %v4938_v5  ;;  %v4999_v20 = vld [vmem:[%s4943_s29 + $0x10] sm:$0xf]  ;;  %v3797_v21 = vcombine.low %v409_v16, %v4989_v17  ;;  %v5004_v22 = vld [vmem:[%s4943_s29 + $0x14] sm:$0xf]  ;;  %v3798_v23 = vcombine.low %v4993_v18, %v4996_v19  ;;  %v5012_v27 = vld [vmem:[%s4943_s29 + $0x48] sm:$0xff]  }
  0x16   : > { %4333 = vmatprep.mubr.msk.bf16.mxu0 %vm226_vm0, %v4968_v11  ;;  %4345 = vmatprep.mubr.msk.bf16.mxu1 %vm226_vm0, %v4778_v12  ;;  %v3799_v24 = vcombine.low %v4999_v20, %v5004_v22  ;;  %5853 = vst [vmem:[#allocation3_spill] sm:$0xff] %v5012_v27  ;;  %v5030_v37 = vld [vmem:[%s4943_s29 + $0x18] sm:$0xf]  ;;  %v416_v38 = vld [vmem:[%s4943_s29 + $0x1c] sm:$0x1]  ;;  %v5039_v43 = vld [vmem:[%s4943_s29 + $0x50] sm:$0xff]  }
  0x17   : > { %4351 = vmatprep.subr.bf16.mxu0 %v4955_v8  ;;  %4363 = vmatprep.subr.bf16.mxu1 %v4985_v15  ;;  %v444_v25 = vshrl.u32 %v3797_v21, 16  ;;  %v446_v26 = vshll.u32 %v3797_v21, 16  ;;  %v451_v28 = vshll.u32 %v3798_v23, 16  ;;  %v455_v29 = vshrl.u32 %v3798_v23, 16  ;;  %5854 = vst [vmem:[#allocation4_spill] sm:$0xff] %v5039_v43  ;;  %v5048_v47 = vld [vmem:[%s4943_s29 + $0x58] sm:$0xff]  }
  0x18   : > { %v459_v31 = vshll.u32 %v3799_v24, 16  ;;  %v3800_v40 = vcombine.low %v5030_v37, %v416_v38  ;;  %v463_v41 = vshrl.u32 %v3799_v24, 16  ;;  %5855 = vst [vmem:[#allocation5_spill] sm:$0xff] %v5048_v47  ;;  %v3849_v52 = vld [vmem:[%s4943_s29 + $0x48] sm:$0xf]  ;;  %v5111_v16 = vld [vmem:[%s5830_s1 + $0x78] sm:$0xff]   ;;  %v5230_v63 = vcombine.low %v5004_v22, %v5030_v37 }
  0x19   : > { %4352 = vmatpush3.bf16.msra.mxu0 %v4955_v8  ;;  %4364 = vmatpush3.bf16.msra.mxu1 %v4985_v15  ;;  %v448_v30 = vrot.slane %v446_v26, 1  ;;  %v453_v32 = vrot.slane %v451_v28, 1  ;;  %v5067_v53 = vld [vmem:[%s4943_s29 + $0x4c] sm:$0xf]  ;;  %v5070_v54 = vld [vmem:[%s4943_s29 + $0x50] sm:$0xf] }
  0x1a   : > { %v461_v35 = vrot.slane %v459_v31, 1  ;;  %4373 = vmatprep.subr.bf16.mxu0 %v5022_v33  ;;  %4385 = vmatprep.subr.bf16.mxu1 %v5027_v36  ;;  %v467_v46 = vshll.u32 %v3800_v40, 16  ;;  %v471_v48 = vshrl.u32 %v3800_v40, 16  ;;  %5856 = vst [vmem:[#allocation6_spill] sm:$0xff] %v5070_v54  ;;  %v5073_v55 = vld [vmem:[%s4943_s29 + $0x54] sm:$0xf]  ;;  %v3861_v59 = vcombine.low %v3849_v52, %v5067_v53 }
  0x1b   : > { %v449_v34 = vor.u32 %v448_v30, %v444_v25  ;;  %v457_v39 = vor.u32 %v455_v29, %v453_v32  ;;  %5857 = vst [vmem:[#allocation7_spill] sm:$0xff] %v5073_v55  ;;  %v5082_v57 = vld [vmem:[%s4943_s29 + $0x58] sm:$0xf]  ;;  %v5085_v58 = vld [vmem:[%s4943_s29 + $0x5c] sm:$0xf]  ;;  %v3862_v61 = vcombine.low %v5070_v54, %v5073_v55  ;;  %v5115_v21 = vld [vmem:[%s4943_s29 + $0x6c] sm:$0xff]  }
  0x1c   : > { %4334 = vmatmul.mubr.msk.bf16.gmra.mxu0 %vm226_vm0, %v4977_v13  ;;  %4346 = vmatmul.mubr.msk.bf16.gmra.mxu1 %vm226_vm0, %v4780_v14  ;;  %v465_v45 = vor.u32 %v463_v41, %v461_v35  ;;  %v469_v50 = vrot.slane %v467_v46, 1  ;;  %5858 = vst [vmem:[#allocation8_spill] sm:$0xff] %v5082_v57  ;;  %v5091_v60 = vld [vmem:[%s4943_s29 + $0x60] ss:$0 sps:$4 sm:$0xff]   ;;  %v3863_v62 = vcombine.low %v5082_v57, %v5085_v58  ;;  %v855_v10 = vshrl.u32 %v3861_v59, 16  ;;  %v5106_v14 = vld [vmem:[%s5830_s1 + $0x68] sm:$0xff]  }
  0x1d   : > { %4365 = vmatprep.mubr.msk.bf16.mxu1 %vm226_vm0, %v5012_v27  ;;  %v5036_v42 = vsel %vm442_vm1, %v449_v34, %v453_v32  ;;  %v5045_v44 = vsel %vm442_vm1, %v457_v39, %v461_v35  ;;  %5859 = vst [vmem:[#allocation9_spill] sm:$0xff] %v5091_v60  ;;  %v857_v12 = vshll.u32 %v3861_v59, 16  ;;  %v862_v23 = vshll.u32 %v3862_v61, 16  ;;  %v5121_v29 = vld [vmem:[%s4943_s29 + $0x60] sm:$0xf]  ;;  %v5137_v41 = vld [vmem:[%s4943_s29 + $0x74] sm:$0xff]  }
  0x1e   : > { %4353 = vmatprep.mubr.msk.bf16.mxu0 %vm226_vm0, %v5036_v42  ;;  %v5077_v56 = vsel %vm442_vm1, %v465_v45, %v469_v50  ;;  %v5100_v7 = vor.u32 %v471_v48, %v469_v50  ;;  %v866_v24 = vshrl.u32 %v3862_v61, 16  ;;  %v870_v26 = vshll.u32 %v3863_v62, 16  ;;  %v3856_v31 = vld [vmem:[%s4943_s29 + $0x64] sm:$0x1]  ;;  %v5143_v50 = vld [vmem:[%s4943_s29 + $0x7c] sm:$0xff]   ;;  %5862 = vst [vmem:[#allocation12_spill] sm:$0xff] %v5230_v63 }
  0x1f   : > { %v859_v25 = vrot.slane %v857_v12, 1  ;;  %v864_v28 = vrot.slane %v862_v23, 1  ;;  %v874_v32 = vshrl.u32 %v3863_v62, 16  ;;  %v3864_v34 = vcombine.low %v5121_v29, %v3856_v31  ;;  %v5148_v52 = vld [vmem:[%s5830_s1 + $0x60] sm:$0xff]   ;;  %v5158_v62 = vld [vmem:[%s5830_s1 + $0x70] sm:$0xff]   ;;  %v5170_v12 = vld [vmem:[%s5830_s1 + $0x88] sm:$0xff]  }
  0x20   : > { %v872_v39 = vrot.slane %v870_v26, 1  ;;  %v5176_v23 = vld [vmem:[%s4943_s29 + $0x2c] sm:$0xf]  ;;  %v5187_v26 = vcombine.low %v4989_v17, %v4993_v18  ;;  %v3887_v17 = vld [vmem:[%s4943_s29 + $0x30] sm:$0xf]  ;;  %v4824_v22 = vld [vmem:[%s4943_s29 + $0x14] sm:$0xff]  }
  0x21   : > { %v860_v30 = vor.u32 %v859_v25, %v855_v10  ;;  %v868_v38 = vor.u32 %v866_v24, %v864_v28  ;;  %v878_v40 = vshll.u32 %v3864_v34, 16  ;;  %v882_v61 = vshrl.u32 %v3864_v34, 16  ;;  %v3885_v10 = vld [vmem:[%s4943_s29 + $0x28] sm:$0xf]  ;;  %v5179_v24 = vld [vmem:[%s4943_s29 + $0x84] ss:$0 sps:$4 sm:$0xff]  }
  0x22   : > { %v876_v45 = vor.u32 %v874_v32, %v872_v39  ;;  %5860 = vst [vmem:[#allocation10_spill] sm:$0xff] %v5187_v26  ;;  %v5204_v18 = vld [vmem:[%s4943_s29 + $0x34] sm:$0xf]  ;;  %v5209_v31 = vld [vmem:[%s4943_s29 + $0x38] sm:$0xf]  ;;  %v4823_v34 = vld [vmem:[%s4943_s29 + $0xc] sm:$0xff]  }
  0x23   : > { %v5132_v35 = vsel %vm442_vm1, %v860_v30, %v864_v28  ;;  %v880_v46 = vrot.slane %v878_v40, 1  ;;  %v5140_v48 = vsel %vm442_vm1, %v868_v38, %v872_v39  ;;  %v5191_v28 = vcombine.low %v3885_v10, %v5176_v23  ;;  %v4822_v30 = vld [vmem:[%s4943_s29 + $0x4] sm:$0xff]   ;;  %v5212_v32 = vld [vmem:[%s4943_s29 + $0x3c] sm:$0xf]  ;;  %v5216_v40 = vld [vmem:[%s4943_s29 + $0x78] sm:$0xf] }
  0x24   : > { %4354 = vmatmul.mubr.msk.bf16.vlgmr.msra.gmra.mxu0 %vm226_vm0, %v5045_v44  ;;  %4366 = vmatmul.mubr.msk.bf16.vlgmr.msra.gmra.mxu1 %vm226_vm0, %v5039_v43  ;;  %v1248_v38 = vshll.u32 %v4822_v30, 16  ;;  %v1246_v39 = vshrl.u32 %v4822_v30, 16  ;;  %v1253_v55 = vshll.u32 %v4823_v34, 16  ;;  %v4825_v37 = vld [vmem:[%s4943_s29 + $0x1c] sm:$0x1f]   ;;  %v1261_v43 = vshll.u32 %v4824_v22, 16 }
  0x25   : > { %4374 = vmatpush3.bf16.msra.mxu0 %v5022_v33  ;;  %4386 = vmatpush3.bf16.msra.mxu1 %v5027_v36  ;;  %v5153_v59 = vsel %vm442_vm1, %v876_v45, %v880_v46  ;;  %v5182_v25 = vor.u32 %v882_v61, %v880_v46  ;;  %v5220_v45 = vcombine.low %v4996_v19, %v4999_v20  ;;  %v5223_v46 = vld [vmem:[%s4943_s29 + $0x7c] sm:$0xf]  ;;  %v5243_v20 = vld [vmem:[%s5830_s1 + $0x80] sm:$0xff]   ;;  %v1269_v27 = vshll.u32 %v4825_v37, 16 }
  0x26   : > { %4369 = vmatprep.mubr.msk.bf16.mxu1 %vm226_vm0, %v5048_v47  ;;  %4357 = vmatprep.mubr.msk.bf16.mxu0 %vm226_vm0, %v5077_v56  ;;  %v5226_v61 = vcombine.low %v3887_v17, %v5204_v18  ;;  %v1250_v57 = vrot.slane %v1248_v38, 1  ;;  %v5234_v30 = vcombine.low %v5216_v40, %v5223_v46  ;;  %v5238_v19 = vcombine.low %v5209_v31, %v5212_v32  ;;  %v3928_v38 = vld [vmem:[%s4943_s29 + $0x24] sm:$0xf] }
  0x27   : > { %4375 = vmatprep.subr.bf16.mxu0 %v5053_v49  ;;  %4387 = vmatprep.subr.bf16.mxu1 %v5060_v51  ;;  %5861 = vst [vmem:[#allocation11_spill] sm:$0xff] %v5220_v45  ;;  %v1257_v47 = vshrl.u32 %v4823_v34, 16  ;;  %v5279_v34 = vld [vmem:[%s4943_s29 + $0x74] sm:$0xf] }
  0x28   : > { %5863 = vst [vmem:[#allocation13_spill] sm:$0xff] %v5234_v30  ;;  %v5257_v30 = vld [vmem:[%s4943_s29 + $0x1c] ss:$0 sps:$4 sm:$0xff]  }
  0x29   : > { %4376 = vmatpush3.bf16.msra.mxu0 %v5053_v49  ;;  %4388 = vmatpush3.bf16.msra.mxu1 %v5060_v51  ;;  %5864 = vst [vmem:[#allocation14_spill] sm:$0xff] %v5257_v30 }
  0x2a   : > { %4397 = vmatprep.subr.bf16.mxu0 %v5106_v14  ;;  %4409 = vmatprep.subr.bf16.mxu1 %v5111_v16 }
  0x2c   : > { %4358 = vmatmul.mubr.msk.bf16.gmra.mxu0 %vm226_vm0, %v5100_v7  ;;  %4370 = vmatmul.mubr.msk.bf16.gmra.mxu1 %vm226_vm0, %v5091_v60  ;;  %v1255_v60 = vrot.slane %v1253_v55, 1 }
  0x2d   : > { %4377 = vmatprep.mubr.msk.bf16.mxu0 %vm226_vm0, %v5115_v21  ;;  %4389 = vmatprep.mubr.msk.bf16.mxu1 %vm226_vm0, %v5132_v35 }
  0x34   : > { %4378 = vmatmul.mubr.msk.bf16.vlgmr.msra.gmra.mxu0 %vm226_vm0, %v5137_v41  ;;  %4390 = vmatmul.mubr.msk.bf16.vlgmr.msra.gmra.mxu1 %vm226_vm0, %v5140_v48 }
  0x35   : > { %4398 = vmatpush3.bf16.msra.mxu0 %v5106_v14  ;;  %4410 = vmatpush3.bf16.msra.mxu1 %v5111_v16 }
  0x36   : > { %4381 = vmatprep.mubr.msk.bf16.mxu0 %vm226_vm0, %v5143_v50  ;;  %4393 = vmatprep.mubr.msk.bf16.mxu1 %vm226_vm0, %v5153_v59 }
  0x37   : > { %4399 = vmatprep.subr.bf16.mxu0 %v5148_v52  ;;  %4411 = vmatprep.subr.bf16.mxu1 %v5158_v62 }
  0x39   : > { %4400 = vmatpush3.bf16.msra.mxu0 %v5148_v52  ;;  %4412 = vmatpush3.bf16.msra.mxu1 %v5158_v62 }
  0x3a   : > { %4421 = vmatprep.subr.bf16.mxu0 %v5170_v12  ;;  %4433 = vmatprep.subr.bf16.mxu1 %v4904_v0 }
  0x3c   : > { %4382 = vmatmul.mubr.msk.bf16.gmra.mxu0 %vm226_vm0, %v5179_v24  ;;  %4394 = vmatmul.mubr.msk.bf16.gmra.mxu1 %vm226_vm0, %v5182_v25 }
  0x3d   : > { %4401 = vmatprep.mubr.msk.bf16.mxu0 %vm226_vm0, %v5187_v26  ;;  %4413 = vmatprep.mubr.msk.bf16.mxu1 %vm226_vm0, %v5191_v28  ;;  %v1251_v26 = vor.u32 %v1250_v57, %v1246_v39  ;;  %v5273_v57 = vld [vmem:[%s4943_s29 + $0x70] sm:$0xf]  ;;  %v3930_v39 = vcombine.low %v3928_v38, %v3885_v10  ;;  %v3931_v38 = vcombine.low %v5176_v23, %v3887_v17 }
  0x3e   : > { %v5289_v10 = vcombine.low %v5273_v57, %v5279_v34 }
  0x3f   : > { %v5269_v55 = vsel %vm442_vm1, %v1251_v26, %v1255_v60  ;;  %v1263_v26 = vrot.slane %v1261_v43, 1  ;;  %v1517_v54 = vshll.u32 %v3931_v38, 16 }
  0x40   : > { %5866 = vst [vmem:[#allocation16_spill] sm:$0xff] %v5269_v55  ;;  %5867 = vst [vmem:[#allocation17_spill] sm:$0xff] %v5289_v10  ;;  %v1273_v10 = vshrl.u32 %v4825_v37, 16 }
  0x41   : > { %v1519_v23 = vrot.slane %v1517_v54, 1 }
  0x44   : > { %4402 = vmatmul.mubr.msk.bf16.vlgmr.msra.gmra.mxu0 %vm226_vm0, %v5220_v45  ;;  %4414 = vmatmul.mubr.msk.bf16.vlgmr.msra.gmra.mxu1 %vm226_vm0, %v5226_v61  ;;  %v5262_v45 = vld [vmem:[%s4943_s29 + $0x40] ss:$0 sps:$4 sm:$0xff]  }
  0x45   : > { %4422 = vmatpush3.bf16.msra.mxu0 %v5170_v12  ;;  %4434 = vmatpush3.bf16.msra.mxu1 %v4904_v0  ;;  %5865 = vst [vmem:[#allocation15_spill] sm:$0xff] %v5262_v45 }
  0x46   : > { %4405 = vmatprep.mubr.msk.bf16.mxu0 %vm226_vm0, %v5230_v63  ;;  %4417 = vmatprep.mubr.msk.bf16.mxu1 %vm226_vm0, %v5238_v19  ;;  %v1265_v63 = vshrl.u32 %v4824_v22, 16  ;;  %v1259_v22 = vor.u32 %v1257_v47, %v1255_v60  ;;  %v1512_v47 = vshll.u32 %v3930_v39, 16 }
  0x47   : > { %4423 = vmatprep.subr.bf16.mxu0 %v5243_v20  ;;  %4435 = vmatprep.subr.bf16.mxu1 %v4915_v2 }
  0x48   : > { %v5295_v60 = vsel %vm442_vm1, %v1259_v22, %v1263_v26 }
  0x49   : > { %4424 = vmatpush3.bf16.msra.mxu0 %v5243_v20  ;;  %4436 = vmatpush3.bf16.msra.mxu1 %v4915_v2  ;;  %v1514_v2 = vrot.slane %v1512_v47, 1 }
  0x4a   : > { %4445 = vmatprep.subr.bf16.mxu0 %v4909_v1  ;;  %4457 = vmatprep.subr.bf16.mxu1 %v4932_v4 }
  0x4c   : > { %4406 = vmatmul.mubr.msk.bf16.gmra.mxu0 %vm226_vm0, %v5257_v30  ;;  %4418 = vmatmul.mubr.msk.bf16.gmra.mxu1 %vm226_vm0, %v5262_v45  ;;  %v1267_v30 = vor.u32 %v1265_v63, %v1263_v26  ;;  %v1271_v45 = vrot.slane %v1269_v27, 1  ;;  %v3932_v27 = vcombine.low %v5204_v18, %v5209_v31  ;;  %v3951_v18 = vld [vmem:[%s4943_s29 + $0x80] sm:$0xf]  ;;  %v3952_v31 = vld [vmem:[%s4943_s29 + $0x84] sm:$0xf] }
  0x4d   : > { %4425 = vmatprep.mubr.msk.bf16.mxu0 %vm226_vm0, %v5269_v55  ;;  %4437 = vmatprep.mubr.msk.bf16.mxu1 %vm226_vm0, %v5036_v42  ;;  %v1510_v55 = vshrl.u32 %v3930_v39, 16  ;;  %v3929_v42 = vld [vmem:[%s4943_s29 + $0x40] sm:$0x1]  ;;  %v5325_v54 = vcombine.low %v3951_v18, %v3952_v31 }
  0x4e   : > { %v5298_v43 = vsel %vm442_vm1, %v1267_v30, %v1271_v45  ;;  %v3933_v17 = vcombine.low %v5212_v32, %v3929_v42  ;;  %v1521_v30 = vshrl.u32 %v3931_v38, 16  ;;  %v1525_v37 = vshll.u32 %v3932_v27, 16 }
  0x4f   : > { %v1515_v63 = vor.u32 %v1514_v2, %v1510_v55  ;;  %v4013_v2 = vcombine.low %v5085_v58, %v5121_v29  ;;  %v1529_v32 = vshrl.u32 %v3932_v27, 16  ;;  %v5562_v29 = vld [vmem:[%s4943_s29 + $0x88] ss:$0 sps:$4 sm:$0xff]  }
  0x50   : > { %v1527_v55 = vrot.slane %v1525_v37, 1  ;;  %v1523_v39 = vor.u32 %v1521_v30, %v1519_v23 }
  0x52   : > { %v1531_v22 = vor.u32 %v1529_v32, %v1527_v55  ;;  %v4831_v32 = vld [vmem:[%s4943_s29 + $0x28] sm:$0xff]  }
  0x54   : > { %4426 = vmatmul.mubr.msk.bf16.vlgmr.msra.gmra.mxu0 %vm226_vm0, %v5295_v60  ;;  %4438 = vmatmul.mubr.msk.bf16.vlgmr.msra.gmra.mxu1 %vm226_vm0, %v5045_v44  ;;  %v5315_v44 = vor.u32 %v1273_v10, %v1271_v45  ;;  %v1533_v45 = vshll.u32 %v3933_v17, 16  ;;  %v1528_v10 = vsel %vm442_vm1, %v1523_v39, %v1527_v55 }
  0x55   : > { %4446 = vmatpush3.bf16.msra.mxu0 %v4909_v1  ;;  %4458 = vmatpush3.bf16.msra.mxu1 %v4932_v4 }
  0x56   : > { %4429 = vmatprep.mubr.msk.bf16.mxu0 %vm226_vm0, %v5298_v43  ;;  %4441 = vmatprep.mubr.msk.bf16.mxu1 %vm226_vm0, %v5077_v56  ;;  %v1520_v56 = vsel %vm442_vm1, %v1515_v63, %v1519_v23  ;;  %v1535_v26 = vrot.slane %v1533_v45, 1  ;;  %v3953_v23 = vld [vmem:[%s4943_s29 + $0x88] sm:$0x1] }
  0x57   : > { %4447 = vmatprep.subr.bf16.mxu0 %v4924_v3  ;;  %4459 = vmatprep.subr.bf16.mxu1 %v4955_v8 }
  0x58   : > { %v1536_v38 = vsel %vm442_vm1, %v1531_v22, %v1535_v26  ;;  %v4832_v22 = vld [vmem:[%s4943_s29 + $0x30] sm:$0xff]  }
  0x59   : > { %4448 = vmatpush3.bf16.msra.mxu0 %v4924_v3  ;;  %4460 = vmatpush3.bf16.msra.mxu1 %v4955_v8 }
  0x5a   : > { %4469 = vmatprep.subr.bf16.mxu0 %v4938_v5  ;;  %4481 = vmatprep.subr.bf16.mxu1 %v5022_v33 }
  0x5c   : > { %4430 = vmatmul.mubr.msk.bf16.gmra.mxu0 %vm226_vm0, %v5315_v44  ;;  %4442 = vmatmul.mubr.msk.bf16.gmra.mxu1 %vm226_vm0, %v5100_v7  ;;  %v1537_v7 = vshrl.u32 %v3933_v17, 16  ;;  %v3957_v17 = vcombine.low %v3952_v31, %v3953_v23  ;;  %v2089_v23 = vshrl.u32 %v4832_v22, 16 }
  0x5d   : > { %4449 = vmatprep.mubr.msk.bf16.mxu0 %vm226_vm0, %v4947_v6  ;;  %4461 = vmatprep.mubr.msk.bf16.mxu1 %vm226_vm0, %v1520_v56  ;;  %v3946_v6 = vld [vmem:[%s4943_s29 + $0x6c] sm:$0xf] }
  0x5e   : > { %v3954_v47 = vcombine.low %v3946_v6, %v5273_v57  ;;  %v1817_v56 = vshll.u32 %v3957_v17, 16 }
  0x60   : > { %v1796_v42 = vshll.u32 %v3954_v47, 16  ;;  %v1794_v27 = vshrl.u32 %v3954_v47, 16  ;;  %v1819_v39 = vrot.slane %v1817_v56, 1  ;;  %v1821_v47 = vshrl.u32 %v3957_v17, 16 }
  0x62   : > { %v1798_v63 = vrot.slane %v1796_v42, 1 }
  0x64   : > { %4450 = vmatmul.mubr.msk.bf16.vlgmr.msra.gmra.mxu0 %vm226_vm0, %v4960_v9  ;;  %4462 = vmatmul.mubr.msk.bf16.vlgmr.msra.gmra.mxu1 %vm226_vm0, %v1528_v10  ;;  %v1539_v9 = vor.u32 %v1537_v7, %v1535_v26  ;;  %v2080_v26 = vshll.u32 %v4831_v32, 16  ;;  %v2078_v7 = vshrl.u32 %v4831_v32, 16 }
  0x65   : > { %4470 = vmatpush3.bf16.msra.mxu0 %v4938_v5  ;;  %4482 = vmatpush3.bf16.msra.mxu1 %v5022_v33 }
  0x66   : > { %4453 = vmatprep.mubr.msk.bf16.mxu0 %vm226_vm0, %v4968_v11  ;;  %4465 = vmatprep.mubr.msk.bf16.mxu1 %vm226_vm0, %v1536_v38  ;;  %v3955_v11 = vcombine.low %v5279_v34, %v5216_v40  ;;  %v1799_v40 = vor.u32 %v1798_v63, %v1794_v27  ;;  %v2082_v6 = vrot.slane %v2080_v26, 1  ;;  %v5412_v63 = vor.u32 %v1821_v47, %v1819_v39 }
  0x67   : > { %4471 = vmatprep.subr.bf16.mxu0 %v4985_v15  ;;  %4483 = vmatprep.subr.bf16.mxu1 %v5053_v49 }
  0x68   : > { %v1801_v57 = vshll.u32 %v3955_v11, 16  ;;  %v1805_v30 = vshrl.u32 %v3955_v11, 16  ;;  %v4833_v11 = vld [vmem:[%s4943_s29 + $0x38] sm:$0xff]   ;;  %v2083_v42 = vor.u32 %v2082_v6, %v2078_v7 }
  0x69   : > { %4472 = vmatpush3.bf16.msra.mxu0 %v4985_v15  ;;  %4484 = vmatpush3.bf16.msra.mxu1 %v5053_v49  ;;  %v4842_v7 = vld [vmem:[%s4943_s29 + $0x54] sm:$0xff]  }
  0x6a   : > { %4493 = vmatprep.subr.bf16.mxu0 %v5027_v36  ;;  %4505 = vmatprep.subr.bf16.mxu1 %v5106_v14  ;;  %v1803_v34 = vrot.slane %v1801_v57, 1  ;;  %v4834_v57 = vld [vmem:[%s4943_s29 + $0x40] sm:$0x1f]  }
  0x6b   : > { %v2101_v17 = vshll.u32 %v4834_v57, 16 }
  0x6c   : > { %4454 = vmatmul.mubr.msk.bf16.gmra.mxu0 %vm226_vm0, %v4977_v13  ;;  %4466 = vmatmul.mubr.msk.bf16.gmra.mxu1 %vm226_vm0, %v1539_v9  ;;  %v3956_v13 = vcombine.low %v5223_v46, %v3951_v18  ;;  %v5380_v18 = vsel %vm442_vm1, %v1799_v40, %v1803_v34  ;;  %v1807_v31 = vor.u32 %v1805_v30, %v1803_v34  ;;  %v2085_v9 = vshll.u32 %v4832_v22, 16  ;;  %v5868_v30 = vld [vmem:[#allocation15_spill] sm:$0xff]  ;;  %v5870_v22 = vld [vmem:[#allocation2_spill] sm:$0xff] }
  0x6d   : > { %4473 = vmatprep.mubr.msk.bf16.mxu0 %vm226_vm0, %v5115_v21  ;;  %4485 = vmatprep.mubr.msk.bf16.mxu1 %vm226_vm0, %v5132_v35  ;;  %v2097_v34 = vshrl.u32 %v4833_v11, 16 }
  0x6e   : > { %v1809_v46 = vshll.u32 %v3956_v13, 16  ;;  %v1813_v37 = vshrl.u32 %v3956_v13, 16  ;;  %v2087_v27 = vrot.slane %v2085_v9, 1  ;;  %v2093_v13 = vshll.u32 %v4833_v11, 16 }
  0x6f   : > { %v2826_v11 = vshll.u32 %v4842_v7, 16 }
  0x70   : > { %v1811_v45 = vrot.slane %v1809_v46, 1  ;;  %v5420_v40 = vsel %vm442_vm1, %v2083_v42, %v2087_v27  ;;  %v5869_v46 = vld [vmem:[#allocation16_spill] sm:$0xff]  ;;  %v2095_v56 = vrot.slane %v2093_v13, 1 }
  0x72   : > { %v1815_v55 = vor.u32 %v1813_v37, %v1811_v45  ;;  %v5395_v10 = vsel %vm442_vm1, %v1807_v31, %v1811_v45  ;;  %v2091_v37 = vor.u32 %v2089_v23, %v2087_v27  ;;  %v2099_v32 = vor.u32 %v2097_v34, %v2095_v56  ;;  %v5882_v27 = vld [vmem:[#allocation7_spill] sm:$0xff]  ;;  %v5885_v34 = vld [vmem:[#allocation13_spill] sm:$0xff] }
  0x73   : > { %v2103_v31 = vrot.slane %v2101_v17, 1 }
  0x74   : > { %4474 = vmatmul.mubr.msk.bf16.vlgmr.msra.gmra.mxu0 %vm226_vm0, %v5137_v41  ;;  %4486 = vmatmul.mubr.msk.bf16.vlgmr.msra.gmra.mxu1 %vm226_vm0, %v5140_v48  ;;  %v5398_v38 = vsel %vm442_vm1, %v1815_v55, %v1819_v39  ;;  %v5432_v45 = vsel %vm442_vm1, %v2091_v37, %v2095_v56  ;;  %v2105_v39 = vshrl.u32 %v4834_v57, 16  ;;  %v5883_v57 = vld [vmem:[#allocation8_spill] sm:$0xff] }
  0x75   : > { %4494 = vmatpush3.bf16.msra.mxu0 %v5027_v36  ;;  %4506 = vmatpush3.bf16.msra.mxu1 %v5106_v14  ;;  %v5437_v55 = vsel %vm442_vm1, %v2099_v32, %v2103_v31  ;;  %v5884_v23 = vcombine.low %v5882_v27, %v5883_v57  ;;  %v2828_v32 = vrot.slane %v2826_v11, 1 }
  0x76   : > { %4477 = vmatprep.mubr.msk.bf16.mxu0 %vm226_vm0, %v5143_v50  ;;  %4489 = vmatprep.mubr.msk.bf16.mxu1 %vm226_vm0, %v5153_v59  ;;  %v5449_v26 = vor.u32 %v2105_v39, %v2103_v31  ;;  %v4844_v39 = vld [vmem:[%s4943_s29 + $0x64] sm:$0x1f]  }
  0x77   : > { %4495 = vmatprep.subr.bf16.mxu0 %v5060_v51  ;;  %4507 = vmatprep.subr.bf16.mxu1 %v5148_v52 }
  0x79   : > { %4496 = vmatpush3.bf16.msra.mxu0 %v5060_v51  ;;  %4508 = vmatpush3.bf16.msra.mxu1 %v5148_v52 }
  0x7a   : > { %4517 = vmatprep.subr.bf16.mxu0 %v5111_v16  ;;  %4529 = vmatprep.subr.bf16.mxu1 %v5170_v12 }
  0x7c   : > { %4478 = vmatmul.mubr.msk.bf16.gmra.mxu0 %vm226_vm0, %v5179_v24  ;;  %4490 = vmatmul.mubr.msk.bf16.gmra.mxu1 %vm226_vm0, %v5182_v25 }
  0x7d   : > { %4497 = vmatprep.mubr.msk.bf16.mxu0 %vm226_vm0, %v5380_v18  ;;  %4509 = vmatprep.mubr.msk.bf16.mxu1 %vm226_vm0, %v5191_v28 }
  0x84   : > { %4498 = vmatmul.mubr.msk.bf16.vlgmr.msra.gmra.mxu0 %vm226_vm0, %v5395_v10  ;;  %4510 = vmatmul.mubr.msk.bf16.vlgmr.msra.gmra.mxu1 %vm226_vm0, %v5226_v61 }
  0x85   : > { %4518 = vmatpush3.bf16.msra.mxu0 %v5111_v16  ;;  %4530 = vmatpush3.bf16.msra.mxu1 %v5170_v12 }
  0x86   : > { %4501 = vmatprep.mubr.msk.bf16.mxu0 %vm226_vm0, %v5398_v38  ;;  %4513 = vmatprep.mubr.msk.bf16.mxu1 %vm226_vm0, %v5238_v19 }
  0x87   : > { %4519 = vmatprep.subr.bf16.mxu0 %v5158_v62  ;;  %4531 = vmatprep.subr.bf16.mxu1 %v5243_v20 }
  0x89   : > { %4520 = vmatpush3.bf16.msra.mxu0 %v5158_v62  ;;  %4532 = vmatpush3.bf16.msra.mxu1 %v5243_v20 }
  0x8a   : > { %4541 = vmatprep.subr.bf16.mxu0 %v4904_v0  ;;  %4553 = vmatprep.subr.bf16.mxu1 %v4909_v1 }
  0x8c   : > { %4502 = vmatmul.mubr.msk.bf16.gmra.mxu0 %vm226_vm0, %v5412_v63  ;;  %4514 = vmatmul.mubr.msk.bf16.gmra.mxu1 %vm226_vm0, %v5868_v30 }
  0x8d   : > { %4521 = vmatprep.mubr.msk.bf16.mxu0 %vm226_vm0, %v5869_v46  ;;  %4533 = vmatprep.mubr.msk.bf16.mxu1 %vm226_vm0, %v5420_v40 }
  0x94   : > { %4522 = vmatmul.mubr.msk.bf16.vlgmr.msra.gmra.mxu0 %vm226_vm0, %v5295_v60  ;;  %4534 = vmatmul.mubr.msk.bf16.vlgmr.msra.gmra.mxu1 %vm226_vm0, %v5432_v45 }
  0x95   : > { %4542 = vmatpush3.bf16.msra.mxu0 %v4904_v0  ;;  %4554 = vmatpush3.bf16.msra.mxu1 %v4909_v1  ;;  %v5871_v0 = vld [vmem:[#allocation3_spill] sm:$0xff]  ;;  %v5872_v1 = vld [vmem:[#allocation4_spill] sm:$0xff] }
  0x96   : > { %4525 = vmatprep.mubr.msk.bf16.mxu0 %vm226_vm0, %v5298_v43  ;;  %4537 = vmatprep.mubr.msk.bf16.mxu1 %vm226_vm0, %v5437_v55 }
  0x97   : > { %4543 = vmatprep.subr.bf16.mxu0 %v5870_v22  ;;  %4555 = vmatprep.subr.bf16.mxu1 %v4924_v3 }
  0x99   : > { %4544 = vmatpush3.bf16.msra.mxu0 %v5870_v22  ;;  %4556 = vmatpush3.bf16.msra.mxu1 %v4924_v3  ;;  %v5873_v3 = vld [vmem:[#allocation5_spill] sm:$0xff] }
  0x9a   : > { %4565 = vmatprep.subr.bf16.mxu0 %v4932_v4  ;;  %4577 = vmatprep.subr.bf16.mxu1 %v4938_v5 }
  0x9c   : > { %4526 = vmatmul.mubr.msk.bf16.gmra.mxu0 %vm226_vm0, %v5315_v44  ;;  %4538 = vmatmul.mubr.msk.bf16.gmra.mxu1 %vm226_vm0, %v5449_v26 }
  0x9d   : > { %4545 = vmatprep.mubr.msk.bf16.mxu0 %vm226_vm0, %v5115_v21  ;;  %4557 = vmatprep.mubr.msk.bf16.mxu1 %vm226_vm0, %v5871_v0 }
  0xa4   : > { %4546 = vmatmul.mubr.msk.bf16.vlgmr.msra.gmra.mxu0 %vm226_vm0, %v5137_v41  ;;  %4558 = vmatmul.mubr.msk.bf16.vlgmr.msra.gmra.mxu1 %vm226_vm0, %v5872_v1  ;;  %v4839_v1 = vld [vmem:[%s4943_s29 + $0x64] ss:$0 sps:$4 sm:$0xff]  }
  0xa5   : > { %4566 = vmatpush3.bf16.msra.mxu0 %v4932_v4  ;;  %4578 = vmatpush3.bf16.msra.mxu1 %v4938_v5  ;;  %v5874_v4 = vld [vmem:[#allocation9_spill] sm:$0xff]  ;;  %v5875_v5 = vld [vmem:[#allocation10_spill] sm:$0xff] }
  0xa6   : > { %4549 = vmatprep.mubr.msk.bf16.mxu0 %vm226_vm0, %v5143_v50  ;;  %4561 = vmatprep.mubr.msk.bf16.mxu1 %vm226_vm0, %v5873_v3  ;;  %v4850_v3 = vld [vmem:[%s5830_s1 + $0x10] sm:$0xff]  }
  0xa7   : > { %4567 = vmatprep.subr.bf16.mxu0 %v4955_v8  ;;  %4579 = vmatprep.subr.bf16.mxu1 %v4985_v15 }
  0xa9   : > { %4568 = vmatpush3.bf16.msra.mxu0 %v4955_v8  ;;  %4580 = vmatpush3.bf16.msra.mxu1 %v4985_v15  ;;  %v5876_v8 = vld [vmem:[#allocation11_spill] sm:$0xff]  ;;  %v5877_v15 = vld [vmem:[#allocation12_spill] sm:$0xff] }
  0xaa   : > { %4589 = vmatprep.subr.bf16.mxu0 %v5022_v33  ;;  %4601 = vmatprep.subr.bf16.mxu1 %v5027_v36 }
  0xac   : > { %4550 = vmatmul.mubr.msk.bf16.gmra.mxu0 %vm226_vm0, %v5179_v24  ;;  %4562 = vmatmul.mubr.msk.bf16.gmra.mxu1 %vm226_vm0, %v5874_v4 }
  0xad   : > { %4569 = vmatprep.mubr.msk.bf16.mxu0 %vm226_vm0, %v5132_v35  ;;  %4581 = vmatprep.mubr.msk.bf16.mxu1 %vm226_vm0, %v5875_v5 }
  0xb4   : > { %4570 = vmatmul.mubr.msk.bf16.vlgmr.msra.gmra.mxu0 %vm226_vm0, %v5140_v48  ;;  %4582 = vmatmul.mubr.msk.bf16.vlgmr.msra.gmra.mxu1 %vm226_vm0, %v5876_v8 }
  0xb5   : > { %4590 = vmatpush3.bf16.msra.mxu0 %v5022_v33  ;;  %4602 = vmatpush3.bf16.msra.mxu1 %v5027_v36  ;;  %v5878_v33 = vld [vmem:[#allocation14_spill] sm:$0xff]  ;;  %v4841_v36 = vld [vmem:[%s4943_s29 + $0x4c] sm:$0xff]  }
  0xb6   : > { %4573 = vmatprep.mubr.msk.bf16.mxu0 %vm226_vm0, %v5153_v59  ;;  %4585 = vmatprep.mubr.msk.bf16.mxu1 %vm226_vm0, %v5877_v15  ;;  %v2821_v6 = vshll.u32 %v4841_v36, 16  ;;  %v2819_v9 = vshrl.u32 %v4841_v36, 16 }
  0xb7   : > { %4591 = vmatprep.subr.bf16.mxu0 %v5053_v49  ;;  %4603 = vmatprep.subr.bf16.mxu1 %v5060_v51 }
  0xb8   : > { %v2823_v47 = vrot.slane %v2821_v6, 1 }
  0xb9   : > { %4592 = vmatpush3.bf16.msra.mxu0 %v5053_v49  ;;  %4604 = vmatpush3.bf16.msra.mxu1 %v5060_v51  ;;  %v4849_v49 = vld [vmem:[%s5830_s1 + $0x18] sm:$0xff]   ;;  %v5879_v51 = vld [vmem:[#allocation6_spill] sm:$0xff] }
  0xba   : > { %4613 = vmatprep.subr.bf16.mxu0 %v5106_v14  ;;  %4625 = vmatprep.subr.bf16.mxu1 %v5111_v16  ;;  %v2824_v56 = vor.u32 %v2823_v47, %v2819_v9 }
  0xbc   : > { %4574 = vmatmul.mubr.msk.bf16.gmra.mxu0 %vm226_vm0, %v5182_v25  ;;  %4586 = vmatmul.mubr.msk.bf16.gmra.mxu1 %vm226_vm0, %v5878_v33  ;;  %v5566_v15 = vsel %vm442_vm1, %v2824_v56, %v2828_v32  ;;  %v4851_v33 = vld [vmem:[%s5830_s1 + $0x8] sm:$0xff]  }
  0xbd   : > { %4593 = vmatprep.mubr.msk.bf16.mxu0 %vm226_vm0, %v5191_v28  ;;  %4605 = vmatprep.mubr.msk.bf16.mxu1 %vm226_vm0, %v5869_v46 }
  0xc4   : > { %4594 = vmatmul.mubr.msk.bf16.vlgmr.msra.gmra.mxu0 %vm226_vm0, %v5226_v61  ;;  %4606 = vmatmul.mubr.msk.bf16.vlgmr.msra.gmra.mxu1 %vm226_vm0, %v5295_v60 }
  0xc5   : > { %4614 = vmatpush3.bf16.msra.mxu0 %v5106_v14  ;;  %4626 = vmatpush3.bf16.msra.mxu1 %v5111_v16  ;;  %v5880_v16 = vcombine.low %v5067_v53, %v5879_v51  ;;  %v4843_v53 = vld [vmem:[%s4943_s29 + $0x5c] sm:$0xff]  }
  0xc6   : > { %4597 = vmatprep.mubr.msk.bf16.mxu0 %vm226_vm0, %v5238_v19  ;;  %4609 = vmatprep.mubr.msk.bf16.mxu1 %vm226_vm0, %v5298_v43  ;;  %v2834_v4 = vshll.u32 %v4843_v53, 16  ;;  %v2838_v51 = vshrl.u32 %v4843_v53, 16 }
  0xc7   : > { %4615 = vmatprep.subr.bf16.mxu0 %v5148_v52  ;;  %4627 = vmatprep.subr.bf16.mxu1 %v5158_v62 }
  0xc8   : > { %v2836_v11 = vrot.slane %v2834_v4, 1 }
  0xc9   : > { %4616 = vmatpush3.bf16.msra.mxu0 %v5148_v52  ;;  %4628 = vmatpush3.bf16.msra.mxu1 %v5158_v62  ;;  %v5881_v62 = vld [vmem:[#allocation17_spill] sm:$0xff] }
  0xca   : > { %4637 = vmatprep.subr.bf16.mxu0 %v5170_v12  ;;  %4649 = vmatprep.subr.bf16.mxu1 %v4849_v49 }
  0xcc   : > { %4598 = vmatmul.mubr.msk.bf16.gmra.mxu0 %vm226_vm0, %v5868_v30  ;;  %4610 = vmatmul.mubr.msk.bf16.gmra.mxu1 %vm226_vm0, %v5315_v44 }
  0xcd   : > { %4617 = vmatprep.mubr.msk.bf16.mxu0 %vm226_vm0, %v5880_v16  ;;  %4629 = vmatprep.mubr.msk.bf16.mxu1 %vm226_vm0, %v5881_v62  ;;  %v2842_v16 = vshll.u32 %v4844_v39, 16 }
  0xd4   : > { %v4331_v42 = vpop.f32.mrf.mxu0  ;;  %4618 = vmatmul.mubr.msk.bf16.vlgmr.msra.gmra.mxu0 %vm226_vm0, %v5884_v23  ;;  %v4343_v13 = vpop.f32.mrf.mxu1  ;;  %4630 = vmatmul.mubr.msk.bf16.vlgmr.msra.gmra.mxu1 %vm226_vm0, %v5885_v34  ;;  %v2840_v23 = vor.u32 %v2838_v51, %v2836_v11 }
  0xd5   : > { %4638 = vmatpush3.bf16.msra.mxu0 %v5170_v12  ;;  %v388_v17 = vadd.f32 %v4343_v13, %v4331_v42  ;;  %4650 = vmatpush3.bf16.msra.mxu1 %v4849_v49  ;;  %v4852_v49 = vld [vmem:[%s5830_s1 + $0x28] sm:$0xff]   ;;  %v2844_v13 = vrot.slane %v2842_v16, 1 }
  0xd6   : > { %v273_v37 = vpop.f32.mrf.mxu0  ;;  %4621 = vmatprep.mubr.msk.bf16.mxu0 %vm226_vm0, %v4013_v2  ;;  %v379_v31 = vpop.f32.mrf.mxu1  ;;  %4633 = vmatprep.mubr.msk.bf16.mxu1 %vm226_vm0, %v5325_v54  ;;  %v2830_v2 = vshrl.u32 %v4842_v7, 16 }
  0xd7   : > { %4639 = vmatprep.subr.bf16.mxu0 %v5243_v20  ;;  %v380_v22 = vadd.f32 %v379_v31, %v273_v37  ;;  %4651 = vmatprep.subr.bf16.mxu1 %v4850_v3 }
  0xd8   : > { %v4332_v0 = vpop.f32.mrf.mxu0  ;;  %v4344_v58 = vpop.f32.mrf.mxu1  ;;  %v2832_v47 = vor.u32 %v2830_v2, %v2828_v32 }
  0xd9   : > { %4640 = vmatpush3.bf16.msra.mxu0 %v5243_v20  ;;  %v391_v5 = vadd.f32 %v4344_v58, %v4332_v0  ;;  %4652 = vmatpush3.bf16.msra.mxu1 %v4850_v3 }
  0xda   : > { %v276_v8 = vpop.f32.mrf.mxu0  ;;  %4661 = vmatprep.subr.bf16.mxu0 %v4851_v33  ;;  %v382_v36 = vpop.f32.mrf.mxu1  ;;  %4673 = vmatprep.subr.bf16.mxu1 %v4852_v49  ;;  %v5582_v31 = vsel %vm442_vm1, %v2832_v47, %v2836_v11 }
  0xdb   : > { %v383_v7 = vadd.f32 %v382_v36, %v276_v8 }
  0xdc   : > { %v4335_v6 = vpop.f32.mrf.mxu0  ;;  %4622 = vmatmul.mubr.msk.bf16.gmra.mxu0 %vm226_vm0, %v4839_v1  ;;  %v4347_v9 = vpop.f32.mrf.mxu1  ;;  %4634 = vmatmul.mubr.msk.bf16.gmra.mxu1 %vm226_vm0, %v5562_v29  ;;  %v5585_v1 = vsel %vm442_vm1, %v2840_v23, %v2844_v13 }
  0xdd   : > { %4641 = vmatprep.mubr.msk.bf16.mxu0 %vm226_vm0, %v5566_v15  ;;  %v404_v42 = vadd.f32 %v4347_v9, %v4335_v6  ;;  %4653 = vmatprep.mubr.msk.bf16.mxu1 %vm226_vm0, %v5132_v35  ;;  %v2846_v35 = vshrl.u32 %v4844_v39, 16 }
  0xde   : > { %v289_v27 = vpop.f32.mrf.mxu0  ;;  %v395_v57 = vpop.f32.mrf.mxu1 }
  0xdf   : > { %v396_v53 = vadd.f32 %v395_v57, %v289_v27  ;;  %v5598_v6 = vor.u32 %v2846_v35, %v2844_v13  ;;  %v4856_v57 = vld [vmem:[%s5830_s1 + $0x48] sm:$0xff]  }
  0xe0   : > { %v4336_v37 = vpop.f32.mrf.mxu0  ;;  %v4348_v56 = vpop.f32.mrf.mxu1 }
  0xe2   : > { %v292_v0 = vpop.f32.mrf.mxu0  ;;  %v398_v32 = vpop.f32.mrf.mxu1 }
  0xe3   : > { %v399_v3 = vadd.f32 %v398_v32, %v292_v0 }
  0xe4   : > { %v4355_v58 = vpop.f32.mrf.mxu0  ;;  %4642 = vmatmul.mubr.msk.bf16.vlgmr.msra.gmra.mxu0 %vm226_vm0, %v5582_v31  ;;  %v4367_v4 = vpop.f32.mrf.mxu1  ;;  %4654 = vmatmul.mubr.msk.bf16.vlgmr.msra.gmra.mxu1 %vm226_vm0, %v5140_v48  ;;  %v4854_v48 = vld [vmem:[%s5830_s1 + $0x20] sm:$0xff]  }
  0xe5   : > { %v564_v2 = vadd.f32 %v4355_v58, %v388_v17  ;;  %4662 = vmatpush3.bf16.msra.mxu0 %v4851_v33  ;;  %4674 = vmatpush3.bf16.msra.mxu1 %v4852_v49  ;;  %v4853_v17 = vld [vmem:[%s5830_s1] sm:$0xff]  }
  0xe6   : > { %v532_v8 = vpop.f32.mrf.mxu0  ;;  %4645 = vmatprep.mubr.msk.bf16.mxu0 %vm226_vm0, %v5585_v1  ;;  %v658_v16 = vpop.f32.mrf.mxu1  ;;  %4657 = vmatprep.mubr.msk.bf16.mxu1 %vm226_vm0, %v5153_v59  ;;  %v4855_v59 = vld [vmem:[%s5830_s1 + $0x38] sm:$0xff]  }
  0xe7   : > { %v690_v36 = vadd.f32 %v4367_v4, %v564_v2  ;;  %v562_v51 = vadd.f32 %v532_v8, %v380_v22  ;;  %4663 = vmatprep.subr.bf16.mxu0 %v4853_v17  ;;  %4675 = vmatprep.subr.bf16.mxu1 %v4854_v48 }
  0xe8   : > { %v4356_v39 = vpop.f32.mrf.mxu0  ;;  %v4368_v22 = vpop.f32.mrf.mxu1 }
  0xe9   : > { %v688_v33 = vadd.f32 %v658_v16, %v562_v51  ;;  %v565_v49 = vadd.f32 %v4356_v39, %v391_v5  ;;  %4664 = vmatpush3.bf16.msra.mxu0 %v4853_v17  ;;  %4676 = vmatpush3.bf16.msra.mxu1 %v4854_v48 }
  0xea   : > { %v535_v9 = vpop.f32.mrf.mxu0  ;;  %4685 = vmatprep.subr.bf16.mxu0 %v4855_v59  ;;  %v661_v27 = vpop.f32.mrf.mxu1  ;;  %4697 = vmatprep.subr.bf16.mxu1 %v4856_v57 }
  0xeb   : > { %v691_v47 = vadd.f32 %v4368_v22, %v565_v49  ;;  %v563_v11 = vadd.f32 %v535_v9, %v383_v7 }
  0xec   : > { %v4359_v23 = vpop.f32.mrf.mxu0  ;;  %4646 = vmatmul.mubr.msk.bf16.gmra.mxu0 %vm226_vm0, %v5598_v6  ;;  %v4371_v37 = vpop.f32.mrf.mxu1  ;;  %4658 = vmatmul.mubr.msk.bf16.gmra.mxu1 %vm226_vm0, %v5182_v25 }
  0xed   : > { %v689_v5 = vadd.f32 %v661_v27, %v563_v11  ;;  %v568_v13 = vadd.f32 %v4359_v23, %v404_v42  ;;  %4665 = vmatprep.mubr.msk.bf16.mxu0 %vm226_vm0, %v5115_v21  ;;  %4677 = vmatprep.mubr.msk.bf16.mxu1 %vm226_vm0, %v5380_v18 }
  0xee   : > { %v548_v7 = vpop.f32.mrf.mxu0  ;;  %v674_v32 = vpop.f32.mrf.mxu1 }
  0xef   : > { %v694_v56 = vadd.f32 %v4371_v37, %v568_v13  ;;  %v566_v0 = vadd.f32 %v548_v7, %v396_v53 }
  0xf0   : > { %v4360_v58 = vpop.f32.mrf.mxu0  ;;  %v4372_v2 = vpop.f32.mrf.mxu1 }
  0xf1   : > { %v692_v35 = vadd.f32 %v674_v32, %v566_v0 }
  0xf2   : > { %v551_v4 = vpop.f32.mrf.mxu0  ;;  %v677_v42 = vpop.f32.mrf.mxu1 }
  0xf3   : > { %v567_v8 = vadd.f32 %v551_v4, %v399_v3 }
  0xf4   : > { %v4379_v51 = vpop.f32.mrf.mxu0  ;;  %4666 = vmatmul.mubr.msk.bf16.vlgmr.msra.gmra.mxu0 %vm226_vm0, %v5137_v41  ;;  %v4391_v21 = vpop.f32.mrf.mxu1  ;;  %4678 = vmatmul.mubr.msk.bf16.vlgmr.msra.gmra.mxu1 %vm226_vm0, %v5395_v10  ;;  %v4857_v41 = vld [vmem:[%s5830_s1 + $0x30] sm:$0xff]   ;;  %v4858_v10 = vld [vmem:[%s5830_s1 + $0x40] sm:$0xff]  }
  0xf5   : > { %v693_v25 = vadd.f32 %v677_v42, %v567_v8  ;;  %v816_v16 = vadd.f32 %v4379_v51, %v690_v36  ;;  %4686 = vmatpush3.bf16.msra.mxu0 %v4855_v59  ;;  %4698 = vmatpush3.bf16.msra.mxu1 %v4856_v57 }
  0xf6   : > { %v784_v18 = vpop.f32.mrf.mxu0  ;;  %4669 = vmatprep.mubr.msk.bf16.mxu0 %vm226_vm0, %v5143_v50  ;;  %v943_v3 = vpop.f32.mrf.mxu1  ;;  %4681 = vmatprep.mubr.msk.bf16.mxu1 %vm226_vm0, %v5398_v38  ;;  %v4859_v38 = vld [vmem:[%s5830_s1 + $0x58] sm:$0xff]  }
  0xf7   : > { %v975_v53 = vadd.f32 %v4391_v21, %v816_v16  ;;  %v814_v17 = vadd.f32 %v784_v18, %v688_v33  ;;  %4687 = vmatprep.subr.bf16.mxu0 %v4857_v41  ;;  %4699 = vmatprep.subr.bf16.mxu1 %v4858_v10 }
  0xf8   : > { %v4380_v36 = vpop.f32.mrf.mxu0  ;;  %v4392_v50 = vpop.f32.mrf.mxu1 }
  0xf9   : > { %v973_v39 = vadd.f32 %v943_v3, %v814_v17  ;;  %v817_v48 = vadd.f32 %v4380_v36, %v691_v47  ;;  %4688 = vmatpush3.bf16.msra.mxu0 %v4857_v41  ;;  %4700 = vmatpush3.bf16.msra.mxu1 %v4858_v10 }
  0xfa   : > { %v787_v33 = vpop.f32.mrf.mxu0  ;;  %4709 = vmatprep.subr.bf16.mxu0 %v4859_v38  ;;  %v946_v9 = vpop.f32.mrf.mxu1  ;;  %4721 = vmatprep.subr.bf16.mxu1 %v5106_v14 }
  0xfb   : > { %v976_v49 = vadd.f32 %v4392_v50, %v817_v48  ;;  %v815_v22 = vadd.f32 %v787_v33, %v689_v5  ;;  %v4846_v48 = vld [vmem:[%s4943_s29 + $0x78] sm:$0xff]  }
  0xfc   : > { %v4383_v59 = vpop.f32.mrf.mxu0  ;;  %4670 = vmatmul.mubr.msk.bf16.gmra.mxu0 %vm226_vm0, %v5179_v24  ;;  %v4395_v27 = vpop.f32.mrf.mxu1  ;;  %4682 = vmatmul.mubr.msk.bf16.gmra.mxu1 %vm226_vm0, %v5412_v63 }
  0xfd   : > { %v974_v11 = vadd.f32 %v946_v9, %v815_v22  ;;  %v820_v47 = vadd.f32 %v4383_v59, %v694_v56  ;;  %4689 = vmatprep.mubr.msk.bf16.mxu0 %vm226_vm0, %v5191_v28  ;;  %4701 = vmatprep.mubr.msk.bf16.mxu1 %vm226_vm0, %v5869_v46 }
  0xfe   : > { %v800_v57 = vpop.f32.mrf.mxu0  ;;  %v959_v14 = vpop.f32.mrf.mxu1 }
  0xff   : > { %v979_v23 = vadd.f32 %v4395_v27, %v820_v47  ;;  %v818_v5 = vadd.f32 %v800_v57, %v692_v35  ;;  %v4860_v35 = vld [vmem:[%s5830_s1 + $0x68] sm:$0xff]   ;;  %v4847_v57 = vld [vmem:[%s4943_s29 + $0x80] sm:$0xff]  }
 0x100   : > { %v4384_v13 = vpop.f32.mrf.mxu0  ;;  %v4396_v7 = vpop.f32.mrf.mxu1 }
 0x101   : > { %v977_v37 = vadd.f32 %v959_v14, %v818_v5  ;;  %v4863_v5 = vld [vmem:[%s5830_s1 + $0x88] sm:$0xff]  }
 0x102   : > { %v803_v24 = vpop.f32.mrf.mxu0  ;;  %v962_v56 = vpop.f32.mrf.mxu1  ;;  %v4848_v7 = vld [vmem:[%s4943_s29 + $0x88] sm:$0x1f]  }
 0x103   : > { %v819_v0 = vadd.f32 %v803_v24, %v693_v25 }
 0x104   : > { %v4403_v32 = vpop.f32.mrf.mxu0  ;;  %4690 = vmatmul.mubr.msk.bf16.vlgmr.msra.gmra.mxu0 %vm226_vm0, %v5226_v61  ;;  %v4415_v28 = vpop.f32.mrf.mxu1  ;;  %4702 = vmatmul.mubr.msk.bf16.vlgmr.msra.gmra.mxu1 %vm226_vm0, %v5295_v60  ;;  %v4861_v61 = vld [vmem:[%s5830_s1 + $0x50] sm:$0xff]  }
 0x105   : > { %v978_v63 = vadd.f32 %v962_v56, %v819_v0  ;;  %v1082_v58 = vadd.f32 %v4403_v32, %v975_v53  ;;  %4710 = vmatpush3.bf16.msra.mxu0 %v4859_v38  ;;  %4722 = vmatpush3.bf16.msra.mxu1 %v4860_v35  ;;  %v4845_v53 = vld [vmem:[%s4943_s29 + $0x70] sm:$0xff]   ;;  %v3537_v56 = vshll.u32 %v4847_v57, 16  ;;  %v3545_v35 = vshll.u32 %v4848_v7, 16 }
 0x106   : > { %v1050_v46 = vpop.f32.mrf.mxu0  ;;  %4693 = vmatprep.mubr.msk.bf16.mxu0 %vm226_vm0, %v5238_v19  ;;  %v1175_v8 = vpop.f32.mrf.mxu1  ;;  %4705 = vmatprep.mubr.msk.bf16.mxu1 %vm226_vm0, %v5298_v43  ;;  %v4862_v43 = vld [vmem:[%s5830_s1 + $0x78] sm:$0xff]   ;;  %v3524_v50 = vshll.u32 %v4845_v53, 16 }
 0x107   : > { %v1207_v2 = vadd.f32 %v4415_v28, %v1082_v58  ;;  %v1080_v4 = vadd.f32 %v1050_v46, %v973_v39  ;;  %4711 = vmatprep.subr.bf16.mxu0 %v4861_v61  ;;  %4723 = vmatprep.subr.bf16.mxu1 %v5148_v52  ;;  %v3541_v46 = vshrl.u32 %v4847_v57, 16 }
 0x108   : > { %v4404_v60 = vpop.f32.mrf.mxu0  ;;  %v4416_v25 = vpop.f32.mrf.mxu1  ;;  %v3526_v59 = vrot.slane %v3524_v50, 1 }
 0x109   : > { %v1205_v42 = vadd.f32 %v1175_v8, %v1080_v4  ;;  %v1083_v51 = vadd.f32 %v4404_v60, %v976_v49  ;;  %4712 = vmatpush3.bf16.msra.mxu0 %v4861_v61  ;;  %4724 = vmatpush3.bf16.msra.mxu1 %v5148_v52 }
 0x10a   : > { %v1053_v19 = vpop.f32.mrf.mxu0  ;;  %4733 = vmatprep.subr.bf16.mxu0 %v4862_v43  ;;  %v1178_v18 = vpop.f32.mrf.mxu1  ;;  %4745 = vmatprep.subr.bf16.mxu1 %v5170_v12 }
 0x10b   : > { %v1208_v16 = vadd.f32 %v4416_v25, %v1083_v51  ;;  %v1081_v21 = vadd.f32 %v1053_v19, %v974_v11  ;;  %v3529_v11 = vshll.u32 %v4846_v48, 16  ;;  %v3547_v19 = vrot.slane %v3545_v35, 1 }
 0x10c   : > { %v4407_v17 = vpop.f32.mrf.mxu0  ;;  %4694 = vmatmul.mubr.msk.bf16.gmra.mxu0 %vm226_vm0, %v5868_v30  ;;  %v4419_v36 = vpop.f32.mrf.mxu1  ;;  %4706 = vmatmul.mubr.msk.bf16.gmra.mxu1 %vm226_vm0, %v5315_v44  ;;  %v3522_v44 = vshrl.u32 %v4845_v53, 16 }
 0x10d   : > { %v1206_v3 = vadd.f32 %v1178_v18, %v1081_v21  ;;  %v1086_v41 = vadd.f32 %v4407_v17, %v979_v23  ;;  %4713 = vmatprep.mubr.msk.bf16.mxu0 %vm226_vm0, %v5420_v40  ;;  %4725 = vmatprep.mubr.msk.bf16.mxu1 %vm226_vm0, %v5881_v62 }
 0x10e   : > { %v1066_v52 = vpop.f32.mrf.mxu0  ;;  %v1191_v39 = vpop.f32.mrf.mxu1  ;;  %v3527_v13 = vor.u32 %v3526_v59, %v3522_v44 }
 0x10f   : > { %v1211_v10 = vadd.f32 %v4419_v36, %v1086_v41  ;;  %v1084_v12 = vadd.f32 %v1066_v52, %v977_v37  ;;  %v3531_v37 = vrot.slane %v3529_v11, 1  ;;  %v3549_v41 = vshrl.u32 %v4848_v7, 16 }
 0x110   : > { %v4408_v33 = vpop.f32.mrf.mxu0  ;;  %v4420_v38 = vpop.f32.mrf.mxu1 }
 0x111   : > { %v1209_v30 = vadd.f32 %v1191_v39, %v1084_v12  ;;  %v3532_v28 = vsel %vm442_vm1, %v3527_v13, %v3531_v37 }
 0x112   : > { %v1069_v49 = vpop.f32.mrf.mxu0  ;;  %v1194_v9 = vpop.f32.mrf.mxu1 }
 0x113   : > { %v1085_v22 = vadd.f32 %v1069_v49, %v978_v63 }
 0x114   : > { %v4427_v40 = vpop.f32.mrf.mxu0  ;;  %4714 = vmatmul.mubr.msk.bf16.vlgmr.msra.gmra.mxu0 %vm226_vm0, %v5432_v45  ;;  %v4439_v27 = vpop.f32.mrf.mxu1  ;;  %4726 = vmatmul.mubr.msk.bf16.vlgmr.msra.gmra.mxu1 %vm226_vm0, %v5885_v34  ;;  %v4864_v34 = vld [vmem:[%s5830_s1 + $0x70] sm:$0xff]  }
 0x115   : > { %v1210_v62 = vadd.f32 %v1194_v9, %v1085_v22  ;;  %v5675_v47 = vadd.f32 %v4427_v40, %v1207_v2  ;;  %4734 = vmatpush3.bf16.msra.mxu0 %v4862_v43  ;;  %4746 = vmatpush3.bf16.msra.mxu1 %v4863_v5 }
 0x116   : > { %v1334_v23 = vpop.f32.mrf.mxu0  ;;  %4717 = vmatprep.mubr.msk.bf16.mxu0 %vm226_vm0, %v5437_v55  ;;  %v1405_v14 = vpop.f32.mrf.mxu1  ;;  %4729 = vmatprep.mubr.msk.bf16.mxu1 %vm226_vm0, %v5325_v54  ;;  %v3533_v54 = vshrl.u32 %v4846_v48, 16 }
 0x117   : > { %v5685_v45 = vadd.f32 %v1334_v23, %v1205_v42  ;;  %4735 = vmatprep.subr.bf16.mxu0 %v4864_v34  ;;  %4747 = vmatprep.subr.bf16.mxu1 %v5243_v20 }
 0x118   : > { %v4428_v24 = vpop.f32.mrf.mxu0  ;;  %v4440_v55 = vpop.f32.mrf.mxu1  ;;  %v3535_v60 = vor.u32 %v3533_v54, %v3531_v37 }
 0x119   : > { %v5694_v0 = vadd.f32 %v4428_v24, %v1208_v16  ;;  %4736 = vmatpush3.bf16.msra.mxu0 %v4864_v34  ;;  %4748 = vmatpush3.bf16.msra.mxu1 %v5243_v20  ;;  %v3539_v20 = vrot.slane %v3537_v56, 1 }
 0x11a   : > { %v1337_v32 = vpop.f32.mrf.mxu0  ;;  %v1408_v58 = vpop.f32.mrf.mxu1 }
 0x11b   : > { %v5697_v63 = vadd.f32 %v1337_v32, %v1206_v3  ;;  %v3543_v25 = vor.u32 %v3541_v46, %v3539_v20  ;;  %v3540_v21 = vsel %vm442_vm1, %v3535_v60, %v3539_v20 }
 0x11c   : > { %v4431_v2 = vpop.f32.mrf.mxu0  ;;  %4718 = vmatmul.mubr.msk.bf16.gmra.mxu0 %vm226_vm0, %v5449_v26  ;;  %v4443_v8 = vpop.f32.mrf.mxu1  ;;  %4730 = vmatmul.mubr.msk.bf16.gmra.mxu1 %vm226_vm0, %v5562_v29 }
 0x11d   : > { %v5702_v4 = vadd.f32 %v4431_v2, %v1211_v10  ;;  %4737 = vmatprep.mubr.msk.bf16.mxu0 %vm226_vm0, %v5566_v15  ;;  %4749 = vmatprep.mubr.msk.bf16.mxu1 %vm226_vm0, %v3532_v28  ;;  %v3548_v15 = vsel %vm442_vm1, %v3543_v25, %v3547_v19 }
 0x11e   : > { %v1350_v61 = vpop.f32.mrf.mxu0  ;;  %v1421_v51 = vpop.f32.mrf.mxu1 }
 0x11f   : > { %v5709_v42 = vadd.f32 %v1350_v61, %v1209_v30  ;;  %v3551_v30 = vor.u32 %v3549_v41, %v3547_v19 }
 0x120   : > { %v4432_v26 = vpop.f32.mrf.mxu0  ;;  %v4444_v43 = vpop.f32.mrf.mxu1 }
 0x122   : > { %v1353_v16 = vpop.f32.mrf.mxu0  ;;  %v1424_v29 = vpop.f32.mrf.mxu1 }
 0x123   : > { %v5712_v18 = vadd.f32 %v1353_v16, %v1210_v62 }
 0x124   : > { %v4451_v53 = vpop.f32.mrf.mxu0  ;;  %4738 = vmatmul.mubr.msk.bf16.vlgmr.msra.gmra.mxu0 %vm226_vm0, %v5582_v31  ;;  %v4463_v3 = vpop.f32.mrf.mxu1  ;;  %4750 = vmatmul.mubr.msk.bf16.vlgmr.msra.gmra.mxu1 %vm226_vm0, %v3540_v21 }
 0x125   : > { %v1478_v17 = vadd.f32 %v4451_v53, %v4439_v27  ;;  %4741 = vmatprep.mubr.msk.bf16.mxu0 %vm226_vm0, %v5585_v1  ;;  %4753 = vmatprep.mubr.msk.bf16.mxu1 %vm226_vm0, %v3548_v15 }
 0x126   : > { %v1469_v36 = vpop.f32.mrf.mxu0  ;;  %v1586_v12 = vpop.f32.mrf.mxu1 }
 0x127   : > { %v1618_v52 = vadd.f32 %v4463_v3, %v1478_v17  ;;  %v1470_v10 = vadd.f32 %v1469_v36, %v1405_v14 }
 0x128   : > { %v4452_v39 = vpop.f32.mrf.mxu0  ;;  %v4464_v33 = vpop.f32.mrf.mxu1 }
 0x129   : > { %v1616_v48 = vadd.f32 %v1586_v12, %v1470_v10  ;;  %v1481_v50 = vadd.f32 %v4452_v39, %v4440_v55 }
 0x12a   : > { %v1472_v31 = vpop.f32.mrf.mxu0  ;;  %v1589_v22 = vpop.f32.mrf.mxu1 }
 0x12b   : > { %v1619_v38 = vadd.f32 %v4464_v33, %v1481_v50  ;;  %v1473_v49 = vadd.f32 %v1472_v31, %v1408_v58 }
 0x12c   : > { %v4455_v9 = vpop.f32.mrf.mxu0  ;;  %4742 = vmatmul.mubr.msk.bf16.gmra.mxu0 %vm226_vm0, %v5598_v6  ;;  %v4467_v59 = vpop.f32.mrf.mxu1  ;;  %4754 = vmatmul.mubr.msk.bf16.gmra.mxu1 %vm226_vm0, %v3551_v30 }
 0x12d   : > { %v1617_v1 = vadd.f32 %v1589_v22, %v1473_v49  ;;  %v1494_v44 = vadd.f32 %v4455_v9, %v4443_v8 }
 0x12e   : > { %v1485_v11 = vpop.f32.mrf.mxu0  ;;  %v1602_v27 = vpop.f32.mrf.mxu1 }
 0x12f   : > { %v1622_v40 = vadd.f32 %v4467_v59, %v1494_v44  ;;  %v1486_v62 = vadd.f32 %v1485_v11, %v1421_v51 }
 0x130   : > { %v4456_v57 = vpop.f32.mrf.mxu0  ;;  %v4468_v5 = vpop.f32.mrf.mxu1 }
 0x131   : > { %v1620_v23 = vadd.f32 %v1602_v27, %v1486_v62 }
 0x132   : > { %v1488_v14 = vpop.f32.mrf.mxu0  ;;  %v1605_v13 = vpop.f32.mrf.mxu1 }
 0x133   : > { %v1489_v34 = vadd.f32 %v1488_v14, %v1424_v29 }
 0x134   : > { %v4475_v37 = vpop.f32.mrf.mxu0  ;;  %v4487_v55 = vpop.f32.mrf.mxu1 }
 0x135   : > { %v1621_v7 = vadd.f32 %v1605_v13, %v1489_v34  ;;  %v1689_v24 = vadd.f32 %v4475_v37, %v1618_v52 }
 0x136   : > { %v1657_v6 = vpop.f32.mrf.mxu0  ;;  %v1728_v54 = vpop.f32.mrf.mxu1 }
 0x137   : > { %v1760_v56 = vadd.f32 %v4487_v55, %v1689_v24  ;;  %v1687_v32 = vadd.f32 %v1657_v6, %v1616_v48 }
 0x138   : > { %v4476_v58 = vpop.f32.mrf.mxu0  ;;  %v4488_v35 = vpop.f32.mrf.mxu1 }
 0x139   : > { %v1758_v28 = vadd.f32 %v1728_v54, %v1687_v32  ;;  %v1690_v46 = vadd.f32 %v4476_v58, %v1619_v38 }
 0x13a   : > { %v1660_v2 = vpop.f32.mrf.mxu0  ;;  %v1731_v61 = vpop.f32.mrf.mxu1 }
 0x13b   : > { %v1761_v8 = vadd.f32 %v4488_v35, %v1690_v46  ;;  %v1688_v20 = vadd.f32 %v1660_v2, %v1617_v1 }
 0x13c   : > { %v4479_v60 = vpop.f32.mrf.mxu0  ;;  %v4491_v19 = vpop.f32.mrf.mxu1 }
 0x13d   : > { %v1759_v51 = vadd.f32 %v1731_v61, %v1688_v20  ;;  %v1693_v25 = vadd.f32 %v4479_v60, %v1622_v40 }
 0x13e   : > { %v1673_v26 = vpop.f32.mrf.mxu0  ;;  %v1744_v21 = vpop.f32.mrf.mxu1 }
 0x13f   : > { %v1764_v43 = vadd.f32 %v4491_v19, %v1693_v25  ;;  %v1691_v16 = vadd.f32 %v1673_v26, %v1620_v23 }
 0x140   : > { %v4480_v29 = vpop.f32.mrf.mxu0  ;;  %v4492_v53 = vpop.f32.mrf.mxu1 }
 0x141   : > { %v1762_v15 = vadd.f32 %v1744_v21, %v1691_v16 }
 0x142   : > { %v1676_v17 = vpop.f32.mrf.mxu0  ;;  %v1747_v41 = vpop.f32.mrf.mxu1 }
 0x143   : > { %v1692_v3 = vadd.f32 %v1676_v17, %v1621_v7 }
 0x144   : > { %v4499_v36 = vpop.f32.mrf.mxu0  ;;  %v4511_v12 = vpop.f32.mrf.mxu1 }
 0x145   : > { %v1763_v52 = vadd.f32 %v1747_v41, %v1692_v3  ;;  %v1902_v10 = vadd.f32 %v4499_v36, %v1760_v56 }
 0x146   : > { %v1870_v39 = vpop.f32.mrf.mxu0  ;;  %v1941_v33 = vpop.f32.mrf.mxu1 }
 0x147   : > { %v1973_v48 = vadd.f32 %v4511_v12, %v1902_v10  ;;  %v1900_v50 = vadd.f32 %v1870_v39, %v1758_v28 }
 0x148   : > { %v4500_v30 = vpop.f32.mrf.mxu0  ;;  %v4512_v49 = vpop.f32.mrf.mxu1 }
 0x149   : > { %v1971_v31 = vadd.f32 %v1941_v33, %v1900_v50  ;;  %v1903_v38 = vadd.f32 %v4500_v30, %v1761_v8 }
 0x14a   : > { %v1873_v22 = vpop.f32.mrf.mxu0  ;;  %v1944_v44 = vpop.f32.mrf.mxu1 }
 0x14b   : > { %v1974_v9 = vadd.f32 %v4512_v49, %v1903_v38  ;;  %v1901_v1 = vadd.f32 %v1873_v22, %v1759_v51 }
 0x14c   : > { %v4503_v59 = vpop.f32.mrf.mxu0  ;;  %v4515_v62 = vpop.f32.mrf.mxu1 }
 0x14d   : > { %v1972_v11 = vadd.f32 %v1944_v44, %v1901_v1  ;;  %v1906_v40 = vadd.f32 %v4503_v59, %v1764_v43 }
 0x14e   : > { %v1886_v27 = vpop.f32.mrf.mxu0  ;;  %v1957_v5 = vpop.f32.mrf.mxu1 }
 0x14f   : > { %v1977_v57 = vadd.f32 %v4515_v62, %v1906_v40  ;;  %v1904_v23 = vadd.f32 %v1886_v27, %v1762_v15 }
 0x150   : > { %v4504_v14 = vpop.f32.mrf.mxu0  ;;  %v4516_v13 = vpop.f32.mrf.mxu1 }
 0x151   : > { %v1975_v34 = vadd.f32 %v1957_v5, %v1904_v23 }
 0x152   : > { %v1889_v37 = vpop.f32.mrf.mxu0  ;;  %v1960_v24 = vpop.f32.mrf.mxu1 }
 0x153   : > { %v1905_v7 = vadd.f32 %v1889_v37, %v1763_v52 }
 0x154   : > { %v4523_v55 = vpop.f32.mrf.mxu0  ;;  %v4535_v32 = vpop.f32.mrf.mxu1 }
 0x155   : > { %v1976_v6 = vadd.f32 %v1960_v24, %v1905_v7  ;;  %v2044_v56 = vadd.f32 %v4523_v55, %v1973_v48 }
 0x156   : > { %v2012_v54 = vpop.f32.mrf.mxu0  ;;  %v2154_v46 = vpop.f32.mrf.mxu1 }
 0x157   : > { %v5724_v58 = vadd.f32 %v4535_v32, %v2044_v56  ;;  %v2042_v28 = vadd.f32 %v2012_v54, %v1971_v31 }
 0x158   : > { %v4524_v35 = vpop.f32.mrf.mxu0  ;;  %v4536_v61 = vpop.f32.mrf.mxu1 }
 0x159   : > { %v2193_v2 = vmax.f32 %v5675_v47, %v5724_v58  ;;  %v5728_v8 = vadd.f32 %v2154_v46, %v2042_v28  ;;  %v2045_v20 = vadd.f32 %v4524_v35, %v1974_v9 }
 0x15a   : > { %v2015_v60 = vpop.f32.mrf.mxu0  ;;  %v2157_v26 = vpop.f32.mrf.mxu1 }
 0x15b   : > { %v2191_v51 = vmax.f32 %v5685_v45, %v5728_v8  ;;  %v5732_v25 = vadd.f32 %v4536_v61, %v2045_v20  ;;  %v2043_v19 = vadd.f32 %v2015_v60, %v1972_v11 }
 0x15c   : > { %v4527_v43 = vpop.f32.mrf.mxu0  ;;  %v4539_v15 = vpop.f32.mrf.mxu1 }
 0x15d   : > { %v2194_v16 = vmax.f32 %v5694_v0, %v5732_v25  ;;  %v5736_v21 = vadd.f32 %v2157_v26, %v2043_v19  ;;  %v2048_v29 = vadd.f32 %v4527_v43, %v1977_v57 }
 0x15e   : > { %v2028_v53 = vpop.f32.mrf.mxu0  ;;  %v2170_v36 = vpop.f32.mrf.mxu1 }
 0x15f   : > { %v2192_v17 = vmax.f32 %v5697_v63, %v5736_v21  ;;  %v5740_v3 = vadd.f32 %v4539_v15, %v2048_v29  ;;  %v2046_v41 = vadd.f32 %v2028_v53, %v1975_v34 }
 0x160   : > { %v4528_v52 = vpop.f32.mrf.mxu0  ;;  %v4540_v39 = vpop.f32.mrf.mxu1 }
 0x161   : > { %v2197_v10 = vmax.f32 %v5702_v4, %v5740_v3  ;;  %v5744_v12 = vadd.f32 %v2170_v36, %v2046_v41 }
 0x162   : > { %v2031_v48 = vpop.f32.mrf.mxu0  ;;  %v2173_v30 = vpop.f32.mrf.mxu1 }
 0x163   : > { %v2195_v50 = vmax.f32 %v5709_v42, %v5744_v12  ;;  %v2047_v33 = vadd.f32 %v2031_v48, %v1976_v6 }
 0x164   : > { %v4547_v31 = vpop.f32.mrf.mxu0  ;;  %v4559_v49 = vpop.f32.mrf.mxu1 }
 0x165   : > { %v5748_v38 = vadd.f32 %v2173_v30, %v2047_v33  ;;  %v2305_v22 = vadd.f32 %v4559_v49, %v4547_v31 }
 0x166   : > { %v2232_v9 = vpop.f32.mrf.mxu0  ;;  %v2296_v44 = vpop.f32.mrf.mxu1 }
 0x167   : > { %v2196_v1 = vmax.f32 %v5712_v18, %v5748_v38  ;;  %v2297_v59 = vadd.f32 %v2296_v44, %v2232_v9 }
 0x168   : > { %v4548_v11 = vpop.f32.mrf.mxu0  ;;  %v4560_v40 = vpop.f32.mrf.mxu1 }
 0x169   : > { %v2308_v62 = vadd.f32 %v4560_v40, %v4548_v11 }
 0x16a   : > { %v2235_v27 = vpop.f32.mrf.mxu0  ;;  %v2299_v57 = vpop.f32.mrf.mxu1 }
 0x16b   : > { %v2300_v23 = vadd.f32 %v2299_v57, %v2235_v27 }
 0x16c   : > { %v4551_v5 = vpop.f32.mrf.mxu0  ;;  %v4563_v14 = vpop.f32.mrf.mxu1 }
 0x16d   : > { %v2321_v34 = vadd.f32 %v4563_v14, %v4551_v5 }
 0x16e   : > { %v2248_v13 = vpop.f32.mrf.mxu0  ;;  %v2312_v37 = vpop.f32.mrf.mxu1 }
 0x16f   : > { %v2313_v7 = vadd.f32 %v2312_v37, %v2248_v13 }
 0x170   : > { %v4552_v24 = vpop.f32.mrf.mxu0  ;;  %v4564_v55 = vpop.f32.mrf.mxu1 }
 0x172   : > { %v2251_v6 = vpop.f32.mrf.mxu0  ;;  %v2315_v56 = vpop.f32.mrf.mxu1 }
 0x173   : > { %v2316_v32 = vadd.f32 %v2315_v56, %v2251_v6 }
 0x174   : > { %v4571_v54 = vpop.f32.mrf.mxu0  ;;  %v4583_v46 = vpop.f32.mrf.mxu1 }
 0x175   : > { %v2392_v28 = vadd.f32 %v4571_v54, %v2305_v22 }
 0x176   : > { %v2360_v35 = vpop.f32.mrf.mxu0  ;;  %v2431_v60 = vpop.f32.mrf.mxu1 }
 0x177   : > { %v2463_v20 = vadd.f32 %v4583_v46, %v2392_v28  ;;  %v2390_v61 = vadd.f32 %v2360_v35, %v2297_v59 }
 0x178   : > { %v4572_v19 = vpop.f32.mrf.mxu0  ;;  %v4584_v29 = vpop.f32.mrf.mxu1 }
 0x179   : > { %v2461_v26 = vadd.f32 %v2431_v60, %v2390_v61  ;;  %v2393_v43 = vadd.f32 %v4572_v19, %v2308_v62 }
 0x17a   : > { %v2363_v15 = vpop.f32.mrf.mxu0  ;;  %v2434_v36 = vpop.f32.mrf.mxu1 }
 0x17b   : > { %v2464_v53 = vadd.f32 %v4584_v29, %v2393_v43  ;;  %v2391_v41 = vadd.f32 %v2363_v15, %v2300_v23 }
 0x17c   : > { %v4575_v52 = vpop.f32.mrf.mxu0  ;;  %v4587_v33 = vpop.f32.mrf.mxu1 }
 0x17d   : > { %v2462_v39 = vadd.f32 %v2434_v36, %v2391_v41  ;;  %v2396_v48 = vadd.f32 %v4575_v52, %v2321_v34 }
 0x17e   : > { %v2376_v30 = vpop.f32.mrf.mxu0  ;;  %v2447_v22 = vpop.f32.mrf.mxu1 }
 0x17f   : > { %v2467_v31 = vadd.f32 %v4587_v33, %v2396_v48  ;;  %v2394_v49 = vadd.f32 %v2376_v30, %v2313_v7 }
 0x180   : > { %v4576_v9 = vpop.f32.mrf.mxu0  ;;  %v4588_v59 = vpop.f32.mrf.mxu1 }
 0x181   : > { %v2465_v44 = vadd.f32 %v2447_v22, %v2394_v49 }
 0x182   : > { %v2379_v11 = vpop.f32.mrf.mxu0  ;;  %v2450_v27 = vpop.f32.mrf.mxu1 }
 0x183   : > { %v2395_v40 = vadd.f32 %v2379_v11, %v2316_v32 }
 0x184   : > { %v4595_v62 = vpop.f32.mrf.mxu0  ;;  %v4607_v14 = vpop.f32.mrf.mxu1 }
 0x185   : > { %v2466_v57 = vadd.f32 %v2450_v27, %v2395_v40  ;;  %v2534_v5 = vadd.f32 %v4595_v62, %v2463_v20 }
 0x186   : > { %v2502_v23 = vpop.f32.mrf.mxu0  ;;  %v2573_v24 = vpop.f32.mrf.mxu1 }
 0x187   : > { %v2605_v13 = vadd.f32 %v4607_v14, %v2534_v5  ;;  %v2532_v37 = vadd.f32 %v2502_v23, %v2461_v26 }
 0x188   : > { %v4596_v34 = vpop.f32.mrf.mxu0  ;;  %v4608_v56 = vpop.f32.mrf.mxu1 }
 0x189   : > { %v2603_v55 = vadd.f32 %v2573_v24, %v2532_v37  ;;  %v2535_v6 = vadd.f32 %v4596_v34, %v2464_v53 }
 0x18a   : > { %v2505_v7 = vpop.f32.mrf.mxu0  ;;  %v2576_v46 = vpop.f32.mrf.mxu1 }
 0x18b   : > { %v2606_v54 = vadd.f32 %v4608_v56, %v2535_v6  ;;  %v2533_v28 = vadd.f32 %v2505_v7, %v2462_v39 }
 0x18c   : > { %v4599_v35 = vpop.f32.mrf.mxu0  ;;  %v4611_v60 = vpop.f32.mrf.mxu1 }
 0x18d   : > { %v2604_v61 = vadd.f32 %v2576_v46, %v2533_v28  ;;  %v2538_v32 = vadd.f32 %v4599_v35, %v2467_v31 }
 0x18e   : > { %v2518_v19 = vpop.f32.mrf.mxu0  ;;  %v2589_v29 = vpop.f32.mrf.mxu1 }
 0x18f   : > { %v2609_v43 = vadd.f32 %v4611_v60, %v2538_v32  ;;  %v2536_v20 = vadd.f32 %v2518_v19, %v2465_v44 }
 0x190   : > { %v4600_v15 = vpop.f32.mrf.mxu0  ;;  %v4612_v26 = vpop.f32.mrf.mxu1 }
 0x191   : > { %v2607_v41 = vadd.f32 %v2589_v29, %v2536_v20 }
 0x192   : > { %v2521_v36 = vpop.f32.mrf.mxu0  ;;  %v2592_v48 = vpop.f32.mrf.mxu1 }
 0x193   : > { %v2537_v52 = vadd.f32 %v2521_v36, %v2466_v57 }
 0x194   : > { %v4619_v53 = vpop.f32.mrf.mxu0  ;;  %v4631_v49 = vpop.f32.mrf.mxu1 }
 0x195   : > { %v2608_v33 = vadd.f32 %v2592_v48, %v2537_v52  ;;  %v2695_v30 = vadd.f32 %v4619_v53, %v2605_v13 }
 0x196   : > { %v2663_v39 = vpop.f32.mrf.mxu0  ;;  %v2753_v59 = vpop.f32.mrf.mxu1 }
 0x197   : > { %v2785_v22 = vadd.f32 %v4631_v49, %v2695_v30  ;;  %v2693_v9 = vadd.f32 %v2663_v39, %v2603_v55 }
 0x198   : > { %v4620_v31 = vpop.f32.mrf.mxu0  ;;  %v4632_v27 = vpop.f32.mrf.mxu1 }
 0x199   : > { %v2783_v11 = vadd.f32 %v2753_v59, %v2693_v9  ;;  %v2696_v40 = vadd.f32 %v4620_v31, %v2606_v54 }
 0x19a   : > { %v2666_v44 = vpop.f32.mrf.mxu0  ;;  %v2756_v14 = vpop.f32.mrf.mxu1 }
 0x19b   : > { %v2786_v62 = vadd.f32 %v4632_v27, %v2696_v40  ;;  %v2694_v5 = vadd.f32 %v2666_v44, %v2604_v61 }
 0x19c   : > { %v4623_v23 = vpop.f32.mrf.mxu0  ;;  %v4635_v24 = vpop.f32.mrf.mxu1 }
 0x19d   : > { %v2784_v37 = vadd.f32 %v2756_v14, %v2694_v5  ;;  %v2699_v57 = vadd.f32 %v4623_v23, %v2609_v43 }
 0x19e   : > { %v2679_v34 = vpop.f32.mrf.mxu0  ;;  %v2769_v56 = vpop.f32.mrf.mxu1 }
 0x19f   : > { %v2789_v6 = vadd.f32 %v4635_v24, %v2699_v57  ;;  %v2697_v13 = vadd.f32 %v2679_v34, %v2607_v41 }
 0x1a0   : > { %v4624_v7 = vpop.f32.mrf.mxu0  ;;  %v4636_v55 = vpop.f32.mrf.mxu1 }
 0x1a1   : > { %v2787_v28 = vadd.f32 %v2769_v56, %v2697_v13 }
 0x1a2   : > { %v2682_v46 = vpop.f32.mrf.mxu0  ;;  %v2772_v32 = vpop.f32.mrf.mxu1 }
 0x1a3   : > { %v2698_v35 = vadd.f32 %v2682_v46, %v2608_v33 }
 0x1a4   : > { %v4643_v54 = vpop.f32.mrf.mxu0  ;;  %v4655_v20 = vpop.f32.mrf.mxu1 }
 0x1a5   : > { %v2788_v60 = vadd.f32 %v2772_v32, %v2698_v35  ;;  %v2927_v19 = vadd.f32 %v4643_v54, %v2785_v22 }
 0x1a6   : > { %v2895_v61 = vpop.f32.mrf.mxu0  ;;  %v2973_v15 = vpop.f32.mrf.mxu1 }
 0x1a7   : > { %v5755_v43 = vmax.f32 %v2193_v2, %v2927_v19  ;;  %v2925_v29 = vadd.f32 %v2895_v61, %v2783_v11 }
 0x1a8   : > { %v4644_v41 = vpop.f32.mrf.mxu0  ;;  %v4656_v52 = vpop.f32.mrf.mxu1 }
 0x1a9   : > { %v5760_v26 = vmax.f32 %v2191_v51, %v2925_v29  ;;  %v2928_v36 = vadd.f32 %v4644_v41, %v2786_v62 }
 0x1aa   : > { %v2898_v48 = vpop.f32.mrf.mxu0  ;;  %v2976_v47 = vpop.f32.mrf.mxu1 }
 0x1ab   : > { %v5765_v53 = vmax.f32 %v2194_v16, %v2928_v36  ;;  %v2926_v33 = vadd.f32 %v2898_v48, %v2784_v37 }
 0x1ac   : > { %v4647_v58 = vpop.f32.mrf.mxu0  ;;  %v4659_v45 = vpop.f32.mrf.mxu1 }
 0x1ad   : > { %v5770_v2 = vmax.f32 %v2192_v17, %v2926_v33  ;;  %v2931_v30 = vadd.f32 %v4647_v58, %v2789_v6 }
 0x1ae   : > { %v2911_v8 = vpop.f32.mrf.mxu0  ;;  %v5777_v0 = vpop.f32.mrf.mxu1 }
 0x1af   : > { %v5775_v51 = vmax.f32 %v2197_v10, %v2931_v30  ;;  %v2929_v49 = vadd.f32 %v2911_v8, %v2787_v28 }
 0x1b0   : > { %v4648_v25 = vpop.f32.mrf.mxu0  ;;  %v4660_v63 = vpop.f32.mrf.mxu1 }
 0x1b1   : > { %v5782_v16 = vmax.f32 %v2195_v50, %v2929_v49 }
 0x1b2   : > { %v2914_v21 = vpop.f32.mrf.mxu0  ;;  %v5784_v39 = vpop.f32.mrf.mxu1 }
 0x1b3   : > { %v2930_v17 = vadd.f32 %v2914_v21, %v2788_v60 }
 0x1b4   : > { %v4667_v22 = vpop.f32.mrf.mxu0  ;;  %v4679_v3 = vpop.f32.mrf.mxu1 }
 0x1b5   : > { %v5789_v4 = vmax.f32 %v2196_v1, %v2930_v17  ;;  %v3046_v35 = vadd.f32 %v4667_v22, %v4655_v20 }
 0x1b6   : > { %v3037_v10 = vpop.f32.mrf.mxu0  ;;  %v3101_v9 = vpop.f32.mrf.mxu1 }
 0x1b7   : > { %v3038_v60 = vadd.f32 %v3037_v10, %v2973_v15  ;;  %v3133_v29 = vadd.f32 %v4679_v3, %v3046_v35 }
 0x1b8   : > { %v4668_v59 = vpop.f32.mrf.mxu0  ;;  %v4680_v31 = vpop.f32.mrf.mxu1 }
 0x1b9   : > { %v3049_v41 = vadd.f32 %v4668_v59, %v4656_v52  ;;  %v3131_v33 = vadd.f32 %v3101_v9, %v3038_v60 }
 0x1ba   : > { %v3040_v11 = vpop.f32.mrf.mxu0  ;;  %v3104_v42 = vpop.f32.mrf.mxu1 }
 0x1bb   : > { %v3041_v58 = vadd.f32 %v3040_v11, %v2976_v47  ;;  %v3134_v25 = vadd.f32 %v4680_v31, %v3049_v41 }
 0x1bc   : > { %v4671_v12 = vpop.f32.mrf.mxu0  ;;  %v4683_v50 = vpop.f32.mrf.mxu1 }
 0x1bd   : > { %v3062_v17 = vadd.f32 %v4671_v12, %v4659_v45  ;;  %v3132_v22 = vadd.f32 %v3104_v42, %v3041_v58 }
 0x1be   : > { %v3053_v40 = vpop.f32.mrf.mxu0  ;;  %v3117_v27 = vpop.f32.mrf.mxu1 }
 0x1bf   : > { %v3054_v10 = vadd.f32 %v3053_v40, %v5777_v0  ;;  %v3137_v47 = vadd.f32 %v4683_v50, %v3062_v17 }
 0x1c0   : > { %v4672_v44 = vpop.f32.mrf.mxu0  ;;  %v4684_v62 = vpop.f32.mrf.mxu1 }
 0x1c1   : > { %v3135_v45 = vadd.f32 %v3117_v27, %v3054_v10 }
 0x1c2   : > { %v3056_v5 = vpop.f32.mrf.mxu0  ;;  %v3120_v14 = vpop.f32.mrf.mxu1 }
 0x1c3   : > { %v3057_v11 = vadd.f32 %v3056_v5, %v5784_v39 }
 0x1c4   : > { %v4691_v23 = vpop.f32.mrf.mxu0  ;;  %v4703_v37 = vpop.f32.mrf.mxu1 }
 0x1c5   : > { %v3204_v30 = vadd.f32 %v4691_v23, %v3133_v29  ;;  %v3136_v0 = vadd.f32 %v3120_v14, %v3057_v11  ;;  %v4092_v14 = vld [vmem:[%s5831_s2] ss:$0 sm:$0xff] }
 0x1c6   : > { %v3172_v18 = vpop.f32.mrf.mxu0  ;;  %v3243_v38 = vpop.f32.mrf.mxu1 }
 0x1c7   : > { %v3202_v63 = vadd.f32 %v3172_v18, %v3131_v33  ;;  %v3275_v44 = vadd.f32 %v4703_v37, %v3204_v30 }
 0x1c8   : > { %v4692_v1 = vpop.f32.mrf.mxu0  ;;  %v4704_v57 = vpop.f32.mrf.mxu1 }
 0x1c9   : > { %v3205_v62 = vadd.f32 %v4692_v1, %v3134_v25  ;;  %v3273_v52 = vadd.f32 %v3243_v38, %v3202_v63 }
 0x1ca   : > { %v3175_v24 = vpop.f32.mrf.mxu0  ;;  %v3246_v34 = vpop.f32.mrf.mxu1 }
 0x1cb   : > { %v3203_v59 = vadd.f32 %v3175_v24, %v3132_v22  ;;  %v3276_v31 = vadd.f32 %v4704_v57, %v3205_v62 }
 0x1cc   : > { %v4695_v6 = vpop.f32.mrf.mxu0  ;;  %v4707_v13 = vpop.f32.mrf.mxu1 }
 0x1cd   : > { %v3208_v12 = vadd.f32 %v4695_v6, %v3137_v47  ;;  %v3274_v37 = vadd.f32 %v3246_v34, %v3203_v59 }
 0x1ce   : > { %v3188_v56 = vpop.f32.mrf.mxu0  ;;  %v3259_v7 = vpop.f32.mrf.mxu1 }
 0x1cf   : > { %v3206_v40 = vadd.f32 %v3188_v56, %v3135_v45  ;;  %v3279_v41 = vadd.f32 %v4707_v13, %v3208_v12 }
 0x1d0   : > { %v4696_v28 = vpop.f32.mrf.mxu0  ;;  %v4708_v55 = vpop.f32.mrf.mxu1 }
 0x1d1   : > { %v3277_v33 = vadd.f32 %v3259_v7, %v3206_v40 }
 0x1d2   : > { %v3191_v46 = vpop.f32.mrf.mxu0  ;;  %v5791_v32 = vpop.f32.mrf.mxu1 }
 0x1d3   : > { %v3207_v39 = vadd.f32 %v3191_v46, %v3136_v0 }
 0x1d4   : > { %v4715_v54 = vpop.f32.mrf.mxu0  ;;  %v4727_v19 = vpop.f32.mrf.mxu1 }
 0x1d5   : > { %v3346_v28 = vadd.f32 %v4715_v54, %v3275_v44  ;;  %v3278_v46 = vadd.f32 %v5791_v32, %v3207_v39 }
 0x1d6   : > { %v3314_v61 = vpop.f32.mrf.mxu0  ;;  %v3385_v36 = vpop.f32.mrf.mxu1 }
 0x1d7   : > { %v3344_v18 = vadd.f32 %v3314_v61, %v3273_v52  ;;  %v3417_v1 = vadd.f32 %v4727_v19, %v3346_v28 }
 0x1d8   : > { %v4716_v48 = vpop.f32.mrf.mxu0  ;;  %v4728_v8 = vpop.f32.mrf.mxu1 }
 0x1d9   : > { %v3347_v35 = vadd.f32 %v4716_v48, %v3276_v31  ;;  %v3415_v24 = vadd.f32 %v3385_v36, %v3344_v18 }
 0x1da   : > { %v3317_v49 = vpop.f32.mrf.mxu0  ;;  %v3388_v21 = vpop.f32.mrf.mxu1 }
 0x1db   : > { %v3345_v54 = vadd.f32 %v3317_v49, %v3274_v37  ;;  %v3418_v57 = vadd.f32 %v4728_v8, %v3347_v35 }
 0x1dc   : > { %v4719_v20 = vpop.f32.mrf.mxu0  ;;  %v4731_v15 = vpop.f32.mrf.mxu1 }
 0x1dd   : > { %v3350_v34 = vadd.f32 %v4719_v20, %v3279_v41  ;;  %v3416_v19 = vadd.f32 %v3388_v21, %v3345_v54 }
 0x1de   : > { %v3330_v3 = vpop.f32.mrf.mxu0  ;;  %v3401_v9 = vpop.f32.mrf.mxu1 }
 0x1df   : > { %v3348_v30 = vadd.f32 %v3330_v3, %v3277_v33  ;;  %v3421_v20 = vadd.f32 %v4731_v15, %v3350_v34 }
 0x1e0   : > { %v4720_v23 = vpop.f32.mrf.mxu0  ;;  %v4732_v55 = vpop.f32.mrf.mxu1 }
 0x1e1   : > { %v3419_v59 = vadd.f32 %v3401_v9, %v3348_v30 }
 0x1e2   : > { %v3333_v42 = vpop.f32.mrf.mxu0  ;;  %v3404_v60 = vpop.f32.mrf.mxu1 }
 0x1e3   : > { %v3349_v22 = vadd.f32 %v3333_v42, %v3278_v46 }
 0x1e4   : > { %v4739_v38 = vpop.f32.mrf.mxu0  ;;  %v4751_v50 = vpop.f32.mrf.mxu1 }
 0x1e5   : > { %v3488_v29 = vadd.f32 %v4739_v38, %v3417_v1  ;;  %v3420_v9 = vadd.f32 %v3404_v60, %v3349_v22 }
 0x1e6   : > { %v3456_v5 = vpop.f32.mrf.mxu0  ;;  %v3598_v6 = vpop.f32.mrf.mxu1 }
 0x1e7   : > { %v3630_v61 = vadd.f32 %v4751_v50, %v3488_v29  ;;  %v3486_v27 = vadd.f32 %v3456_v5, %v3415_v24 }
 0x1e8   : > { %v4740_v56 = vpop.f32.mrf.mxu0  ;;  %v4752_v13 = vpop.f32.mrf.mxu1 }
 0x1e9   : > { %v3637_v36 = vmax.f32 %v5755_v43, %v3630_v61  ;;  %v3628_v48 = vadd.f32 %v3598_v6, %v3486_v27  ;;  %v3489_v58 = vadd.f32 %v4740_v56, %v3418_v57 }
 0x1ea   : > { %v3459_v8 = vpop.f32.mrf.mxu0  ;;  %v3601_v17 = vpop.f32.mrf.mxu1 }
 0x1eb   : > { %v3651_v49 = vadd.f32 %v4092_v14, %v3637_v36  ;;  %v3635_v7 = vmax.f32 %v5760_v26, %v3628_v48  ;;  %v3631_v25 = vadd.f32 %v4752_v13, %v3489_v58  ;;  %v3487_v63 = vadd.f32 %v3459_v8, %v3416_v19 }
 0x1ec   : > { %v4743_v44 = vpop.f32.mrf.mxu0  ;;  %v4755_v52 = vpop.f32.mrf.mxu1 }
 0x1ed   : > { %v3658_v21 = vmax.f32 %v3651_v49, 0.0  ;;  %v3649_v62 = vadd.f32 %v4092_v14, %v3635_v7  ;;  %v3638_v43 = vmax.f32 %v5765_v53, %v3631_v25  ;;  %v3629_v10 = vadd.f32 %v3601_v17, %v3487_v63 }
 0x1ee   : > { %v3492_v26 = vadd.f32 %v4743_v44, %v3421_v20  ;;  %v3472_v32 = vpop.f32.mrf.mxu0  ;;  %v3614_v11 = vpop.f32.mrf.mxu1 }
 0x1ef   : > { %v4104_v3 = vpack.c.bf16 %v3658_v21, %v3658_v21  ;;  %v3656_v15 = vmax.f32 %v3649_v62, 0.0  ;;  %v3652_v28 = vadd.f32 %v4092_v14, %v3638_v43  ;;  %v3636_v47 = vmax.f32 %v5770_v2, %v3629_v10 }
 0x1f0   : > { %v3634_v53 = vadd.f32 %v4755_v52, %v3492_v26  ;;  %v3490_v23 = vadd.f32 %v3472_v32, %v3419_v59  ;;  %v4744_v31 = vpop.f32.mrf.mxu0  ;;  %v4756_v12 = vpop.f32.mrf.mxu1 }
 0x1f1   : > { %3695 = vst.msk [vmem:[%s5806_s13 + $0x8] sm:$0xf] %vm3692_vm2, %v4104_v3  ;;  %v4102_v18 = vpack.c.bf16 %v3656_v15, %v3656_v15  ;;  %v3659_v55 = vmax.f32 %v3652_v28, 0.0  ;;  %v3650_v45 = vadd.f32 %v4092_v14, %v3636_v47 }
 0x1f2   : > { %v3641_v42 = vmax.f32 %v5775_v51, %v3634_v53  ;;  %v3632_v37 = vadd.f32 %v3614_v11, %v3490_v23  ;;  %v3475_v1 = vpop.f32.mrf.mxu0  ;;  %v3617_v38 = vpop.f32.mrf.mxu1 }
 0x1f3   : > { %3693 = vst.msk [vmem:[%s5806_s13] sm:$0xf] %vm3692_vm2, %v4102_v18  ;;  %v4105_v2 = vpack.c.bf16 %v3659_v55, %v3659_v55  ;;  %v3657_v35 = vmax.f32 %v3650_v45, 0.0  ;;  %v3491_v0 = vadd.f32 %v3475_v1, %v3420_v9 }
 0x1f4   : > { %v3655_v40 = vadd.f32 %v4092_v14, %v3641_v42  ;;  %v3639_v60 = vmax.f32 %v5782_v16, %v3632_v37 }
 0x1f5   : > { %3696 = vst.msk [vmem:[%s5806_s13 + $0xc] sm:$0xf] %vm3692_vm2, %v4105_v2  ;;  %v4103_v24 = vpack.c.bf16 %v3657_v35, %v3657_v35  ;;  %v3633_v54 = vadd.f32 %v3617_v38, %v3491_v0 }
 0x1f6   : > { %v3662_v29 = vmax.f32 %v3655_v40, 0.0  ;;  %v3653_v51 = vadd.f32 %v4092_v14, %v3639_v60 }
 0x1f7   : > { %3694 = vst.msk [vmem:[%s5806_s13 + $0x4] sm:$0xf] %vm3692_vm2, %v4103_v24  ;;  %v3640_v50 = vmax.f32 %v5789_v4, %v3633_v54 }
 0x1f8   : > { %v4108_v41 = vpack.c.bf16 %v3662_v29, %v3662_v29  ;;  %v3660_v39 = vmax.f32 %v3653_v51, 0.0 }
 0x1f9   : > { %v3654_v5 = vadd.f32 %v4092_v14, %v3640_v50 }
 0x1fa   : > { %3699 = vst.msk [vmem:[%s5806_s13 + $0x18] sm:$0xf] %vm3692_vm2, %v4108_v41  ;;  %v4106_v57 = vpack.c.bf16 %v3660_v39, %v3660_v39 }
 0x1fb   : > { %v3661_v61 = vmax.f32 %v3654_v5, 0.0 }
 0x1fc   : > { %3697 = vst.msk [vmem:[%s5806_s13 + $0x10] sm:$0xf] %vm3692_vm2, %v4106_v57 }
 0x1fd   : > { %v4107_v16 = vpack.c.bf16 %v3661_v61, %v3661_v61 }
 0x1ff   : > { %3698 = vst.msk [vmem:[%s5806_s13 + $0x14] sm:$0xf] %vm3692_vm2, %v4107_v16 }
 0x200 PF: > { %s13_s12 = sadd.s32 1, %s4871_s12  }
 0x201   : > { %p10_p4 = scmp.ge.s32.totalorder %s13_s12, 4  }
 0x203   :  { %12 = sbr.rel (!%p10_p4) target bundleno = 1 (0x1), region = 73 }

</bundles_post_ra>
